<compile_context>
chip_gen: v7x
topology: tpu7x:2x2x1
jax: 0.10.0
libtpu: 0.0.40
codegen_flags: <defaults>
</compile_context>

<pallas_src>
import numpy as np

import jax
import jax.numpy as jnp
from jax import lax
from jax.experimental import pallas as pl
from jax.experimental.pallas import tpu as pltpu

F1 = 16      # matches Encoder(f1=16) default
H_IN = 16    # spatial size this weight packing is specialized for (16x16 input)


# ---------------------------------------------------------------------------
# Fused encoder kernel (one grid step == one image, everything in VMEM).
# ---------------------------------------------------------------------------
def _encoder_kernel(x_ref, bias_ref, rsel_ref,
                    w1a_ref, w1b_ref, w2a_ref, w2b_ref,
                    w3a_ref, w3b_ref, wba_ref, wbb_ref,
                    enc_ref, c3_ref, c2_ref, c1_ref):
    bf16, f32 = jnp.bfloat16, jnp.float32

    def conv_relu(y, w_ref, b_row):
        # y: (H, W*Cin) f32, w_ref: (3, W*Cin, W*Cout) bf16, b_row: (1, W*Cout) f32
        h = y.shape[0]
        z = jnp.zeros((1, y.shape[1]), bf16)
        yp = jnp.concatenate([z, y.astype(bf16), z], axis=0)   # H-direction "same" pad
        acc = b_row
        for dh in range(3):                                    # 3 MXU matmuls / conv
            acc = acc + jnp.dot(yp[dh:dh + h, :], w_ref[dh],
                                preferred_element_type=f32)
        return jnp.maximum(acc, 0.0)                           # (H, W*Cout) f32

    def maxpool2x2(y, r_even, r_odd):
        # y: (H, W*C) f32 -> (H//2, (W//2)*C) f32 (lane-dense 128-wide output).
        h = y.shape[0]
        ph = jnp.concatenate(
            [jnp.maximum(y[2 * i:2 * i + 1, :], y[2 * i + 1:2 * i + 2, :])
             for i in range(h // 2)], axis=0).astype(bf16)     # max over row pairs
        return jnp.maximum(jnp.dot(ph, r_even, preferred_element_type=f32),
                           jnp.dot(ph, r_odd, preferred_element_type=f32))

    x = x_ref[0]                # (16, 16) == (H, W*Cin) with Cin = 1
    b = bias_ref[...]           # (8, 256)

    conv1 = conv_relu(conv_relu(x, w1a_ref, b[0:1]), w1b_ref, b[1:2])    # (16, 256)
    c1_ref[0] = conv1
    x1 = maxpool2x2(conv1, rsel_ref[0], rsel_ref[1])                     # (8, 128)

    conv2 = conv_relu(conv_relu(x1, w2a_ref, b[2:3]), w2b_ref, b[3:4])   # (8, 256)
    c2_ref[0] = conv2
    x2 = maxpool2x2(conv2, rsel_ref[2], rsel_ref[3])                     # (4, 128)

    conv3 = conv_relu(conv_relu(x2, w3a_ref, b[4:5]), w3b_ref, b[5:6])   # (4, 256)
    c3_ref[0] = conv3
    x3 = maxpool2x2(conv3, rsel_ref[4], rsel_ref[5])                     # (2, 128)

    enc = conv_relu(conv_relu(x3, wba_ref, b[6:7]), wbb_ref, b[7:8])     # (2, 256)
    enc_ref[0] = enc


# ---------------------------------------------------------------------------
# Host-side (numpy) weight repacking into the kernel's flat-lane layout.
# ---------------------------------------------------------------------------
def _band_weight(w_hwio, w_spatial):
    """(3,3,Cin,Cout) HWIO conv weight -> (3, W*Cin, W*Cout) bf16 banded matrices.

    Row dh of the 3x3 kernel becomes one matrix; the contraction over
    (dw, cin) and the W-direction 'same' zero padding are folded into a
    block-Toeplitz band so the kernel only needs full-width row-shifted taps.
    """
    w = np.asarray(w_hwio, np.float32)
    cin, cout = w.shape[2], w.shape[3]
    W = w_spatial
    m = np.zeros((3, W * cin, W * cout), np.float32)
    for dh in range(3):
        for j in range(W):              # output column
            for dw in range(3):
                wi = j + dw - 1         # input column; OOB -> implicit zero pad
                if 0 <= wi < W:
                    m[dh, wi * cin:(wi + 1) * cin, j * cout:(j + 1) * cout] = w[dh, dw]
    return jnp.asarray(m, jnp.bfloat16)


def _pool_select(w_spatial, c):
    """(2, W*C, (W//2)*C) 0/1 matrices selecting even / odd column blocks."""
    W = w_spatial
    r = np.zeros((2, W * c, (W // 2) * c), np.float32)
    for b in range(2):
        for j in range(W // 2):
            r[b, (2 * j + b) * c:(2 * j + b + 1) * c, j * c:(j + 1) * c] = np.eye(c)
    return r


def pack_encoder_params(params):
    """Repack HWIO conv params (done once, on host) into kernel inputs."""
    widths = [16, 16, 8, 8, 4, 4, 2, 2]          # spatial W per conv layer
    f1 = int(params[0][0].shape[-1])
    weights = [_band_weight(w, wd) for (w, _), wd in zip(params, widths)]
    biases = jnp.asarray(
        np.stack([np.tile(np.asarray(b, np.float32), wd)
                  for (_, b), wd in zip(params, widths)]), jnp.float32)    # (8, 256)
    rsel = jnp.asarray(
        np.concatenate([_pool_select(16, f1),
                        _pool_select(8, 2 * f1),
                        _pool_select(4, 4 * f1)], axis=0), jnp.bfloat16)   # (6,256,128)
    return weights, biases, rsel


# ---------------------------------------------------------------------------
# Pallas forward (jit-able; takes the packed params) and its wrapper glue.
# ---------------------------------------------------------------------------
def encoder_forward_packed(packed, x_nchw):
    """Fused Pallas forward. x_nchw: (N, 1, 16, 16) f32 -> 4 NCHW outputs."""
    weights, biases, rsel = packed
    N = x_nchw.shape[0]
    f1 = biases.shape[1] // H_IN         # 256 // 16
    lanes = H_IN * f1                    # 256: flat last dim of every conv output
    x_flat = x_nchw[:, 0, :, :]          # (N, 16, 16) == (H, W*Cin) with Cin = 1

    in_specs = (
        [pl.BlockSpec((1, H_IN, H_IN), lambda n: (n, 0, 0)),
         pl.BlockSpec(biases.shape, lambda n: (0, 0)),
         pl.BlockSpec(rsel.shape, lambda n: (0, 0, 0))]
        + [pl.BlockSpec(w.shape, lambda n: (0, 0, 0)) for w in weights])

    out_shape = (jax.ShapeDtypeStruct((N, 2, lanes), jnp.float32),    # enc_out
                 jax.ShapeDtypeStruct((N, 4, lanes), jnp.float32),    # conv3
                 jax.ShapeDtypeStruct((N, 8, lanes), jnp.float32),    # conv2
                 jax.ShapeDtypeStruct((N, 16, lanes), jnp.float32))   # conv1
    out_specs = (pl.BlockSpec((1, 2, lanes), lambda n: (n, 0, 0)),
                 pl.BlockSpec((1, 4, lanes), lambda n: (n, 0, 0)),
                 pl.BlockSpec((1, 8, lanes), lambda n: (n, 0, 0)),
                 pl.BlockSpec((1, 16, lanes), lambda n: (n, 0, 0)))

    enc_f, c3_f, c2_f, c1_f = pl.pallas_call(
        _encoder_kernel,
        out_shape=out_shape,
        grid=(N,),
        in_specs=in_specs,
        out_specs=out_specs,
        compiler_params=pltpu.CompilerParams(
            dimension_semantics=("parallel",),      # one image per TC on v7x
            vmem_limit_bytes=16 * 1024 * 1024),     # ~2x headroom over real use
    )(x_flat, biases, rsel, *weights)

    def unflat(y, w, c):   # (N, H, W*C) flat -> (N, C, H, W) NCHW (boundary glue)
        n, h, _ = y.shape
        return jnp.transpose(y.reshape(n, h, w, c), (0, 3, 1, 2))

    return (unflat(enc_f, 2, 8 * f1), unflat(c3_f, 4, 4 * f1),
            unflat(c2_f, 8, 2 * f1), unflat(c1_f, 16, f1))


# ---------------------------------------------------------------------------
# Parameter init (deterministic; PyTorch Conv2d shapes, stored as HWIO)
# ---------------------------------------------------------------------------
def _init_conv(key, cin, cout):
    kw, kb = jax.random.split(key)
    w = jax.random.normal(kw, (3, 3, cin, cout), jnp.float32) / jnp.sqrt(9.0 * cin)
    b = 0.01 * jax.random.normal(kb, (cout,), jnp.float32)
    return w, b


def init_encoder(key, f1=F1):
    chans = [(1, f1), (f1, f1),                   # dconv1
             (f1, 2 * f1), (2 * f1, 2 * f1),      # dconv2
             (2 * f1, 4 * f1), (4 * f1, 4 * f1),  # dconv3
             (4 * f1, 8 * f1), (8 * f1, 8 * f1)]  # bottle
    keys = jax.random.split(key, len(chans))
    return [_init_conv(k, ci, co) for k, (ci, co) in zip(keys, chans)]


# ---------------------------------------------------------------------------
# Pure-JAX reference (XLA conv / reduce_window) for correctness checking.
# ---------------------------------------------------------------------------
def _conv_ref(x, w, b):
    y = lax.conv_general_dilated(x, w, (1, 1), "SAME",
                                 dimension_numbers=("NHWC", "HWIO", "NHWC"))
    return jnp.maximum(y + b.reshape(1, 1, 1, -1), 0.0)


def _pool_ref(x):
    return lax.reduce_window(x, -jnp.inf, lax.max, (1, 2, 2, 1), (1, 2, 2, 1), "VALID")


def encoder_reference(params, x_nchw):
    x = jnp.transpose(x_nchw, (0, 2, 3, 1))
    conv1 = _conv_ref(_conv_ref(x, *params[0]), *params[1])
    x1 = _pool_ref(conv1)
    conv2 = _conv_ref(_conv_ref(x1, *params[2]), *params[3])
    x2 = _pool_ref(conv2)
    conv3 = _conv_ref(_conv_ref(x2, *params[4]), *params[5])
    x3 = _pool_ref(conv3)
    enc = _conv_ref(_conv_ref(x3, *params[6]), *params[7])
    return tuple(jnp.transpose(o, (0, 3, 1, 2)) for o in (enc, conv3, conv2, conv1))


# ---------------------------------------------------------------------------
if __name__ == "__main__":
    key = jax.random.PRNGKey(0)
    pkey, xkey = jax.random.split(key)

    params = init_encoder(pkey, F1)
    # PyTorch-style NCHW input: batch=2, 1 channel, 16x16 spatial.
    x = jax.random.normal(xkey, (2, 1, 16, 16), jnp.float32)

    packed = pack_encoder_params(params)          # one-time host repack
    fwd = jax.jit(encoder_forward_packed)
    outs = jax.block_until_ready(fwd(packed, x))

    refs = encoder_reference(params, x)
    expected_shapes = [(2, 8 * F1, 2, 2), (2, 4 * F1, 4, 4),
                       (2, 2 * F1, 8, 8), (2, F1, 16, 16)]
    for o, r, s in zip(outs, refs, expected_shapes):
        assert o.shape == s, (o.shape, s)
        assert o.dtype == jnp.float32
        err = float(jnp.max(jnp.abs(o - r)))
        # bf16 MXU passes with f32 accumulation vs. XLA reference.
        assert jnp.allclose(o, r, rtol=2e-2, atol=2e-2), err

    print("KERNEL_OK")
</pallas_src>

<mosaic_0001>
module attributes {stable_mosaic.version = 11 : i64} {
  func.func @_encoder_kernel(%arg0: i32, %arg1: memref<1x16x16xf32, #tpu.memory_space<vmem>>, %arg2: memref<8x256xf32, #tpu.memory_space<vmem>>, %arg3: memref<6x256x128xbf16, #tpu.memory_space<vmem>>, %arg4: memref<3x16x256xbf16, #tpu.memory_space<vmem>>, %arg5: memref<3x256x256xbf16, #tpu.memory_space<vmem>>, %arg6: memref<3x128x256xbf16, #tpu.memory_space<vmem>>, %arg7: memref<3x256x256xbf16, #tpu.memory_space<vmem>>, %arg8: memref<3x128x256xbf16, #tpu.memory_space<vmem>>, %arg9: memref<3x256x256xbf16, #tpu.memory_space<vmem>>, %arg10: memref<3x128x256xbf16, #tpu.memory_space<vmem>>, %arg11: memref<3x256x256xbf16, #tpu.memory_space<vmem>>, %arg12: memref<1x2x256xf32, #tpu.memory_space<vmem>>, %arg13: memref<1x4x256xf32, #tpu.memory_space<vmem>>, %arg14: memref<1x8x256xf32, #tpu.memory_space<vmem>>, %arg15: memref<1x16x256xf32, #tpu.memory_space<vmem>>) attributes {dimension_semantics = [#tpu.dimension_semantics<parallel>], iteration_bounds = array<i64: 2>, scalar_prefetch = 0 : i64, scratch_operands = 0 : i64, tpu.core_type = #tpu.core_type<tc>, window_params = [{transform_indices = @transform_0, window_bounds = array<i64: 1, 16, 16>}, {pipeline_mode = #tpu.pipeline_mode<synchronous>, transform_indices = @transform_1, window_bounds = array<i64: 8, 256>}, {pipeline_mode = #tpu.pipeline_mode<synchronous>, transform_indices = @transform_2, window_bounds = array<i64: 6, 256, 128>}, {pipeline_mode = #tpu.pipeline_mode<synchronous>, transform_indices = @transform_3, window_bounds = array<i64: 3, 16, 256>}, {pipeline_mode = #tpu.pipeline_mode<synchronous>, transform_indices = @transform_4, window_bounds = array<i64: 3, 256, 256>}, {pipeline_mode = #tpu.pipeline_mode<synchronous>, transform_indices = @transform_5, window_bounds = array<i64: 3, 128, 256>}, {pipeline_mode = #tpu.pipeline_mode<synchronous>, transform_indices = @transform_6, window_bounds = array<i64: 3, 256, 256>}, {pipeline_mode = #tpu.pipeline_mode<synchronous>, transform_indices = @transform_7, window_bounds = array<i64: 3, 128, 256>}, {pipeline_mode = #tpu.pipeline_mode<synchronous>, transform_indices = @transform_8, window_bounds = array<i64: 3, 256, 256>}, {pipeline_mode = #tpu.pipeline_mode<synchronous>, transform_indices = @transform_9, window_bounds = array<i64: 3, 128, 256>}, {pipeline_mode = #tpu.pipeline_mode<synchronous>, transform_indices = @transform_10, window_bounds = array<i64: 3, 256, 256>}, {transform_indices = @transform_11, window_bounds = array<i64: 1, 2, 256>}, {transform_indices = @transform_12, window_bounds = array<i64: 1, 4, 256>}, {transform_indices = @transform_13, window_bounds = array<i64: 1, 8, 256>}, {transform_indices = @transform_14, window_bounds = array<i64: 1, 16, 256>}]} {
    %c0 = arith.constant 0 : index
    %c0_0 = arith.constant 0 : index
    %c0_1 = arith.constant 0 : index
    %0 = vector.load %arg1[%c0, %c0_0, %c0_1] : memref<1x16x16xf32, #tpu.memory_space<vmem>>, vector<1x16x16xf32>
    %1 = vector.shape_cast %0 : vector<1x16x16xf32> to vector<16x16xf32>
    %c0_2 = arith.constant 0 : index
    %c0_3 = arith.constant 0 : index
    %2 = vector.load %arg2[%c0_2, %c0_3] : memref<8x256xf32, #tpu.memory_space<vmem>>, vector<8x256xf32>
    %3 = vector.extract_strided_slice %2 {offsets = [0, 0], sizes = [1, 256], strides = [1, 1]} : vector<8x256xf32> to vector<1x256xf32>
    %cst = arith.constant 0.000000e+00 : bf16
    %4 = vector.broadcast %cst : bf16 to vector<1x16xbf16>
    %5 = arith.truncf %1 : vector<16x16xf32> to vector<16x16xbf16>
    %6 = tpu.concatenate %4, %5, %4 in 0 : vector<1x16xbf16>, vector<16x16xbf16>, vector<1x16xbf16> -> vector<18x16xbf16>
    %7 = vector.extract_strided_slice %6 {offsets = [0, 0], sizes = [16, 16], strides = [1, 1]} : vector<18x16xbf16> to vector<16x16xbf16>
    %c0_4 = arith.constant 0 : index
    %c0_5 = arith.constant 0 : index
    %c0_6 = arith.constant 0 : index
    %8 = vector.load %arg4[%c0_4, %c0_5, %c0_6] : memref<3x16x256xbf16, #tpu.memory_space<vmem>>, vector<1x16x256xbf16>
    %9 = vector.shape_cast %8 : vector<1x16x256xbf16> to vector<16x256xbf16>
    %cst_7 = arith.constant dense<0.000000e+00> : vector<16x256xf32>
    %10 = tpu.matmul %7, %9, %cst_7 {dimension_numbers = #tpu.dot_dimension_numbers<[1], [0], [0], [1], [0, 0, 1, 1], [], []>} : vector<16x16xbf16>, vector<16x256xbf16>, vector<16x256xf32> -> vector<16x256xf32>
    %11 = vector.broadcast %3 : vector<1x256xf32> to vector<16x256xf32>
    %12 = arith.addf %11, %10 : vector<16x256xf32>
    %13 = vector.extract_strided_slice %6 {offsets = [1, 0], sizes = [16, 16], strides = [1, 1]} : vector<18x16xbf16> to vector<16x16xbf16>
    %c1 = arith.constant 1 : index
    %c0_8 = arith.constant 0 : index
    %c0_9 = arith.constant 0 : index
    %14 = vector.load %arg4[%c1, %c0_8, %c0_9] : memref<3x16x256xbf16, #tpu.memory_space<vmem>>, vector<1x16x256xbf16>
    %15 = vector.shape_cast %14 : vector<1x16x256xbf16> to vector<16x256xbf16>
    %cst_10 = arith.constant dense<0.000000e+00> : vector<16x256xf32>
    %16 = tpu.matmul %13, %15, %cst_10 {dimension_numbers = #tpu.dot_dimension_numbers<[1], [0], [0], [1], [0, 0, 1, 1], [], []>} : vector<16x16xbf16>, vector<16x256xbf16>, vector<16x256xf32> -> vector<16x256xf32>
    %17 = arith.addf %12, %16 : vector<16x256xf32>
    %18 = vector.extract_strided_slice %6 {offsets = [2, 0], sizes = [16, 16], strides = [1, 1]} : vector<18x16xbf16> to vector<16x16xbf16>
    %c2 = arith.constant 2 : index
    %c0_11 = arith.constant 0 : index
    %c0_12 = arith.constant 0 : index
    %19 = vector.load %arg4[%c2, %c0_11, %c0_12] : memref<3x16x256xbf16, #tpu.memory_space<vmem>>, vector<1x16x256xbf16>
    %20 = vector.shape_cast %19 : vector<1x16x256xbf16> to vector<16x256xbf16>
    %cst_13 = arith.constant dense<0.000000e+00> : vector<16x256xf32>
    %21 = tpu.matmul %18, %20, %cst_13 {dimension_numbers = #tpu.dot_dimension_numbers<[1], [0], [0], [1], [0, 0, 1, 1], [], []>} : vector<16x16xbf16>, vector<16x256xbf16>, vector<16x256xf32> -> vector<16x256xf32>
    %22 = arith.addf %17, %21 : vector<16x256xf32>
    %cst_14 = arith.constant 0.000000e+00 : f32
    %23 = vector.broadcast %cst_14 : f32 to vector<16x256xf32>
    %24 = arith.maximumf %22, %23 : vector<16x256xf32>
    %25 = vector.extract_strided_slice %2 {offsets = [1, 0], sizes = [1, 256], strides = [1, 1]} : vector<8x256xf32> to vector<1x256xf32>
    %cst_15 = arith.constant 0.000000e+00 : bf16
    %26 = vector.broadcast %cst_15 : bf16 to vector<1x256xbf16>
    %27 = arith.truncf %24 : vector<16x256xf32> to vector<16x256xbf16>
    %28 = tpu.concatenate %26, %27, %26 in 0 : vector<1x256xbf16>, vector<16x256xbf16>, vector<1x256xbf16> -> vector<18x256xbf16>
    %29 = vector.extract_strided_slice %28 {offsets = [0, 0], sizes = [16, 256], strides = [1, 1]} : vector<18x256xbf16> to vector<16x256xbf16>
    %c0_16 = arith.constant 0 : index
    %c0_17 = arith.constant 0 : index
    %c0_18 = arith.constant 0 : index
    %30 = vector.load %arg5[%c0_16, %c0_17, %c0_18] : memref<3x256x256xbf16, #tpu.memory_space<vmem>>, vector<1x256x256xbf16>
    %31 = vector.shape_cast %30 : vector<1x256x256xbf16> to vector<256x256xbf16>
    %cst_19 = arith.constant dense<0.000000e+00> : vector<16x256xf32>
    %32 = tpu.matmul %29, %31, %cst_19 {dimension_numbers = #tpu.dot_dimension_numbers<[1], [0], [0], [1], [0, 0, 1, 1], [], []>} : vector<16x256xbf16>, vector<256x256xbf16>, vector<16x256xf32> -> vector<16x256xf32>
    %33 = vector.broadcast %25 : vector<1x256xf32> to vector<16x256xf32>
    %34 = arith.addf %33, %32 : vector<16x256xf32>
    %35 = vector.extract_strided_slice %28 {offsets = [1, 0], sizes = [16, 256], strides = [1, 1]} : vector<18x256xbf16> to vector<16x256xbf16>
    %c1_20 = arith.constant 1 : index
    %c0_21 = arith.constant 0 : index
    %c0_22 = arith.constant 0 : index
    %36 = vector.load %arg5[%c1_20, %c0_21, %c0_22] : memref<3x256x256xbf16, #tpu.memory_space<vmem>>, vector<1x256x256xbf16>
    %37 = vector.shape_cast %36 : vector<1x256x256xbf16> to vector<256x256xbf16>
    %cst_23 = arith.constant dense<0.000000e+00> : vector<16x256xf32>
    %38 = tpu.matmul %35, %37, %cst_23 {dimension_numbers = #tpu.dot_dimension_numbers<[1], [0], [0], [1], [0, 0, 1, 1], [], []>} : vector<16x256xbf16>, vector<256x256xbf16>, vector<16x256xf32> -> vector<16x256xf32>
    %39 = arith.addf %34, %38 : vector<16x256xf32>
    %40 = vector.extract_strided_slice %28 {offsets = [2, 0], sizes = [16, 256], strides = [1, 1]} : vector<18x256xbf16> to vector<16x256xbf16>
    %c2_24 = arith.constant 2 : index
    %c0_25 = arith.constant 0 : index
    %c0_26 = arith.constant 0 : index
    %41 = vector.load %arg5[%c2_24, %c0_25, %c0_26] : memref<3x256x256xbf16, #tpu.memory_space<vmem>>, vector<1x256x256xbf16>
    %42 = vector.shape_cast %41 : vector<1x256x256xbf16> to vector<256x256xbf16>
    %cst_27 = arith.constant dense<0.000000e+00> : vector<16x256xf32>
    %43 = tpu.matmul %40, %42, %cst_27 {dimension_numbers = #tpu.dot_dimension_numbers<[1], [0], [0], [1], [0, 0, 1, 1], [], []>} : vector<16x256xbf16>, vector<256x256xbf16>, vector<16x256xf32> -> vector<16x256xf32>
    %44 = arith.addf %39, %43 : vector<16x256xf32>
    %cst_28 = arith.constant 0.000000e+00 : f32
    %45 = vector.broadcast %cst_28 : f32 to vector<16x256xf32>
    %46 = arith.maximumf %44, %45 : vector<16x256xf32>
    %c0_29 = arith.constant 0 : index
    %c0_30 = arith.constant 0 : index
    %c0_31 = arith.constant 0 : index
    %47 = vector.load %arg15[%c0_29, %c0_30, %c0_31] : memref<1x16x256xf32, #tpu.memory_space<vmem>>, vector<1x16x256xf32>
    %48 = vector.shape_cast %47 : vector<1x16x256xf32> to vector<16x256xf32>
    %49 = vector.shape_cast %46 : vector<16x256xf32> to vector<1x16x256xf32>
    tpu.vector_store %arg15[%c0_29, %c0_30, %c0_31], %49 {strides = array<i32>} : memref<1x16x256xf32, #tpu.memory_space<vmem>>, vector<1x16x256xf32>,
    %c0_32 = arith.constant 0 : index
    %c0_33 = arith.constant 0 : index
    %c0_34 = arith.constant 0 : index
    %50 = vector.load %arg3[%c0_32, %c0_33, %c0_34] : memref<6x256x128xbf16, #tpu.memory_space<vmem>>, vector<1x256x128xbf16>
    %51 = vector.shape_cast %50 : vector<1x256x128xbf16> to vector<256x128xbf16>
    %c1_35 = arith.constant 1 : index
    %c0_36 = arith.constant 0 : index
    %c0_37 = arith.constant 0 : index
    %52 = vector.load %arg3[%c1_35, %c0_36, %c0_37] : memref<6x256x128xbf16, #tpu.memory_space<vmem>>, vector<1x256x128xbf16>
    %53 = vector.shape_cast %52 : vector<1x256x128xbf16> to vector<256x128xbf16>
    %54 = vector.extract_strided_slice %46 {offsets = [0, 0], sizes = [1, 256], strides = [1, 1]} : vector<16x256xf32> to vector<1x256xf32>
    %55 = vector.extract_strided_slice %46 {offsets = [1, 0], sizes = [1, 256], strides = [1, 1]} : vector<16x256xf32> to vector<1x256xf32>
    %56 = arith.maximumf %54, %55 : vector<1x256xf32>
    %57 = vector.extract_strided_slice %46 {offsets = [2, 0], sizes = [1, 256], strides = [1, 1]} : vector<16x256xf32> to vector<1x256xf32>
    %58 = vector.extract_strided_slice %46 {offsets = [3, 0], sizes = [1, 256], strides = [1, 1]} : vector<16x256xf32> to vector<1x256xf32>
    %59 = arith.maximumf %57, %58 : vector<1x256xf32>
    %60 = vector.extract_strided_slice %46 {offsets = [4, 0], sizes = [1, 256], strides = [1, 1]} : vector<16x256xf32> to vector<1x256xf32>
    %61 = vector.extract_strided_slice %46 {offsets = [5, 0], sizes = [1, 256], strides = [1, 1]} : vector<16x256xf32> to vector<1x256xf32>
    %62 = arith.maximumf %60, %61 : vector<1x256xf32>
    %63 = vector.extract_strided_slice %46 {offsets = [6, 0], sizes = [1, 256], strides = [1, 1]} : vector<16x256xf32> to vector<1x256xf32>
    %64 = vector.extract_strided_slice %46 {offsets = [7, 0], sizes = [1, 256], strides = [1, 1]} : vector<16x256xf32> to vector<1x256xf32>
    %65 = arith.maximumf %63, %64 : vector<1x256xf32>
    %66 = vector.extract_strided_slice %46 {offsets = [8, 0], sizes = [1, 256], strides = [1, 1]} : vector<16x256xf32> to vector<1x256xf32>
    %67 = vector.extract_strided_slice %46 {offsets = [9, 0], sizes = [1, 256], strides = [1, 1]} : vector<16x256xf32> to vector<1x256xf32>
    %68 = arith.maximumf %66, %67 : vector<1x256xf32>
    %69 = vector.extract_strided_slice %46 {offsets = [10, 0], sizes = [1, 256], strides = [1, 1]} : vector<16x256xf32> to vector<1x256xf32>
    %70 = vector.extract_strided_slice %46 {offsets = [11, 0], sizes = [1, 256], strides = [1, 1]} : vector<16x256xf32> to vector<1x256xf32>
    %71 = arith.maximumf %69, %70 : vector<1x256xf32>
    %72 = vector.extract_strided_slice %46 {offsets = [12, 0], sizes = [1, 256], strides = [1, 1]} : vector<16x256xf32> to vector<1x256xf32>
    %73 = vector.extract_strided_slice %46 {offsets = [13, 0], sizes = [1, 256], strides = [1, 1]} : vector<16x256xf32> to vector<1x256xf32>
    %74 = arith.maximumf %72, %73 : vector<1x256xf32>
    %75 = vector.extract_strided_slice %46 {offsets = [14, 0], sizes = [1, 256], strides = [1, 1]} : vector<16x256xf32> to vector<1x256xf32>
    %76 = vector.extract_strided_slice %46 {offsets = [15, 0], sizes = [1, 256], strides = [1, 1]} : vector<16x256xf32> to vector<1x256xf32>
    %77 = arith.maximumf %75, %76 : vector<1x256xf32>
    %78 = tpu.concatenate %56, %59, %62, %65, %68, %71, %74, %77 in 0 : vector<1x256xf32>, vector<1x256xf32>, vector<1x256xf32>, vector<1x256xf32>, vector<1x256xf32>, vector<1x256xf32>, vector<1x256xf32>, vector<1x256xf32> -> vector<8x256xf32>
    %79 = arith.truncf %78 : vector<8x256xf32> to vector<8x256xbf16>
    %cst_38 = arith.constant dense<0.000000e+00> : vector<8x128xf32>
    %80 = tpu.matmul %79, %51, %cst_38 {dimension_numbers = #tpu.dot_dimension_numbers<[1], [0], [0], [1], [0, 0, 1, 1], [], []>} : vector<8x256xbf16>, vector<256x128xbf16>, vector<8x128xf32> -> vector<8x128xf32>
    %cst_39 = arith.constant dense<0.000000e+00> : vector<8x128xf32>
    %81 = tpu.matmul %79, %53, %cst_39 {dimension_numbers = #tpu.dot_dimension_numbers<[1], [0], [0], [1], [0, 0, 1, 1], [], []>} : vector<8x256xbf16>, vector<256x128xbf16>, vector<8x128xf32> -> vector<8x128xf32>
    %82 = arith.maximumf %80, %81 : vector<8x128xf32>
    %83 = vector.extract_strided_slice %2 {offsets = [2, 0], sizes = [1, 256], strides = [1, 1]} : vector<8x256xf32> to vector<1x256xf32>
    %cst_40 = arith.constant 0.000000e+00 : bf16
    %84 = vector.broadcast %cst_40 : bf16 to vector<1x128xbf16>
    %85 = arith.truncf %82 : vector<8x128xf32> to vector<8x128xbf16>
    %86 = tpu.concatenate %84, %85, %84 in 0 : vector<1x128xbf16>, vector<8x128xbf16>, vector<1x128xbf16> -> vector<10x128xbf16>
    %87 = vector.extract_strided_slice %86 {offsets = [0, 0], sizes = [8, 128], strides = [1, 1]} : vector<10x128xbf16> to vector<8x128xbf16>
    %c0_41 = arith.constant 0 : index
    %c0_42 = arith.constant 0 : index
    %c0_43 = arith.constant 0 : index
    %88 = vector.load %arg6[%c0_41, %c0_42, %c0_43] : memref<3x128x256xbf16, #tpu.memory_space<vmem>>, vector<1x128x256xbf16>
    %89 = vector.shape_cast %88 : vector<1x128x256xbf16> to vector<128x256xbf16>
    %cst_44 = arith.constant dense<0.000000e+00> : vector<8x256xf32>
    %90 = tpu.matmul %87, %89, %cst_44 {dimension_numbers = #tpu.dot_dimension_numbers<[1], [0], [0], [1], [0, 0, 1, 1], [], []>} : vector<8x128xbf16>, vector<128x256xbf16>, vector<8x256xf32> -> vector<8x256xf32>
    %91 = vector.broadcast %83 : vector<1x256xf32> to vector<8x256xf32>
    %92 = arith.addf %91, %90 : vector<8x256xf32>
    %93 = vector.extract_strided_slice %86 {offsets = [1, 0], sizes = [8, 128], strides = [1, 1]} : vector<10x128xbf16> to vector<8x128xbf16>
    %c1_45 = arith.constant 1 : index
    %c0_46 = arith.constant 0 : index
    %c0_47 = arith.constant 0 : index
    %94 = vector.load %arg6[%c1_45, %c0_46, %c0_47] : memref<3x128x256xbf16, #tpu.memory_space<vmem>>, vector<1x128x256xbf16>
    %95 = vector.shape_cast %94 : vector<1x128x256xbf16> to vector<128x256xbf16>
    %cst_48 = arith.constant dense<0.000000e+00> : vector<8x256xf32>
    %96 = tpu.matmul %93, %95, %cst_48 {dimension_numbers = #tpu.dot_dimension_numbers<[1], [0], [0], [1], [0, 0, 1, 1], [], []>} : vector<8x128xbf16>, vector<128x256xbf16>, vector<8x256xf32> -> vector<8x256xf32>
    %97 = arith.addf %92, %96 : vector<8x256xf32>
    %98 = vector.extract_strided_slice %86 {offsets = [2, 0], sizes = [8, 128], strides = [1, 1]} : vector<10x128xbf16> to vector<8x128xbf16>
    %c2_49 = arith.constant 2 : index
    %c0_50 = arith.constant 0 : index
    %c0_51 = arith.constant 0 : index
    %99 = vector.load %arg6[%c2_49, %c0_50, %c0_51] : memref<3x128x256xbf16, #tpu.memory_space<vmem>>, vector<1x128x256xbf16>
    %100 = vector.shape_cast %99 : vector<1x128x256xbf16> to vector<128x256xbf16>
    %cst_52 = arith.constant dense<0.000000e+00> : vector<8x256xf32>
    %101 = tpu.matmul %98, %100, %cst_52 {dimension_numbers = #tpu.dot_dimension_numbers<[1], [0], [0], [1], [0, 0, 1, 1], [], []>} : vector<8x128xbf16>, vector<128x256xbf16>, vector<8x256xf32> -> vector<8x256xf32>
    %102 = arith.addf %97, %101 : vector<8x256xf32>
    %cst_53 = arith.constant 0.000000e+00 : f32
    %103 = vector.broadcast %cst_53 : f32 to vector<8x256xf32>
    %104 = arith.maximumf %102, %103 : vector<8x256xf32>
    %105 = vector.extract_strided_slice %2 {offsets = [3, 0], sizes = [1, 256], strides = [1, 1]} : vector<8x256xf32> to vector<1x256xf32>
    %cst_54 = arith.constant 0.000000e+00 : bf16
    %106 = vector.broadcast %cst_54 : bf16 to vector<1x256xbf16>
    %107 = arith.truncf %104 : vector<8x256xf32> to vector<8x256xbf16>
    %108 = tpu.concatenate %106, %107, %106 in 0 : vector<1x256xbf16>, vector<8x256xbf16>, vector<1x256xbf16> -> vector<10x256xbf16>
    %109 = vector.extract_strided_slice %108 {offsets = [0, 0], sizes = [8, 256], strides = [1, 1]} : vector<10x256xbf16> to vector<8x256xbf16>
    %c0_55 = arith.constant 0 : index
    %c0_56 = arith.constant 0 : index
    %c0_57 = arith.constant 0 : index
    %110 = vector.load %arg7[%c0_55, %c0_56, %c0_57] : memref<3x256x256xbf16, #tpu.memory_space<vmem>>, vector<1x256x256xbf16>
    %111 = vector.shape_cast %110 : vector<1x256x256xbf16> to vector<256x256xbf16>
    %cst_58 = arith.constant dense<0.000000e+00> : vector<8x256xf32>
    %112 = tpu.matmul %109, %111, %cst_58 {dimension_numbers = #tpu.dot_dimension_numbers<[1], [0], [0], [1], [0, 0, 1, 1], [], []>} : vector<8x256xbf16>, vector<256x256xbf16>, vector<8x256xf32> -> vector<8x256xf32>
    %113 = vector.broadcast %105 : vector<1x256xf32> to vector<8x256xf32>
    %114 = arith.addf %113, %112 : vector<8x256xf32>
    %115 = vector.extract_strided_slice %108 {offsets = [1, 0], sizes = [8, 256], strides = [1, 1]} : vector<10x256xbf16> to vector<8x256xbf16>
    %c1_59 = arith.constant 1 : index
    %c0_60 = arith.constant 0 : index
    %c0_61 = arith.constant 0 : index
    %116 = vector.load %arg7[%c1_59, %c0_60, %c0_61] : memref<3x256x256xbf16, #tpu.memory_space<vmem>>, vector<1x256x256xbf16>
    %117 = vector.shape_cast %116 : vector<1x256x256xbf16> to vector<256x256xbf16>
    %cst_62 = arith.constant dense<0.000000e+00> : vector<8x256xf32>
    %118 = tpu.matmul %115, %117, %cst_62 {dimension_numbers = #tpu.dot_dimension_numbers<[1], [0], [0], [1], [0, 0, 1, 1], [], []>} : vector<8x256xbf16>, vector<256x256xbf16>, vector<8x256xf32> -> vector<8x256xf32>
    %119 = arith.addf %114, %118 : vector<8x256xf32>
    %120 = vector.extract_strided_slice %108 {offsets = [2, 0], sizes = [8, 256], strides = [1, 1]} : vector<10x256xbf16> to vector<8x256xbf16>
    %c2_63 = arith.constant 2 : index
    %c0_64 = arith.constant 0 : index
    %c0_65 = arith.constant 0 : index
    %121 = vector.load %arg7[%c2_63, %c0_64, %c0_65] : memref<3x256x256xbf16, #tpu.memory_space<vmem>>, vector<1x256x256xbf16>
    %122 = vector.shape_cast %121 : vector<1x256x256xbf16> to vector<256x256xbf16>
    %cst_66 = arith.constant dense<0.000000e+00> : vector<8x256xf32>
    %123 = tpu.matmul %120, %122, %cst_66 {dimension_numbers = #tpu.dot_dimension_numbers<[1], [0], [0], [1], [0, 0, 1, 1], [], []>} : vector<8x256xbf16>, vector<256x256xbf16>, vector<8x256xf32> -> vector<8x256xf32>
    %124 = arith.addf %119, %123 : vector<8x256xf32>
    %cst_67 = arith.constant 0.000000e+00 : f32
    %125 = vector.broadcast %cst_67 : f32 to vector<8x256xf32>
    %126 = arith.maximumf %124, %125 : vector<8x256xf32>
    %c0_68 = arith.constant 0 : index
    %c0_69 = arith.constant 0 : index
    %c0_70 = arith.constant 0 : index
    %127 = vector.load %arg14[%c0_68, %c0_69, %c0_70] : memref<1x8x256xf32, #tpu.memory_space<vmem>>, vector<1x8x256xf32>
    %128 = vector.shape_cast %127 : vector<1x8x256xf32> to vector<8x256xf32>
    %129 = vector.shape_cast %126 : vector<8x256xf32> to vector<1x8x256xf32>
    tpu.vector_store %arg14[%c0_68, %c0_69, %c0_70], %129 {strides = array<i32>} : memref<1x8x256xf32, #tpu.memory_space<vmem>>, vector<1x8x256xf32>,
    %c2_71 = arith.constant 2 : index
    %c0_72 = arith.constant 0 : index
    %c0_73 = arith.constant 0 : index
    %130 = vector.load %arg3[%c2_71, %c0_72, %c0_73] : memref<6x256x128xbf16, #tpu.memory_space<vmem>>, vector<1x256x128xbf16>
    %131 = vector.shape_cast %130 : vector<1x256x128xbf16> to vector<256x128xbf16>
    %c3 = arith.constant 3 : index
    %c0_74 = arith.constant 0 : index
    %c0_75 = arith.constant 0 : index
    %132 = vector.load %arg3[%c3, %c0_74, %c0_75] : memref<6x256x128xbf16, #tpu.memory_space<vmem>>, vector<1x256x128xbf16>
    %133 = vector.shape_cast %132 : vector<1x256x128xbf16> to vector<256x128xbf16>
    %134 = vector.extract_strided_slice %126 {offsets = [0, 0], sizes = [1, 256], strides = [1, 1]} : vector<8x256xf32> to vector<1x256xf32>
    %135 = vector.extract_strided_slice %126 {offsets = [1, 0], sizes = [1, 256], strides = [1, 1]} : vector<8x256xf32> to vector<1x256xf32>
    %136 = arith.maximumf %134, %135 : vector<1x256xf32>
    %137 = vector.extract_strided_slice %126 {offsets = [2, 0], sizes = [1, 256], strides = [1, 1]} : vector<8x256xf32> to vector<1x256xf32>
    %138 = vector.extract_strided_slice %126 {offsets = [3, 0], sizes = [1, 256], strides = [1, 1]} : vector<8x256xf32> to vector<1x256xf32>
    %139 = arith.maximumf %137, %138 : vector<1x256xf32>
    %140 = vector.extract_strided_slice %126 {offsets = [4, 0], sizes = [1, 256], strides = [1, 1]} : vector<8x256xf32> to vector<1x256xf32>
    %141 = vector.extract_strided_slice %126 {offsets = [5, 0], sizes = [1, 256], strides = [1, 1]} : vector<8x256xf32> to vector<1x256xf32>
    %142 = arith.maximumf %140, %141 : vector<1x256xf32>
    %143 = vector.extract_strided_slice %126 {offsets = [6, 0], sizes = [1, 256], strides = [1, 1]} : vector<8x256xf32> to vector<1x256xf32>
    %144 = vector.extract_strided_slice %126 {offsets = [7, 0], sizes = [1, 256], strides = [1, 1]} : vector<8x256xf32> to vector<1x256xf32>
    %145 = arith.maximumf %143, %144 : vector<1x256xf32>
    %146 = tpu.concatenate %136, %139, %142, %145 in 0 : vector<1x256xf32>, vector<1x256xf32>, vector<1x256xf32>, vector<1x256xf32> -> vector<4x256xf32>
    %147 = arith.truncf %146 : vector<4x256xf32> to vector<4x256xbf16>
    %cst_76 = arith.constant dense<0.000000e+00> : vector<4x128xf32>
    %148 = tpu.matmul %147, %131, %cst_76 {dimension_numbers = #tpu.dot_dimension_numbers<[1], [0], [0], [1], [0, 0, 1, 1], [], []>} : vector<4x256xbf16>, vector<256x128xbf16>, vector<4x128xf32> -> vector<4x128xf32>
    %cst_77 = arith.constant dense<0.000000e+00> : vector<4x128xf32>
    %149 = tpu.matmul %147, %133, %cst_77 {dimension_numbers = #tpu.dot_dimension_numbers<[1], [0], [0], [1], [0, 0, 1, 1], [], []>} : vector<4x256xbf16>, vector<256x128xbf16>, vector<4x128xf32> -> vector<4x128xf32>
    %150 = arith.maximumf %148, %149 : vector<4x128xf32>
    %151 = vector.extract_strided_slice %2 {offsets = [4, 0], sizes = [1, 256], strides = [1, 1]} : vector<8x256xf32> to vector<1x256xf32>
    %cst_78 = arith.constant 0.000000e+00 : bf16
    %152 = vector.broadcast %cst_78 : bf16 to vector<1x128xbf16>
    %153 = arith.truncf %150 : vector<4x128xf32> to vector<4x128xbf16>
    %154 = tpu.concatenate %152, %153, %152 in 0 : vector<1x128xbf16>, vector<4x128xbf16>, vector<1x128xbf16> -> vector<6x128xbf16>
    %155 = vector.extract_strided_slice %154 {offsets = [0, 0], sizes = [4, 128], strides = [1, 1]} : vector<6x128xbf16> to vector<4x128xbf16>
    %c0_79 = arith.constant 0 : index
    %c0_80 = arith.constant 0 : index
    %c0_81 = arith.constant 0 : index
    %156 = vector.load %arg8[%c0_79, %c0_80, %c0_81] : memref<3x128x256xbf16, #tpu.memory_space<vmem>>, vector<1x128x256xbf16>
    %157 = vector.shape_cast %156 : vector<1x128x256xbf16> to vector<128x256xbf16>
    %cst_82 = arith.constant dense<0.000000e+00> : vector<4x256xf32>
    %158 = tpu.matmul %155, %157, %cst_82 {dimension_numbers = #tpu.dot_dimension_numbers<[1], [0], [0], [1], [0, 0, 1, 1], [], []>} : vector<4x128xbf16>, vector<128x256xbf16>, vector<4x256xf32> -> vector<4x256xf32>
    %159 = vector.broadcast %151 : vector<1x256xf32> to vector<4x256xf32>
    %160 = arith.addf %159, %158 : vector<4x256xf32>
    %161 = vector.extract_strided_slice %154 {offsets = [1, 0], sizes = [4, 128], strides = [1, 1]} : vector<6x128xbf16> to vector<4x128xbf16>
    %c1_83 = arith.constant 1 : index
    %c0_84 = arith.constant 0 : index
    %c0_85 = arith.constant 0 : index
    %162 = vector.load %arg8[%c1_83, %c0_84, %c0_85] : memref<3x128x256xbf16, #tpu.memory_space<vmem>>, vector<1x128x256xbf16>
    %163 = vector.shape_cast %162 : vector<1x128x256xbf16> to vector<128x256xbf16>
    %cst_86 = arith.constant dense<0.000000e+00> : vector<4x256xf32>
    %164 = tpu.matmul %161, %163, %cst_86 {dimension_numbers = #tpu.dot_dimension_numbers<[1], [0], [0], [1], [0, 0, 1, 1], [], []>} : vector<4x128xbf16>, vector<128x256xbf16>, vector<4x256xf32> -> vector<4x256xf32>
    %165 = arith.addf %160, %164 : vector<4x256xf32>
    %166 = vector.extract_strided_slice %154 {offsets = [2, 0], sizes = [4, 128], strides = [1, 1]} : vector<6x128xbf16> to vector<4x128xbf16>
    %c2_87 = arith.constant 2 : index
    %c0_88 = arith.constant 0 : index
    %c0_89 = arith.constant 0 : index
    %167 = vector.load %arg8[%c2_87, %c0_88, %c0_89] : memref<3x128x256xbf16, #tpu.memory_space<vmem>>, vector<1x128x256xbf16>
    %168 = vector.shape_cast %167 : vector<1x128x256xbf16> to vector<128x256xbf16>
    %cst_90 = arith.constant dense<0.000000e+00> : vector<4x256xf32>
    %169 = tpu.matmul %166, %168, %cst_90 {dimension_numbers = #tpu.dot_dimension_numbers<[1], [0], [0], [1], [0, 0, 1, 1], [], []>} : vector<4x128xbf16>, vector<128x256xbf16>, vector<4x256xf32> -> vector<4x256xf32>
    %170 = arith.addf %165, %169 : vector<4x256xf32>
    %cst_91 = arith.constant 0.000000e+00 : f32
    %171 = vector.broadcast %cst_91 : f32 to vector<4x256xf32>
    %172 = arith.maximumf %170, %171 : vector<4x256xf32>
    %173 = vector.extract_strided_slice %2 {offsets = [5, 0], sizes = [1, 256], strides = [1, 1]} : vector<8x256xf32> to vector<1x256xf32>
    %cst_92 = arith.constant 0.000000e+00 : bf16
    %174 = vector.broadcast %cst_92 : bf16 to vector<1x256xbf16>
    %175 = arith.truncf %172 : vector<4x256xf32> to vector<4x256xbf16>
    %176 = tpu.concatenate %174, %175, %174 in 0 : vector<1x256xbf16>, vector<4x256xbf16>, vector<1x256xbf16> -> vector<6x256xbf16>
    %177 = vector.extract_strided_slice %176 {offsets = [0, 0], sizes = [4, 256], strides = [1, 1]} : vector<6x256xbf16> to vector<4x256xbf16>
    %c0_93 = arith.constant 0 : index
    %c0_94 = arith.constant 0 : index
    %c0_95 = arith.constant 0 : index
    %178 = vector.load %arg9[%c0_93, %c0_94, %c0_95] : memref<3x256x256xbf16, #tpu.memory_space<vmem>>, vector<1x256x256xbf16>
    %179 = vector.shape_cast %178 : vector<1x256x256xbf16> to vector<256x256xbf16>
    %cst_96 = arith.constant dense<0.000000e+00> : vector<4x256xf32>
    %180 = tpu.matmul %177, %179, %cst_96 {dimension_numbers = #tpu.dot_dimension_numbers<[1], [0], [0], [1], [0, 0, 1, 1], [], []>} : vector<4x256xbf16>, vector<256x256xbf16>, vector<4x256xf32> -> vector<4x256xf32>
    %181 = vector.broadcast %173 : vector<1x256xf32> to vector<4x256xf32>
    %182 = arith.addf %181, %180 : vector<4x256xf32>
    %183 = vector.extract_strided_slice %176 {offsets = [1, 0], sizes = [4, 256], strides = [1, 1]} : vector<6x256xbf16> to vector<4x256xbf16>
    %c1_97 = arith.constant 1 : index
    %c0_98 = arith.constant 0 : index
    %c0_99 = arith.constant 0 : index
    %184 = vector.load %arg9[%c1_97, %c0_98, %c0_99] : memref<3x256x256xbf16, #tpu.memory_space<vmem>>, vector<1x256x256xbf16>
    %185 = vector.shape_cast %184 : vector<1x256x256xbf16> to vector<256x256xbf16>
    %cst_100 = arith.constant dense<0.000000e+00> : vector<4x256xf32>
    %186 = tpu.matmul %183, %185, %cst_100 {dimension_numbers = #tpu.dot_dimension_numbers<[1], [0], [0], [1], [0, 0, 1, 1], [], []>} : vector<4x256xbf16>, vector<256x256xbf16>, vector<4x256xf32> -> vector<4x256xf32>
    %187 = arith.addf %182, %186 : vector<4x256xf32>
    %188 = vector.extract_strided_slice %176 {offsets = [2, 0], sizes = [4, 256], strides = [1, 1]} : vector<6x256xbf16> to vector<4x256xbf16>
    %c2_101 = arith.constant 2 : index
    %c0_102 = arith.constant 0 : index
    %c0_103 = arith.constant 0 : index
    %189 = vector.load %arg9[%c2_101, %c0_102, %c0_103] : memref<3x256x256xbf16, #tpu.memory_space<vmem>>, vector<1x256x256xbf16>
    %190 = vector.shape_cast %189 : vector<1x256x256xbf16> to vector<256x256xbf16>
    %cst_104 = arith.constant dense<0.000000e+00> : vector<4x256xf32>
    %191 = tpu.matmul %188, %190, %cst_104 {dimension_numbers = #tpu.dot_dimension_numbers<[1], [0], [0], [1], [0, 0, 1, 1], [], []>} : vector<4x256xbf16>, vector<256x256xbf16>, vector<4x256xf32> -> vector<4x256xf32>
    %192 = arith.addf %187, %191 : vector<4x256xf32>
    %cst_105 = arith.constant 0.000000e+00 : f32
    %193 = vector.broadcast %cst_105 : f32 to vector<4x256xf32>
    %194 = arith.maximumf %192, %193 : vector<4x256xf32>
    %c0_106 = arith.constant 0 : index
    %c0_107 = arith.constant 0 : index
    %c0_108 = arith.constant 0 : index
    %195 = vector.load %arg13[%c0_106, %c0_107, %c0_108] : memref<1x4x256xf32, #tpu.memory_space<vmem>>, vector<1x4x256xf32>
    %196 = vector.shape_cast %195 : vector<1x4x256xf32> to vector<4x256xf32>
    %197 = vector.shape_cast %194 : vector<4x256xf32> to vector<1x4x256xf32>
    tpu.vector_store %arg13[%c0_106, %c0_107, %c0_108], %197 {strides = array<i32>} : memref<1x4x256xf32, #tpu.memory_space<vmem>>, vector<1x4x256xf32>,
    %c4 = arith.constant 4 : index
    %c0_109 = arith.constant 0 : index
    %c0_110 = arith.constant 0 : index
    %198 = vector.load %arg3[%c4, %c0_109, %c0_110] : memref<6x256x128xbf16, #tpu.memory_space<vmem>>, vector<1x256x128xbf16>
    %199 = vector.shape_cast %198 : vector<1x256x128xbf16> to vector<256x128xbf16>
    %c5 = arith.constant 5 : index
    %c0_111 = arith.constant 0 : index
    %c0_112 = arith.constant 0 : index
    %200 = vector.load %arg3[%c5, %c0_111, %c0_112] : memref<6x256x128xbf16, #tpu.memory_space<vmem>>, vector<1x256x128xbf16>
    %201 = vector.shape_cast %200 : vector<1x256x128xbf16> to vector<256x128xbf16>
    %202 = vector.extract_strided_slice %194 {offsets = [0, 0], sizes = [1, 256], strides = [1, 1]} : vector<4x256xf32> to vector<1x256xf32>
    %203 = vector.extract_strided_slice %194 {offsets = [1, 0], sizes = [1, 256], strides = [1, 1]} : vector<4x256xf32> to vector<1x256xf32>
    %204 = arith.maximumf %202, %203 : vector<1x256xf32>
    %205 = vector.extract_strided_slice %194 {offsets = [2, 0], sizes = [1, 256], strides = [1, 1]} : vector<4x256xf32> to vector<1x256xf32>
    %206 = vector.extract_strided_slice %194 {offsets = [3, 0], sizes = [1, 256], strides = [1, 1]} : vector<4x256xf32> to vector<1x256xf32>
    %207 = arith.maximumf %205, %206 : vector<1x256xf32>
    %208 = tpu.concatenate %204, %207 in 0 : vector<1x256xf32>, vector<1x256xf32> -> vector<2x256xf32>
    %209 = arith.truncf %208 : vector<2x256xf32> to vector<2x256xbf16>
    %cst_113 = arith.constant dense<0.000000e+00> : vector<2x128xf32>
    %210 = tpu.matmul %209, %199, %cst_113 {dimension_numbers = #tpu.dot_dimension_numbers<[1], [0], [0], [1], [0, 0, 1, 1], [], []>} : vector<2x256xbf16>, vector<256x128xbf16>, vector<2x128xf32> -> vector<2x128xf32>
    %cst_114 = arith.constant dense<0.000000e+00> : vector<2x128xf32>
    %211 = tpu.matmul %209, %201, %cst_114 {dimension_numbers = #tpu.dot_dimension_numbers<[1], [0], [0], [1], [0, 0, 1, 1], [], []>} : vector<2x256xbf16>, vector<256x128xbf16>, vector<2x128xf32> -> vector<2x128xf32>
    %212 = arith.maximumf %210, %211 : vector<2x128xf32>
    %213 = vector.extract_strided_slice %2 {offsets = [6, 0], sizes = [1, 256], strides = [1, 1]} : vector<8x256xf32> to vector<1x256xf32>
    %cst_115 = arith.constant 0.000000e+00 : bf16
    %214 = vector.broadcast %cst_115 : bf16 to vector<1x128xbf16>
    %215 = arith.truncf %212 : vector<2x128xf32> to vector<2x128xbf16>
    %216 = tpu.concatenate %214, %215, %214 in 0 : vector<1x128xbf16>, vector<2x128xbf16>, vector<1x128xbf16> -> vector<4x128xbf16>
    %217 = vector.extract_strided_slice %216 {offsets = [0, 0], sizes = [2, 128], strides = [1, 1]} : vector<4x128xbf16> to vector<2x128xbf16>
    %c0_116 = arith.constant 0 : index
    %c0_117 = arith.constant 0 : index
    %c0_118 = arith.constant 0 : index
    %218 = vector.load %arg10[%c0_116, %c0_117, %c0_118] : memref<3x128x256xbf16, #tpu.memory_space<vmem>>, vector<1x128x256xbf16>
    %219 = vector.shape_cast %218 : vector<1x128x256xbf16> to vector<128x256xbf16>
    %cst_119 = arith.constant dense<0.000000e+00> : vector<2x256xf32>
    %220 = tpu.matmul %217, %219, %cst_119 {dimension_numbers = #tpu.dot_dimension_numbers<[1], [0], [0], [1], [0, 0, 1, 1], [], []>} : vector<2x128xbf16>, vector<128x256xbf16>, vector<2x256xf32> -> vector<2x256xf32>
    %221 = vector.broadcast %213 : vector<1x256xf32> to vector<2x256xf32>
    %222 = arith.addf %221, %220 : vector<2x256xf32>
    %223 = vector.extract_strided_slice %216 {offsets = [1, 0], sizes = [2, 128], strides = [1, 1]} : vector<4x128xbf16> to vector<2x128xbf16>
    %c1_120 = arith.constant 1 : index
    %c0_121 = arith.constant 0 : index
    %c0_122 = arith.constant 0 : index
    %224 = vector.load %arg10[%c1_120, %c0_121, %c0_122] : memref<3x128x256xbf16, #tpu.memory_space<vmem>>, vector<1x128x256xbf16>
    %225 = vector.shape_cast %224 : vector<1x128x256xbf16> to vector<128x256xbf16>
    %cst_123 = arith.constant dense<0.000000e+00> : vector<2x256xf32>
    %226 = tpu.matmul %223, %225, %cst_123 {dimension_numbers = #tpu.dot_dimension_numbers<[1], [0], [0], [1], [0, 0, 1, 1], [], []>} : vector<2x128xbf16>, vector<128x256xbf16>, vector<2x256xf32> -> vector<2x256xf32>
    %227 = arith.addf %222, %226 : vector<2x256xf32>
    %228 = vector.extract_strided_slice %216 {offsets = [2, 0], sizes = [2, 128], strides = [1, 1]} : vector<4x128xbf16> to vector<2x128xbf16>
    %c2_124 = arith.constant 2 : index
    %c0_125 = arith.constant 0 : index
    %c0_126 = arith.constant 0 : index
    %229 = vector.load %arg10[%c2_124, %c0_125, %c0_126] : memref<3x128x256xbf16, #tpu.memory_space<vmem>>, vector<1x128x256xbf16>
    %230 = vector.shape_cast %229 : vector<1x128x256xbf16> to vector<128x256xbf16>
    %cst_127 = arith.constant dense<0.000000e+00> : vector<2x256xf32>
    %231 = tpu.matmul %228, %230, %cst_127 {dimension_numbers = #tpu.dot_dimension_numbers<[1], [0], [0], [1], [0, 0, 1, 1], [], []>} : vector<2x128xbf16>, vector<128x256xbf16>, vector<2x256xf32> -> vector<2x256xf32>
    %232 = arith.addf %227, %231 : vector<2x256xf32>
    %cst_128 = arith.constant 0.000000e+00 : f32
    %233 = vector.broadcast %cst_128 : f32 to vector<2x256xf32>
    %234 = arith.maximumf %232, %233 : vector<2x256xf32>
    %235 = vector.extract_strided_slice %2 {offsets = [7, 0], sizes = [1, 256], strides = [1, 1]} : vector<8x256xf32> to vector<1x256xf32>
    %cst_129 = arith.constant 0.000000e+00 : bf16
    %236 = vector.broadcast %cst_129 : bf16 to vector<1x256xbf16>
    %237 = arith.truncf %234 : vector<2x256xf32> to vector<2x256xbf16>
    %238 = tpu.concatenate %236, %237, %236 in 0 : vector<1x256xbf16>, vector<2x256xbf16>, vector<1x256xbf16> -> vector<4x256xbf16>
    %239 = vector.extract_strided_slice %238 {offsets = [0, 0], sizes = [2, 256], strides = [1, 1]} : vector<4x256xbf16> to vector<2x256xbf16>
    %c0_130 = arith.constant 0 : index
    %c0_131 = arith.constant 0 : index
    %c0_132 = arith.constant 0 : index
    %240 = vector.load %arg11[%c0_130, %c0_131, %c0_132] : memref<3x256x256xbf16, #tpu.memory_space<vmem>>, vector<1x256x256xbf16>
    %241 = vector.shape_cast %240 : vector<1x256x256xbf16> to vector<256x256xbf16>
    %cst_133 = arith.constant dense<0.000000e+00> : vector<2x256xf32>
    %242 = tpu.matmul %239, %241, %cst_133 {dimension_numbers = #tpu.dot_dimension_numbers<[1], [0], [0], [1], [0, 0, 1, 1], [], []>} : vector<2x256xbf16>, vector<256x256xbf16>, vector<2x256xf32> -> vector<2x256xf32>
    %243 = vector.broadcast %235 : vector<1x256xf32> to vector<2x256xf32>
    %244 = arith.addf %243, %242 : vector<2x256xf32>
    %245 = vector.extract_strided_slice %238 {offsets = [1, 0], sizes = [2, 256], strides = [1, 1]} : vector<4x256xbf16> to vector<2x256xbf16>
    %c1_134 = arith.constant 1 : index
    %c0_135 = arith.constant 0 : index
    %c0_136 = arith.constant 0 : index
    %246 = vector.load %arg11[%c1_134, %c0_135, %c0_136] : memref<3x256x256xbf16, #tpu.memory_space<vmem>>, vector<1x256x256xbf16>
    %247 = vector.shape_cast %246 : vector<1x256x256xbf16> to vector<256x256xbf16>
    %cst_137 = arith.constant dense<0.000000e+00> : vector<2x256xf32>
    %248 = tpu.matmul %245, %247, %cst_137 {dimension_numbers = #tpu.dot_dimension_numbers<[1], [0], [0], [1], [0, 0, 1, 1], [], []>} : vector<2x256xbf16>, vector<256x256xbf16>, vector<2x256xf32> -> vector<2x256xf32>
    %249 = arith.addf %244, %248 : vector<2x256xf32>
    %250 = vector.extract_strided_slice %238 {offsets = [2, 0], sizes = [2, 256], strides = [1, 1]} : vector<4x256xbf16> to vector<2x256xbf16>
    %c2_138 = arith.constant 2 : index
    %c0_139 = arith.constant 0 : index
    %c0_140 = arith.constant 0 : index
    %251 = vector.load %arg11[%c2_138, %c0_139, %c0_140] : memref<3x256x256xbf16, #tpu.memory_space<vmem>>, vector<1x256x256xbf16>
    %252 = vector.shape_cast %251 : vector<1x256x256xbf16> to vector<256x256xbf16>
    %cst_141 = arith.constant dense<0.000000e+00> : vector<2x256xf32>
    %253 = tpu.matmul %250, %252, %cst_141 {dimension_numbers = #tpu.dot_dimension_numbers<[1], [0], [0], [1], [0, 0, 1, 1], [], []>} : vector<2x256xbf16>, vector<256x256xbf16>, vector<2x256xf32> -> vector<2x256xf32>
    %254 = arith.addf %249, %253 : vector<2x256xf32>
    %cst_142 = arith.constant 0.000000e+00 : f32
    %255 = vector.broadcast %cst_142 : f32 to vector<2x256xf32>
    %256 = arith.maximumf %254, %255 : vector<2x256xf32>
    %c0_143 = arith.constant 0 : index
    %c0_144 = arith.constant 0 : index
    %c0_145 = arith.constant 0 : index
    %257 = vector.load %arg12[%c0_143, %c0_144, %c0_145] : memref<1x2x256xf32, #tpu.memory_space<vmem>>, vector<1x2x256xf32>
    %258 = vector.shape_cast %257 : vector<1x2x256xf32> to vector<2x256xf32>
    %259 = vector.shape_cast %256 : vector<2x256xf32> to vector<1x2x256xf32>
    tpu.vector_store %arg12[%c0_143, %c0_144, %c0_145], %259 {strides = array<i32>} : memref<1x2x256xf32, #tpu.memory_space<vmem>>, vector<1x2x256xf32>,
    return
  }
  func.func @transform_0(%arg0: i32) -> (i32, i32, i32) {
    %c0_i32 = arith.constant 0 : i32
    %c0_i32_0 = arith.constant 0 : i32
    %c0_i32_1 = arith.constant 0 : i32
    return %arg0, %c0_i32, %c0_i32_0 : i32, i32, i32
  }
  func.func @transform_1(%arg0: i32) -> (i32, i32) {
    %c0_i32 = arith.constant 0 : i32
    %c0_i32_0 = arith.constant 0 : i32
    %c0_i32_1 = arith.constant 0 : i32
    return %c0_i32, %c0_i32_0 : i32, i32
  }
  func.func @transform_2(%arg0: i32) -> (i32, i32, i32) {
    %c0_i32 = arith.constant 0 : i32
    %c0_i32_0 = arith.constant 0 : i32
    %c0_i32_1 = arith.constant 0 : i32
    %c0_i32_2 = arith.constant 0 : i32
    return %c0_i32, %c0_i32_0, %c0_i32_1 : i32, i32, i32
  }
  func.func @transform_3(%arg0: i32) -> (i32, i32, i32) {
    %c0_i32 = arith.constant 0 : i32
    %c0_i32_0 = arith.constant 0 : i32
    %c0_i32_1 = arith.constant 0 : i32
    %c0_i32_2 = arith.constant 0 : i32
    return %c0_i32, %c0_i32_0, %c0_i32_1 : i32, i32, i32
  }
  func.func @transform_4(%arg0: i32) -> (i32, i32, i32) {
    %c0_i32 = arith.constant 0 : i32
    %c0_i32_0 = arith.constant 0 : i32
    %c0_i32_1 = arith.constant 0 : i32
    %c0_i32_2 = arith.constant 0 : i32
    return %c0_i32, %c0_i32_0, %c0_i32_1 : i32, i32, i32
  }
  func.func @transform_5(%arg0: i32) -> (i32, i32, i32) {
    %c0_i32 = arith.constant 0 : i32
    %c0_i32_0 = arith.constant 0 : i32
    %c0_i32_1 = arith.constant 0 : i32
    %c0_i32_2 = arith.constant 0 : i32
    return %c0_i32, %c0_i32_0, %c0_i32_1 : i32, i32, i32
  }
  func.func @transform_6(%arg0: i32) -> (i32, i32, i32) {
    %c0_i32 = arith.constant 0 : i32
    %c0_i32_0 = arith.constant 0 : i32
    %c0_i32_1 = arith.constant 0 : i32
    %c0_i32_2 = arith.constant 0 : i32
    return %c0_i32, %c0_i32_0, %c0_i32_1 : i32, i32, i32
  }
  func.func @transform_7(%arg0: i32) -> (i32, i32, i32) {
    %c0_i32 = arith.constant 0 : i32
    %c0_i32_0 = arith.constant 0 : i32
    %c0_i32_1 = arith.constant 0 : i32
    %c0_i32_2 = arith.constant 0 : i32
    return %c0_i32, %c0_i32_0, %c0_i32_1 : i32, i32, i32
  }
  func.func @transform_8(%arg0: i32) -> (i32, i32, i32) {
    %c0_i32 = arith.constant 0 : i32
    %c0_i32_0 = arith.constant 0 : i32
    %c0_i32_1 = arith.constant 0 : i32
    %c0_i32_2 = arith.constant 0 : i32
    return %c0_i32, %c0_i32_0, %c0_i32_1 : i32, i32, i32
  }
  func.func @transform_9(%arg0: i32) -> (i32, i32, i32) {
    %c0_i32 = arith.constant 0 : i32
    %c0_i32_0 = arith.constant 0 : i32
    %c0_i32_1 = arith.constant 0 : i32
    %c0_i32_2 = arith.constant 0 : i32
    return %c0_i32, %c0_i32_0, %c0_i32_1 : i32, i32, i32
  }
  func.func @transform_10(%arg0: i32) -> (i32, i32, i32) {
    %c0_i32 = arith.constant 0 : i32
    %c0_i32_0 = arith.constant 0 : i32
    %c0_i32_1 = arith.constant 0 : i32
    %c0_i32_2 = arith.constant 0 : i32
    return %c0_i32, %c0_i32_0, %c0_i32_1 : i32, i32, i32
  }
  func.func @transform_11(%arg0: i32) -> (i32, i32, i32) {
    %c0_i32 = arith.constant 0 : i32
    %c0_i32_0 = arith.constant 0 : i32
    %c0_i32_1 = arith.constant 0 : i32
    return %arg0, %c0_i32, %c0_i32_0 : i32, i32, i32
  }
  func.func @transform_12(%arg0: i32) -> (i32, i32, i32) {
    %c0_i32 = arith.constant 0 : i32
    %c0_i32_0 = arith.constant 0 : i32
    %c0_i32_1 = arith.constant 0 : i32
    return %arg0, %c0_i32, %c0_i32_0 : i32, i32, i32
  }
  func.func @transform_13(%arg0: i32) -> (i32, i32, i32) {
    %c0_i32 = arith.constant 0 : i32
    %c0_i32_0 = arith.constant 0 : i32
    %c0_i32_1 = arith.constant 0 : i32
    return %arg0, %c0_i32, %c0_i32_0 : i32, i32, i32
  }
  func.func @transform_14(%arg0: i32) -> (i32, i32, i32) {
    %c0_i32 = arith.constant 0 : i32
    %c0_i32_0 = arith.constant 0 : i32
    %c0_i32_1 = arith.constant 0 : i32
    return %arg0, %c0_i32, %c0_i32_0 : i32, i32, i32
  }
}

</mosaic_0001>

<bundles_post_ra>
// kernel: encoder_forward_packed.1
= control target key start
LH: loop header
LB: loop body
LE: loop exit
PB: predicated region body
PF: predicated region fallthrough
CT: control target
= control target key end

     0   :  { %s9588_s0 = inlined_call_operand.vmem [shape: f32[2,16,16], index: 0, kind: input, shape index: {}]   ;;  %s9589_s1 = inlined_call_operand.hbm [shape: f32[8,256], index: 1, kind: input, shape index: {}]   ;;  %s9590_s2 = inlined_call_operand.hbm [shape: bf16[6,256,128], index: 2, kind: input, shape index: {}]   ;;  %s9591_s3 = inlined_call_operand.hbm [shape: bf16[3,16,256], index: 3, kind: input, shape index: {}]   ;;  %s9592_s4 = inlined_call_operand.hbm [shape: bf16[3,256,256], index: 4, kind: input, shape index: {}]   ;;  %s9593_s5 = inlined_call_operand.hbm [shape: bf16[3,128,256], index: 5, kind: input, shape index: {}]   ;;  %s9594_s6 = inlined_call_operand.hbm [shape: bf16[3,256,256], index: 6, kind: input, shape index: {}]   ;;  %s9595_s7 = inlined_call_operand.hbm [shape: bf16[3,128,256], index: 7, kind: input, shape index: {}]   ;;  %s9596_s8 = inlined_call_operand.hbm [shape: bf16[3,256,256], index: 8, kind: input, shape index: {}]   ;;  %s9597_s9 = inlined_call_operand.hbm [shape: bf16[3,128,256], index: 9, kind: input, shape index: {}]   ;;  %s9598_s10 = inlined_call_operand.hbm [shape: bf16[3,256,256], index: 10, kind: input, shape index: {}]   ;;  %s9599_s11 = inlined_call_operand.vmem [shape: f32[2,2,256], index: 11, kind: output, shape index: {0}]   ;;  %s9600_s12 = inlined_call_operand.vmem [shape: f32[2,4,256], index: 12, kind: output, shape index: {1}]   ;;  %s9601_s13 = inlined_call_operand.vmem [shape: f32[2,8,256], index: 13, kind: output, shape index: {2}]   ;;  %s9602_s14 = inlined_call_operand.vmem [shape: f32[2,16,256], index: 14, kind: output, shape index: {3}]  }
   0x1   :  { %9606 = sst [smem:[#allocation25_spill]] %s9599_s11 }
   0x2   :  { %9607 = sst [smem:[#allocation26_spill]] %s9600_s12 }
   0x3   :  { %20 = vsyncpa [#allocation3], 0 }
   0x4   :  { %21 = vsyncpa [#allocation5], 0 }
   0x5   :  { %22 = vsyncpa [#allocation8], 0 }
   0x6   :  { %23 = vsyncpa [#allocation11], 0 }
   0x7   :  { %24 = vsyncpa [#allocation14], 0 }
   0x8   :  { %25 = vsyncpa [#allocation17], 0  ;;  %s9041_s29 = smov 0  }
   0x9 LB: > { %9608 = sst [smem:[#allocation24_spill]] %s8949_s29  ;;  %s8951_s30 = smov [#allocation4]   ;;  %s8949_s29 = sphi %s9041_s29, %s31_s29  }
   0xa   : > { %s399_s15 = sshll.u32 %s8951_s30, 4  ;;  %s9047_s16 = sadd.s32 4294967295, %s8949_s29   ;;  %s9052_s15 = int_to_ptr.vmem [resolvable:$true] %s399_s15 }
   0xb   : > { %p6736_p0 = scmp.ge.s32.totalorder %s8949_s29, 1  ;;  %p376_p1 = scmp.lt.s32.totalorder %s8949_s29, 3 }
   0xc   : > { %p9604_p2 = scmp.eq.s32.totalorder %s9047_s16, 0  ;;  %s8952_s19 = smov [#allocation7]  }
   0xd   : > { %p9054_p3 = pnand %p6736_p0, %p376_p1  ;;  %s425_s20 = sshll.u32 %s8952_s19, 4  ;;  %s9066_s20 = int_to_ptr.vmem [resolvable:$true] %s425_s20 }
   0xe   : > { %s8953_s21 = smov [#allocation10]   ;;  %s8639_s25 = scalar_lea.hbm %s9590_s2, 12288 }
   0xf   : > { %s9609_s17 = scalar_select %p9054_p3, 1, 0 }
  0x10   : > { %p7664_p4 = pneg %p9054_p3  ;;  %s451_s22 = sshll.u32 %s8953_s21, 4  ;;  %s9068_s22 = int_to_ptr.vmem [resolvable:$true] %s451_s22 }
  0x11   : > { %p8640_p6 = scmp.ne.s32.totalorder %s9590_s2, %s8639_s25  ;;  %p8646_p10 = scmp.lt.u32.totalorder %s8639_s25, %s9590_s2 }
  0x12   : > { %p9062_p5 = pnand %p9604_p2, %p7664_p4 }
  0x14   : > { %p9078_p7 = pneg %p9062_p5 }
  0x16   : > { %p8642_p8 = pnand %p9078_p7, %p8640_p6 }
  0x18   : > { %p8643_p9 = pneg %p8642_p8 }
  0x1a   : > { %p8648_p11 = pnand %p8646_p10, %p8643_p9 }
  0x1c   : > { %8651 = shalt.err (!%p8648_p11)
}
  0x1d   : > { %s8652_s21 = scalar_lea.vmem %s9052_s15, 12288  ;;  %p8660_p1 = scmp.lt.s32.totalorder %s9052_s15, %s9052_s15 }
  0x1e   : > { %p8653_p12 = scmp.ne.s32.totalorder %s9052_s15, %s8652_s21  ;;  %p8661_p4 = scmp.lt.s32.totalorder %s8652_s21, %s8652_s21 }
  0x20   : > { %p8655_p13 = pnand %p8653_p12, %p9078_p7  ;;  %p8662_p6 = por %p8661_p4, %p8660_p1 }
  0x22   : > { %p8656_p0 = pneg %p8655_p13 }
  0x24   : > { %p8663_p8 = pnand %p8662_p6, %p8656_p0 }
  0x26   : > { %8666 = shalt.err (!%p8663_p8)
}
  0x27   : > { %s8954_s23 = smov 64   ;;  %s8955_s24 = smov 4  }
  0x28   : > { %7670 = dma.hbm_to_vmem [thread:$0]  (!%p9062_p5), %s9590_s2, 12288, %s9052_s15, [#allocation5], %s8954_s23, %s8954_s23, %s8955_s24  }
  0x29   : > { %s8667_s19 = scalar_lea.hbm %s9592_s4, 12288 }
  0x2a   : > { %p8668_p9 = scmp.ne.s32.totalorder %s9592_s4, %s8667_s19  ;;  %p8674_p12 = scmp.lt.u32.totalorder %s8667_s19, %s9592_s4 }
  0x2c   : > { %p8670_p10 = pnand %p8668_p9, %p9078_p7 }
  0x2e   : > { %p8671_p11 = pneg %p8670_p10 }
  0x30   : > { %p8676_p13 = pnand %p8674_p12, %p8671_p11 }
  0x32   : > { %8679 = shalt.err (!%p8676_p13)
}
  0x33   : > { %s8680_s15 = scalar_lea.vmem %s9066_s20, 12288  ;;  %p8688_p6 = scmp.lt.s32.totalorder %s9066_s20, %s9066_s20 }
  0x34   : > { %p8681_p0 = scmp.ne.s32.totalorder %s9066_s20, %s8680_s15  ;;  %p8689_p8 = scmp.lt.s32.totalorder %s8680_s15, %s8680_s15 }
  0x36   : > { %p8683_p1 = pnand %p8681_p0, %p9078_p7  ;;  %p8690_p9 = por %p8689_p8, %p8688_p6 }
  0x38   : > { %p8684_p4 = pneg %p8683_p1 }
  0x3a   : > { %p8691_p10 = pnand %p8690_p9, %p8684_p4 }
  0x3c   : > { %8694 = shalt.err (!%p8691_p10)
}
  0x3d   : > { %s8956_s11 = smov 128   ;;  %s8957_s12 = smov 8  }
  0x3e   : > { %7676 = dma.hbm_to_vmem [thread:$0]  (!%p9062_p5), %s9592_s4, 12288, %s9066_s20, [#allocation8], %s8956_s11, %s8956_s11, %s8957_s12  }
  0x3f   : > { %s8695_s26 = scalar_lea.hbm %s9594_s6, 12288 }
  0x40   : > { %p8696_p11 = scmp.ne.s32.totalorder %s9594_s6, %s8695_s26  ;;  %p8702_p0 = scmp.lt.u32.totalorder %s8695_s26, %s9594_s6 }
  0x42   : > { %p8698_p12 = pnand %p8696_p11, %p9078_p7 }
  0x44   : > { %p8699_p13 = pneg %p8698_p12 }
  0x46   : > { %p8704_p1 = pnand %p8702_p0, %p8699_p13 }
  0x48   : > { %8707 = shalt.err (!%p8704_p1)
}
  0x49   : > { %s8708_s20 = scalar_lea.vmem %s9068_s22, 12288  ;;  %p8716_p9 = scmp.lt.s32.totalorder %s9068_s22, %s9068_s22 }
  0x4a   : > { %p8709_p4 = scmp.ne.s32.totalorder %s9068_s22, %s8708_s20  ;;  %p8717_p10 = scmp.lt.s32.totalorder %s8708_s20, %s8708_s20 }
  0x4c   : > { %p8711_p6 = pnand %p8709_p4, %p9078_p7  ;;  %p8718_p11 = por %p8717_p10, %p8716_p9 }
  0x4e   : > { %p8712_p8 = pneg %p8711_p6 }
  0x50   : > { %p8719_p12 = pnand %p8718_p11, %p8712_p8 }
  0x52   : > { %8722 = shalt.err (!%p8719_p12)
}
  0x53   : > { %7682 = dma.hbm_to_vmem [thread:$0]  (!%p9062_p5), %s9594_s6, 12288, %s9068_s22, [#allocation11], %s8956_s11, %s8956_s11, %s8957_s12  }
  0x54   : > { %s8958_s23 = smov [#allocation13]   ;;  %s8959_s25 = smov [#allocation2]  }
  0x55   : > { %s477_s24 = sshll.u32 %s8958_s23, 4  ;;  %s389_s26 = sshll.u32 %s8959_s25, 4  ;;  %s478_s24 = int_to_ptr.vmem [resolvable:$true] %s477_s24  ;;  %s9151_s26 = int_to_ptr.vmem [resolvable:$true] %s389_s26 }
  0x56   : > { %s8723_s19 = scalar_lea.hbm %s9596_s8, 12288 }
  0x57   : > { %p8724_p13 = scmp.ne.s32.totalorder %s9596_s8, %s8723_s19  ;;  %p8730_p4 = scmp.lt.u32.totalorder %s8723_s19, %s9596_s8 }
  0x59   : > { %p8726_p0 = pnand %p8724_p13, %p9078_p7 }
  0x5b   : > { %p8727_p1 = pneg %p8726_p0 }
  0x5d   : > { %p8732_p6 = pnand %p8730_p4, %p8727_p1 }
  0x5f   : > { %8735 = shalt.err (!%p8732_p6)
}
  0x60   : > { %s8736_s29 = scalar_lea.vmem %s478_s24, 12288  ;;  %p8744_p11 = scmp.lt.s32.totalorder %s478_s24, %s478_s24 }
  0x61   : > { %p8737_p8 = scmp.ne.s32.totalorder %s478_s24, %s8736_s29  ;;  %p8745_p12 = scmp.lt.s32.totalorder %s8736_s29, %s8736_s29 }
  0x63   : > { %p8739_p9 = pnand %p8737_p8, %p9078_p7  ;;  %p8746_p2 = por %p8745_p12, %p8744_p11 }
  0x65   : > { %p8740_p10 = pneg %p8739_p9 }
  0x67   : > { %p8747_p3 = pnand %p8746_p2, %p8740_p10 }
  0x69   : > { %8750 = shalt.err (!%p8747_p3)
}
  0x6a   : > { %7688 = dma.hbm_to_vmem [thread:$0]  (!%p9062_p5), %s9596_s8, 12288, %s478_s24, [#allocation14], %s8956_s11, %s8956_s11, %s8957_s12  }
  0x6b   : > { %s8751_s19 = scalar_lea.hbm %s9589_s1, 256 }
  0x6c   : > { %p8752_p13 = scmp.ne.s32.totalorder %s9589_s1, %s8751_s19  ;;  %p8758_p0 = scmp.lt.u32.totalorder %s8751_s19, %s9589_s1 }
  0x6e   : > { %p8754_p2 = pnand %p8752_p13, %p9078_p7 }
  0x70   : > { %p8755_p3 = pneg %p8754_p2 }
  0x72   : > { %p8760_p1 = pnand %p8758_p0, %p8755_p3 }
  0x74   : > { %8763 = shalt.err (!%p8760_p1)
}
  0x75   : > { %s8764_s24 = scalar_lea.vmem %s9151_s26, 256  ;;  %p8772_p9 = scmp.lt.s32.totalorder %s9151_s26, %s9151_s26 }
  0x76   : > { %p8765_p4 = scmp.ne.s32.totalorder %s9151_s26, %s8764_s24  ;;  %p8773_p10 = scmp.lt.s32.totalorder %s8764_s24, %s8764_s24 }
  0x78   : > { %p8767_p6 = pnand %p8765_p4, %p9078_p7  ;;  %p8774_p11 = por %p8773_p10, %p8772_p9 }
  0x7a   : > { %p8768_p8 = pneg %p8767_p6 }
  0x7c   : > { %p8775_p12 = pnand %p8774_p11, %p8768_p8 }
  0x7e   : > { %8778 = shalt.err (!%p8775_p12)
}
  0x7f   : > { %7667 = dma.hbm_to_vmem [thread:$0]  (!%p9062_p5), %s9589_s1, 256, %s9151_s26, [#allocation3]  }
  0x80   : > { %s8960_s25 = smov [#allocation6]   ;;  %s8961_s30 = smov [#allocation9]  }
  0x81   : > { %s412_s27 = sshll.u32 %s8960_s25, 4  ;;  %s438_s19 = sshll.u32 %s8961_s30, 4  ;;  %s413_s27 = int_to_ptr.vmem [resolvable:$true] %s412_s27  ;;  %s9197_s19 = int_to_ptr.vmem [resolvable:$true] %s438_s19 }
  0x82   : > { %s8779_s15 = scalar_lea.hbm %s9591_s3, 768 }
  0x83   : > { %p8780_p13 = scmp.ne.s32.totalorder %s9591_s3, %s8779_s15  ;;  %p8786_p0 = scmp.lt.u32.totalorder %s8779_s15, %s9591_s3 }
  0x85   : > { %p8782_p2 = pnand %p8780_p13, %p9078_p7 }
  0x87   : > { %p8783_p3 = pneg %p8782_p2 }
  0x89   : > { %p8788_p1 = pnand %p8786_p0, %p8783_p3 }
  0x8b   : > { %8791 = shalt.err (!%p8788_p1)
}
  0x8c   : > { %s8792_s23 = scalar_lea.vmem %s413_s27, 768  ;;  %p8800_p9 = scmp.lt.s32.totalorder %s413_s27, %s413_s27 }
  0x8d   : > { %p8793_p4 = scmp.ne.s32.totalorder %s413_s27, %s8792_s23  ;;  %p8801_p10 = scmp.lt.s32.totalorder %s8792_s23, %s8792_s23 }
  0x8f   : > { %p8795_p6 = pnand %p8793_p4, %p9078_p7  ;;  %p8802_p11 = por %p8801_p10, %p8800_p9 }
  0x91   : > { %p8796_p8 = pneg %p8795_p6 }
  0x93   : > { %p8803_p12 = pnand %p8802_p11, %p8796_p8 }
  0x95   : > { %8806 = shalt.err (!%p8803_p12)
}
  0x96   : > { %7673 = dma.hbm_to_vmem [thread:$0]  (!%p9062_p5), %s9591_s3, 768, %s413_s27, [#allocation5], %s8956_s11, %s8956_s11, %s8957_s12  }
  0x97   : > { %s8807_s15 = scalar_lea.hbm %s9593_s5, 6144 }
  0x98   : > { %p8808_p13 = scmp.ne.s32.totalorder %s9593_s5, %s8807_s15  ;;  %p8814_p0 = scmp.lt.u32.totalorder %s8807_s15, %s9593_s5 }
  0x9a   : > { %p8810_p2 = pnand %p8808_p13, %p9078_p7 }
  0x9c   : > { %p8811_p3 = pneg %p8810_p2 }
  0x9e   : > { %p8816_p1 = pnand %p8814_p0, %p8811_p3 }
  0xa0   : > { %8819 = shalt.err (!%p8816_p1)
}
  0xa1   : > { %s8820_s27 = scalar_lea.vmem %s9197_s19, 6144  ;;  %p8828_p9 = scmp.lt.s32.totalorder %s9197_s19, %s9197_s19 }
  0xa2   : > { %p8821_p4 = scmp.ne.s32.totalorder %s9197_s19, %s8820_s27  ;;  %p8829_p10 = scmp.lt.s32.totalorder %s8820_s27, %s8820_s27 }
  0xa4   : > { %p8823_p6 = pnand %p8821_p4, %p9078_p7  ;;  %p8830_p11 = por %p8829_p10, %p8828_p9 }
  0xa6   : > { %p8824_p8 = pneg %p8823_p6 }
  0xa8   : > { %p8831_p12 = pnand %p8830_p11, %p8824_p8 }
  0xaa   : > { %8834 = shalt.err (!%p8831_p12)
}
  0xab   : > { %7679 = dma.hbm_to_vmem [thread:$0]  (!%p9062_p5), %s9593_s5, 6144, %s9197_s19, [#allocation8], %s8956_s11, %s8956_s11, %s8957_s12  }
  0xac   : > { %s8962_s30 = smov [#allocation12]   ;;  %s8963_s20 = smov [#allocation15]  }
  0xad   : > { %s464_s21 = sshll.u32 %s8962_s30, 4  ;;  %s490_s15 = sshll.u32 %s8963_s20, 4  ;;  %s465_s21 = int_to_ptr.vmem [resolvable:$true] %s464_s21  ;;  %s9246_s15 = int_to_ptr.vmem [resolvable:$true] %s490_s15 }
  0xae   : > { %s8835_s29 = scalar_lea.hbm %s9595_s7, 6144 }
  0xaf   : > { %p8836_p13 = scmp.ne.s32.totalorder %s9595_s7, %s8835_s29  ;;  %p8842_p0 = scmp.lt.u32.totalorder %s8835_s29, %s9595_s7 }
  0xb1   : > { %p8838_p2 = pnand %p8836_p13, %p9078_p7 }
  0xb3   : > { %p8839_p3 = pneg %p8838_p2 }
  0xb5   : > { %p8844_p1 = pnand %p8842_p0, %p8839_p3 }
  0xb7   : > { %8847 = shalt.err (!%p8844_p1)
}
  0xb8   : > { %s8848_s25 = scalar_lea.vmem %s465_s21, 6144  ;;  %p8856_p9 = scmp.lt.s32.totalorder %s465_s21, %s465_s21 }
  0xb9   : > { %p8849_p4 = scmp.ne.s32.totalorder %s465_s21, %s8848_s25  ;;  %p8857_p10 = scmp.lt.s32.totalorder %s8848_s25, %s8848_s25 }
  0xbb   : > { %p8851_p6 = pnand %p8849_p4, %p9078_p7  ;;  %p8858_p11 = por %p8857_p10, %p8856_p9 }
  0xbd   : > { %p8852_p8 = pneg %p8851_p6 }
  0xbf   : > { %p8859_p12 = pnand %p8858_p11, %p8852_p8 }
  0xc1   : > { %8862 = shalt.err (!%p8859_p12)
}
  0xc2   : > { %7685 = dma.hbm_to_vmem [thread:$0]  (!%p9062_p5), %s9595_s7, 6144, %s465_s21, [#allocation11], %s8956_s11, %s8956_s11, %s8957_s12  }
  0xc3   : > { %s8863_s29 = scalar_lea.hbm %s9597_s9, 6144 }
  0xc4   : > { %p8864_p13 = scmp.ne.s32.totalorder %s9597_s9, %s8863_s29  ;;  %p8870_p0 = scmp.lt.u32.totalorder %s8863_s29, %s9597_s9 }
  0xc6   : > { %p8866_p2 = pnand %p8864_p13, %p9078_p7 }
  0xc8   : > { %p8867_p3 = pneg %p8866_p2 }
  0xca   : > { %p8872_p1 = pnand %p8870_p0, %p8867_p3 }
  0xcc   : > { %8875 = shalt.err (!%p8872_p1)
}
  0xcd   : > { %s8876_s21 = scalar_lea.vmem %s9246_s15, 6144  ;;  %p8884_p9 = scmp.lt.s32.totalorder %s9246_s15, %s9246_s15 }
  0xce   : > { %p8877_p4 = scmp.ne.s32.totalorder %s9246_s15, %s8876_s21  ;;  %p8885_p10 = scmp.lt.s32.totalorder %s8876_s21, %s8876_s21 }
  0xd0   : > { %p8879_p6 = pnand %p8877_p4, %p9078_p7  ;;  %p8886_p11 = por %p8885_p10, %p8884_p9 }
  0xd2   : > { %p8880_p8 = pneg %p8879_p6 }
  0xd4   : > { %p8887_p12 = pnand %p8886_p11, %p8880_p8 }
  0xd6   : > { %8890 = shalt.err (!%p8887_p12)
}
  0xd7   : > { %7691 = dma.hbm_to_vmem [thread:$0]  (!%p9062_p5), %s9597_s9, 6144, %s9246_s15, [#allocation14], %s8956_s11, %s8956_s11, %s8957_s12  }
  0xd8   : > { %s8964_s20 = smov [#allocation16]   ;;  %s8891_s26 = scalar_lea.hbm %s9598_s10, 12288 }
  0xd9   : > { %s503_s22 = sshll.u32 %s8964_s20, 4  ;;  %p8892_p13 = scmp.ne.s32.totalorder %s9598_s10, %s8891_s26  ;;  %s504_s22 = int_to_ptr.vmem [resolvable:$true] %s503_s22 }
  0xda   : > { %p8898_p0 = scmp.lt.u32.totalorder %s8891_s26, %s9598_s10 }
  0xdb   : > { %p8894_p2 = pnand %p8892_p13, %p9078_p7 }
  0xdd   : > { %p8895_p3 = pneg %p8894_p2 }
  0xdf   : > { %p8900_p1 = pnand %p8898_p0, %p8895_p3 }
  0xe1   : > { %8903 = shalt.err (!%p8900_p1)
}
  0xe2   : > { %s8904_s15 = scalar_lea.vmem %s504_s22, 12288  ;;  %p8912_p9 = scmp.lt.s32.totalorder %s504_s22, %s504_s22 }
  0xe3   : > { %p8905_p4 = scmp.ne.s32.totalorder %s504_s22, %s8904_s15  ;;  %p8913_p10 = scmp.lt.s32.totalorder %s8904_s15, %s8904_s15 }
  0xe5   : > { %p8907_p6 = pnand %p8905_p4, %p9078_p7  ;;  %p8914_p11 = por %p8913_p10, %p8912_p9 }
  0xe7   : > { %p8908_p8 = pneg %p8907_p6 }
  0xe9   : > { %p8915_p12 = pnand %p8914_p11, %p8908_p8 }
  0xeb   : > { %8918 = shalt.err (!%p8915_p12)
}
  0xec   : > { %7694 = dma.hbm_to_vmem [thread:$0]  (!%p9062_p5), %s9598_s10, 12288, %s504_s22, [#allocation17], %s8956_s11, %s8956_s11, %s8957_s12  }
  0xed   : > { %p9612_p13 = scmp.ne.s32.totalorder %s9609_s17, 0 }
  0xee   : > { %p9613_p7 = scmp.eq.s32.totalorder (!%p9612_p13), %s9047_s16, 0 }
  0xef   : > { %527 = sbr.rel (%p9612_p13) target bundleno = 3515 (0xdbb), region = 64 }
  0xf6   : > { %8924 = dma.done.wait (%p9613_p7), [#allocation3], 256   ;;  %p9614_p2 = pmov %p9613_p7 }
  0xf8   : > { %8926 = vsyncadd (%p9614_p2), [#allocation3], 4294967040  ;;  %p9615_p3 = pmov %p9614_p2 }
  0xf9   : > { %p9616_p0 = pmov %p9614_p2 }
  0xfa   : > { %8928 = dma.done.wait (%p9615_p3), [#allocation5], 13056  }
  0xfb   : > { %8930 = vsyncadd (%p9616_p0), [#allocation5], 4294954240  ;;  %p9617_p1 = pmov %p9616_p0 }
  0xfc   : > { %p9618_p5 = pmov %p9616_p0 }
  0xfd   : > { %8932 = dma.done.wait (%p9617_p1), [#allocation8], 18432  }
  0xfe   : > { %8934 = vsyncadd (%p9618_p5), [#allocation8], 4294948864  ;;  %p9619_p4 = pmov %p9616_p0 }
  0xff   : > { %p9620_p6 = pmov %p9616_p0 }
 0x100   : > { %8936 = dma.done.wait (%p9619_p4), [#allocation11], 18432  }
 0x101   : > { %8938 = vsyncadd (%p9620_p6), [#allocation11], 4294948864  ;;  %p9621_p8 = pmov %p9616_p0 }
 0x102   : > { %p9622_p9 = pmov %p9616_p0 }
 0x103   : > { %8940 = dma.done.wait (%p9621_p8), [#allocation14], 18432  }
 0x104   : > { %8942 = vsyncadd (%p9622_p9), [#allocation14], 4294948864  ;;  %p9623_p10 = pmov %p9616_p0 }
 0x105   : > { %p9624_p11 = pmov %p9616_p0 }
 0x106   : > { %8944 = dma.done.wait (%p9623_p10), [#allocation17], 12288  }
 0x107   : > { %8946 = vsyncadd (%p9624_p11), [#allocation17], 4294955008  ;;  %p624_p12 = scmp.lt.s32.totalorder %s9047_s16, 1  ;;  %v8965_v0 = vmov 0   ;;  %v7738_v1 = vld [vmem:[#allocation6 + $0x4] ss:$8 sps:$4 sm:$0xff]   ;;  %v728_v60 = vlaneseq }
 0x108   : > { %717 = vmatprep.mubr.bf16.mxu0 %v8965_v0  ;;  %v7740_v2 = vld [vmem:[#allocation6] ss:$8 sps:$4 sm:$0xff]   ;;  %685 = vmatprep.subr.bf16.mxu0 %v7738_v1  ;;  %v7743_v3 = vld [vmem:[#allocation6 + $0x14] ss:$8 sps:$4 sm:$0xff]   ;;  %vm665_vm0 = vsmask.f32 256 }
 0x109   : > { %s9637_s16 = smov (!%p624_p12, %s9047_s16), 1  ;;  %686 = vmatpush1.bf16.msra.mxu0 %v7740_v2  ;;  %vm664_vm1 = vcmask 1040384   ;;  %v7747_v7 = vld [vmem:[#allocation7 + $0x4] ss:$8 sps:$4 sm:$0xff]   ;;  %v7749_v8 = vld [vmem:[#allocation7] ss:$8 sps:$4 sm:$0xff]  }
 0x10a   : > { %s7405_s17 = sshll.u32 %s9637_s16, 4  ;;  %768 = vmatprep.subr.bf16.mxu0 %v7743_v3  ;;  %v7750_v11 = vld [vmem:[#allocation7 + $0x14] ss:$8 sps:$4 sm:$0xff]   ;;  %1104 = vmatprep.subr.bf16.mxu1 %v7747_v7  ;;  %v7752_v13 = vld [vmem:[#allocation7 + $0x10] ss:$8 sps:$4 sm:$0xff]   ;;  %vm9354_vm2 = vmand %vm664_vm1, %vm665_vm0  ;;  %vm681_vm3 = vcmask 130048  }
 0x10b   : > { %s628_s11 = scalar_lea.vmem %s9588_s0, %s7405_s17  ;;  %1105 = vmatpush1.bf16.msra.mxu1 %v7749_v8  ;;  %v7753_v15 = vld [vmem:[#allocation7 + $0x24] ss:$8 sps:$4 sm:$0xff]   ;;  %v7741_v16 = vld [vmem:[#allocation6 + $0x10] ss:$8 sps:$4 sm:$0xff]   ;;  %v7746_v19 = vld [vmem:[#allocation6 + $0x24] ss:$8 sps:$4 sm:$0xff]   ;;  %s643_s27 = scalar_lea.vmem %s9601_s13, %s7405_s17 }
 0x10c   : > { %v650_v4 = vld [vmem:[%s628_s11] sm:$0xff]  ;;  %v651_v5 = vld [vmem:[%s628_s11 + $0x8] sm:$0xff]  ;;  %1106 = vmatprep.subr.bf16.mxu1 %v7750_v11  ;;  %v7756_v23 = vld [vmem:[#allocation7 + $0x34] ss:$8 sps:$4 sm:$0xff]   ;;  %vm743_vm4 = vsmask.f32 7424 }
 0x10d   : > { %v654_v6 = vpack.c.bf16 %v651_v5, %v650_v4  ;;  %v7755_v21 = vld [vmem:[#allocation7 + $0x20] ss:$8 sps:$4 sm:$0xff]   ;;  %v7758_v27 = vld [vmem:[#allocation7 + $0x30] ss:$8 sps:$4 sm:$0xff]   ;;  %v7759_v28 = vld [vmem:[#allocation7 + $0x44] ss:$8 sps:$4 sm:$0xff]  }
 0x10e   : > { %v7744_v31 = vld [vmem:[#allocation6 + $0x20] ss:$8 sps:$4 sm:$0xff]   ;;  %v7761_v32 = vld [vmem:[#allocation7 + $0x40] ss:$8 sps:$4 sm:$0xff]   ;;  %v7762_v33 = vld [vmem:[#allocation7 + $0x54] ss:$8 sps:$4 sm:$0xff]  }
 0x10f   : > { %v656_v9 = vshrl.u32 %v654_v6, 16  ;;  %v659_v10 = vshll.u32 %v654_v6, 16  ;;  %1107 = vmatpush1.bf16.msra.mxu1 %v7752_v13  ;;  %v7764_v35 = vld [vmem:[#allocation7 + $0x50] ss:$8 sps:$4 sm:$0xff]   ;;  %v7765_v36 = vld [vmem:[#allocation7 + $0x64] ss:$8 sps:$4 sm:$0xff]  }
 0x110   : > { %1108 = vmatprep.subr.bf16.mxu1 %v7753_v15  ;;  %v7767_v37 = vld [vmem:[#allocation7 + $0x60] ss:$8 sps:$4 sm:$0xff]   ;;  %v7768_v38 = vld [vmem:[#allocation7 + $0x74] ss:$8 sps:$4 sm:$0xff]   ;;  %v7770_v41 = vld [vmem:[#allocation7 + $0x70] ss:$8 sps:$4 sm:$0xff]  }
 0x111   : > { %v658_v12 = vrot.slane %v656_v9, 7  ;;  %vm820_vm5 = vcmask 1046528   ;;  %v7771_v42 = vld [vmem:[#allocation7 + $0x84] ss:$8 sps:$4 sm:$0xff]   ;;  %v7773_v44 = vld [vmem:[#allocation7 + $0x80] ss:$8 sps:$4 sm:$0xff]  }
 0x112   : > { %v7774_v45 = vld [vmem:[#allocation7 + $0x94] ss:$8 sps:$4 sm:$0xff]   ;;  %v7776_v46 = vld [vmem:[#allocation7 + $0x90] ss:$8 sps:$4 sm:$0xff]   ;;  %v7777_v47 = vld [vmem:[#allocation7 + $0xa4] ss:$8 sps:$4 sm:$0xff]  }
 0x113   : > { %v661_v17 = vor.u32 %v659_v10, %v658_v12  ;;  %v668_v18 = vsel %vm9354_vm2, %v658_v12, 0  ;;  %1109 = vmatpush1.bf16.msra.mxu1 %v7755_v21  ;;  %v7779_v48 = vld [vmem:[#allocation7 + $0xa0] ss:$8 sps:$4 sm:$0xff]   ;;  %v7780_v49 = vld [vmem:[#allocation7 + $0xb4] ss:$8 sps:$4 sm:$0xff]   ;;  %v9369_v61 = vshrl.u32 %v728_v60, 7 }
 0x114   : > { %v751_v25 = vshll.u32 %v668_v18, 16  ;;  %1110 = vmatprep.subr.bf16.mxu1 %v7756_v23  ;;  %v822_v40 = vrot.slane %v668_v18, 1  ;;  %v7782_v50 = vld [vmem:[#allocation7 + $0xb0] ss:$8 sps:$4 sm:$0xff]   ;;  %v7783_v51 = vld [vmem:[#allocation7 + $0xc4] ss:$8 sps:$4 sm:$0xff]  }
 0x115   : > { %v667_v20 = vsel %vm9354_vm2, 0, %v661_v17  ;;  %v7785_v52 = vld [vmem:[#allocation7 + $0xc0] ss:$8 sps:$4 sm:$0xff]   ;;  %v7786_v53 = vld [vmem:[#allocation7 + $0xd4] ss:$8 sps:$4 sm:$0xff]   ;;  %v730_v63 = vsub.s32 0, %v9369_v61 }
 0x116   : > { %6771 = vmatmul.mubr.msk.bf16.vlgmr.msra.gmra.mrb[0].mxu0 %vm681_vm3, %v667_v20  ;;  %v746_v22 = vshll.u32 %v667_v20, 16  ;;  %v744_v24 = vshrl.u32 %v667_v20, 16  ;;  %v753_v30 = vrot.slane %v751_v25, 1  ;;  %v821_v39 = vrot.slane %v667_v20, 1  ;;  %v7788_v54 = vld [vmem:[#allocation7 + $0xd0] ss:$8 sps:$4 sm:$0xff]  }
 0x117   : > { %769 = vmatpush1.bf16.msra.mxu0 %v7741_v16  ;;  %800 = vmatprep.mubr.bf16.mxu0 %v8965_v0  ;;  %v7789_v55 = vld [vmem:[#allocation7 + $0xe4] ss:$8 sps:$4 sm:$0xff]   ;;  %v7791_v56 = vld [vmem:[#allocation7 + $0xe0] ss:$8 sps:$4 sm:$0xff]   ;;  %v7792_v57 = vld [vmem:[#allocation7 + $0xf4] ss:$8 sps:$4 sm:$0xff]  }
 0x118   : > { %v748_v26 = vrot.slane %v746_v22, 1  ;;  %837 = vmatprep.subr.bf16.mxu0 %v7746_v19  ;;  %1111 = vmatpush1.bf16.msra.mxu1 %v7758_v27  ;;  %v823_v43 = vsel %vm820_vm5, %v821_v39, %v822_v40  ;;  %v7794_v58 = vld [vmem:[#allocation7 + $0xf0] ss:$8 sps:$4 sm:$0xff]   ;;  %v7797_v59 = vld [vmem:[#allocation7 + $0x104] ss:$8 sps:$4 sm:$0xff]   ;;  %s7409_s12 = sshll.u32 %s9637_s16, 5 }
 0x119   : > { %1112 = vmatprep.subr.bf16.mxu1 %v7759_v28  ;;  %v9371_v62 = vld [vmem:[#allocation2] sm:$0xff]  ;;  %v9374_v1 = vld [vmem:[#allocation2 + $0x8] sm:$0xff]  ;;  %v7818_v60 = vld [vmem:[#allocation7 + $0x174] ss:$8 sps:$4 sm:$0xff]   ;;  %s648_s24 = scalar_lea.vmem %s9602_s14, %s7409_s12  ;;  %vm1801_vm6 = vcmask 1041408   ;;  %vm1804_vm7 = vcmask 1042432  }
 0x11a   : > { %v749_v29 = vor.u32 %v748_v26, %v744_v24  ;;  %v731_v2 = vrot.slane %v9371_v62, %v730_v63  ;;  %v735_v3 = vrot.slane %v9374_v1, %v730_v63  ;;  %v7795_v26 = vld [vmem:[#allocation7 + $0x100] ss:$8 sps:$4 sm:$0xff]   ;;  %v7816_v63 = vld [vmem:[#allocation7 + $0x170] ss:$8 sps:$4 sm:$0xff]   ;;  %vm1807_vm8 = vcmask 1043456   ;;  %s7407_s23 = sshll.u32 %s9637_s16, 3 }
 0x11b   : > { %vm1810_vm9 = vcmask 1044480   ;;  %vm1813_vm10 = vcmask 1045504   ;;  %vm2105_vm11 = vsmask.f32 4352  ;;  %vm3691_vm13 = vsmask.f32 2304 }
 0x11c   : > { %v754_v34 = vsel %vm743_vm4, %v749_v29, %v753_v30  ;;  %1113 = vmatpush1.bf16.msra.mxu1 %v7761_v32  ;;  %v7800_v30 = vld [vmem:[#allocation7 + $0x114] ss:$8 sps:$4 sm:$0xff]   ;;  %vm9432_vm12 = vmand %vm1810_vm9, %vm2105_vm11  ;;  %s9631_s15 = sld [smem:[#allocation26_spill]]  ;;  %vm5266_vm15 = vsmask.f32 1280  ;;  %s7406_s30 = sshll.u32 %s9637_s16, 2 }
 0x11d   : > { %1114 = vmatprep.subr.bf16.mxu1 %v7762_v33  ;;  %vm9485_vm14 = vmand %vm1804_vm7, %vm3691_vm13  ;;  %s9634_s28 = sld [smem:[#allocation25_spill]] }
 0x11e   : > { %vm9539_vm0 = vmand %vm1801_vm6, %vm5266_vm15 }
 0x120   : > { %1115 = vmatpush1.bf16.msra.mxu1 %v7764_v35 }
 0x121   : > { %1116 = vmatprep.subr.bf16.mxu1 %v7765_v36 }
 0x122   : > { %6774 = vmatmul.mubr.msk.bf16.vlgmr.msra.gmra.mrb[0].mxu0 %vm681_vm3, %v754_v34  ;;  %s638_s25 = scalar_lea.vmem %s9631_s15, %s7407_s23 }
 0x123   : > { %838 = vmatpush1.bf16.msra.mxu0 %v7744_v31  ;;  %869 = vmatprep.mubr.bf16.mxu0 %v8965_v0  ;;  %s633_s11 = scalar_lea.vmem %s9634_s28, %s7406_s30 }
 0x124   : > { %1117 = vmatpush1.bf16.msra.mxu1 %v7767_v37 }
 0x125   : > { %1118 = vmatprep.subr.bf16.mxu1 %v7768_v38  ;;  %v7892_v38 = vld [vmem:[#allocation4 + $0xc0] sm:$0xff]  }
 0x126   : > { %7432 = vmatprep.subr.bf16.mxu0 %v7892_v38  ;;  %v7852_v38 = vld [vmem:[#allocation7 + $0x230] ss:$8 sps:$4 sm:$0xff]  }
 0x128   : > { %1119 = vmatpush1.bf16.msra.mxu1 %v7770_v41  ;;  %v7798_v41 = vld [vmem:[#allocation7 + $0x110] ss:$8 sps:$4 sm:$0xff]  }
 0x129   : > { %1120 = vmatprep.subr.bf16.mxu1 %v7771_v42  ;;  %v7894_v42 = vld [vmem:[#allocation4 + $0x80] sm:$0xff]  }
 0x12c   : > { %1121 = vmatpush1.bf16.msra.mxu1 %v7773_v44  ;;  %v7896_v44 = vld [vmem:[#allocation4 + $0xc8] sm:$0xff]  }
 0x12d   : > { %1122 = vmatprep.subr.bf16.mxu1 %v7774_v45 }
 0x12e   : > { %6777 = vmatmul.mubr.msk.bf16.vlgmr.msra.gmra.mrb[0].mxu0 %vm681_vm3, %v823_v43  ;;  %v7803_v43 = vld [vmem:[#allocation7 + $0x124] ss:$8 sps:$4 sm:$0xff]  }
 0x12f   : > { %7433 = vmatpush3.bf16.msra.mxu0 %v7894_v42  ;;  %v7863_v42 = vld [vmem:[#allocation7 + $0x264] ss:$8 sps:$4 sm:$0xff]  }
 0x130   : > { %1123 = vmatpush1.bf16.msra.mxu1 %v7776_v46  ;;  %7434 = vmatprep.subr.bf16.mxu0 %v7896_v44  ;;  %v7866_v44 = vld [vmem:[#allocation7 + $0x274] ss:$8 sps:$4 sm:$0xff]  }
 0x131   : > { %1124 = vmatprep.subr.bf16.mxu1 %v7777_v47 }
 0x134   : > { %1125 = vmatpush1.bf16.msra.mxu1 %v7779_v48  ;;  %v7801_v48 = vld [vmem:[#allocation7 + $0x120] ss:$8 sps:$4 sm:$0xff]  }
 0x135   : > { %1126 = vmatprep.subr.bf16.mxu1 %v7780_v49  ;;  %v7898_v49 = vld [vmem:[#allocation4 + $0x88] sm:$0xff]  }
 0x136   : > { %7435 = vmatpush3.bf16.msra.mxu0 %v7898_v49  ;;  %v7870_v49 = vld [vmem:[#allocation7 + $0x290] ss:$8 sps:$4 sm:$0xff]  }
 0x138   : > { %1127 = vmatpush1.bf16.msra.mxu1 %v7782_v50  ;;  %v7806_v50 = vld [vmem:[#allocation7 + $0x134] ss:$8 sps:$4 sm:$0xff]  }
 0x139   : > { %1128 = vmatprep.subr.bf16.mxu1 %v7783_v51  ;;  %v7900_v51 = vld [vmem:[#allocation4 + $0xd0] sm:$0xff]  }
 0x13a   : > { %7436 = vmatprep.subr.bf16.mxu0 %v7900_v51  ;;  %v7873_v51 = vld [vmem:[#allocation7 + $0x2a0] ss:$8 sps:$4 sm:$0xff]  }
 0x13c   : > { %1129 = vmatpush1.bf16.msra.mxu1 %v7785_v52  ;;  %v7804_v52 = vld [vmem:[#allocation7 + $0x130] ss:$8 sps:$4 sm:$0xff]  }
 0x13d   : > { %1130 = vmatprep.subr.bf16.mxu1 %v7786_v53  ;;  %v7809_v53 = vld [vmem:[#allocation7 + $0x144] ss:$8 sps:$4 sm:$0xff]  }
 0x140   : > { %1131 = vmatpush1.bf16.msra.mxu1 %v7788_v54  ;;  %v7902_v54 = vld [vmem:[#allocation4 + $0x90] sm:$0xff]  }
 0x141   : > { %1132 = vmatprep.subr.bf16.mxu1 %v7789_v55  ;;  %v7807_v55 = vld [vmem:[#allocation7 + $0x140] ss:$8 sps:$4 sm:$0xff]   ;;  %7437 = vmatpush3.bf16.msra.mxu0 %v7902_v54  ;;  %v7881_v54 = vld [vmem:[#allocation7 + $0x2c4] ss:$8 sps:$4 sm:$0xff]  }
 0x144   : > { %1133 = vmatpush1.bf16.msra.mxu1 %v7791_v56  ;;  %v7812_v56 = vld [vmem:[#allocation7 + $0x154] ss:$8 sps:$4 sm:$0xff]  }
 0x145   : > { %1134 = vmatprep.subr.bf16.mxu1 %v7792_v57  ;;  %v7810_v57 = vld [vmem:[#allocation7 + $0x150] ss:$8 sps:$4 sm:$0xff]  }
 0x148   : > { %1135 = vmatpush1.bf16.msra.mxu1 %v7794_v58  ;;  %v7815_v58 = vld [vmem:[#allocation7 + $0x164] ss:$8 sps:$4 sm:$0xff]  }
 0x149   : > { %1378 = vmatprep.subr.bf16.mxu1 %v7797_v59  ;;  %v7813_v59 = vld [vmem:[#allocation7 + $0x160] ss:$8 sps:$4 sm:$0xff]  }
 0x201   : > { %v871_v4 = vpop.f32.mrb[0].mxu0 }
 0x202   : > { %v7542_v5 = vadd.f32 %v871_v4, %v731_v2  ;;  %v873_v6 = vpop.f32.mrb[1].mxu0  ;;  %v7824_v4 = vld [vmem:[#allocation7 + $0x194] ss:$8 sps:$4 sm:$0xff]  }
 0x203   : > { %v7543_v7 = vadd.f32 %v873_v6, %v735_v3  ;;  %v875_v8 = vpop.f32.mrb[2].mxu0  ;;  %v7827_v6 = vld [vmem:[#allocation7 + $0x1a4] ss:$8 sps:$4 sm:$0xff]  }
 0x204   : > { %v7544_v9 = vadd.f32 %v875_v8, %v731_v2  ;;  %v877_v10 = vpop.f32.mrb[3].mxu0  ;;  %v884_v12 = vmax.f32 %v7542_v5, 0.0  ;;  %v7821_v2 = vld [vmem:[#allocation7 + $0x184] ss:$8 sps:$4 sm:$0xff]   ;;  %v7822_v5 = vld [vmem:[#allocation7 + $0x190] ss:$8 sps:$4 sm:$0xff]  }
 0x205   : > { %v7545_v11 = vadd.f32 %v877_v10, %v735_v3  ;;  %v885_v15 = vmax.f32 %v7543_v7, 0.0  ;;  %v7819_v3 = vld [vmem:[#allocation7 + $0x180] ss:$8 sps:$4 sm:$0xff]   ;;  %v7830_v8 = vld [vmem:[#allocation7 + $0x1b4] ss:$8 sps:$4 sm:$0xff]  }
 0x206   : > { %v886_v13 = vmax.f32 %v7544_v9, 0.0  ;;  %v7825_v7 = vld [vmem:[#allocation7 + $0x1a0] ss:$8 sps:$4 sm:$0xff]   ;;  %v7828_v9 = vld [vmem:[#allocation7 + $0x1b0] ss:$8 sps:$4 sm:$0xff]  }
 0x207   : > { %v887_v16 = vmax.f32 %v7545_v11, 0.0  ;;  %v7833_v10 = vld [vmem:[#allocation7 + $0x1c4] ss:$8 sps:$4 sm:$0xff]   ;;  %v7831_v11 = vld [vmem:[#allocation7 + $0x1c0] ss:$8 sps:$4 sm:$0xff]  }
 0x208   : > { %v888_v17 = vpack.c.bf16 %v886_v13, %v884_v12  ;;  %v7836_v12 = vld [vmem:[#allocation7 + $0x1d4] ss:$8 sps:$4 sm:$0xff]   ;;  %v7834_v13 = vld [vmem:[#allocation7 + $0x1d0] ss:$8 sps:$4 sm:$0xff]  }
 0x209   : > { %v889_v18 = vpack.c.bf16 %v887_v16, %v885_v15  ;;  %v7839_v15 = vld [vmem:[#allocation7 + $0x1e4] ss:$8 sps:$4 sm:$0xff]  }
 0x20a   : > { %v891_v19 = vshrl.u32 %v888_v17, 16  ;;  %v894_v22 = vshll.u32 %v888_v17, 16  ;;  %v7837_v17 = vld [vmem:[#allocation7 + $0x1e0] ss:$8 sps:$4 sm:$0xff]  }
 0x20b   : > { %v898_v20 = vshrl.u32 %v889_v18, 16  ;;  %v901_v24 = vshll.u32 %v889_v18, 16  ;;  %v7842_v18 = vld [vmem:[#allocation7 + $0x1f4] ss:$8 sps:$4 sm:$0xff]  }
 0x20c   : > { %v893_v21 = vrot.slane %v891_v19, 7 }
 0x20d   : > { %v900_v23 = vrot.slane %v898_v20, 7 }
 0x20e   : > { %v9380_v25 = vsel %vm9354_vm2, %v893_v21, 0  ;;  %v896_v27 = vor.u32 %v894_v22, %v893_v21  ;;  %v7840_v21 = vld [vmem:[#allocation7 + $0x1f0] ss:$8 sps:$4 sm:$0xff]  }
 0x20f   : > { %v9384_v28 = vsel %vm9354_vm2, %v900_v23, 0  ;;  %v903_v29 = vor.u32 %v901_v24, %v900_v23  ;;  %v1463_v34 = vrot.slane %v9380_v25, 1  ;;  %v1200_v22 = vshll.u32 %v9380_v25, 16  ;;  %v7845_v23 = vld [vmem:[#allocation7 + $0x204] ss:$8 sps:$4 sm:$0xff]  }
 0x210   : > { %v9388_v31 = vsel %vm9354_vm2, 0, %v896_v27  ;;  %v1212_v36 = vshll.u32 %v9384_v28, 16  ;;  %v7846_v25 = vld [vmem:[#allocation7 + $0x210] ss:$8 sps:$4 sm:$0xff]  }
 0x211   : > { %v9392_v32 = vsel %vm9354_vm2, 0, %v903_v29  ;;  %v1462_v33 = vrot.slane %v9388_v31, 1  ;;  %v1195_v16 = vshll.u32 %v9388_v31, 16  ;;  %v1193_v20 = vshrl.u32 %v9388_v31, 16  ;;  %v7843_v29 = vld [vmem:[#allocation7 + $0x200] ss:$8 sps:$4 sm:$0xff]  }
 0x212   : > { %1136 = vmatprep.mubr.bf16.mxu1 %v9392_v32  ;;  %v1207_v35 = vshll.u32 %v9392_v32, 16  ;;  %v1205_v39 = vshrl.u32 %v9392_v32, 16  ;;  %v1214_v46 = vrot.slane %v1212_v36, 1  ;;  %v1202_v27 = vrot.slane %v1200_v22, 1  ;;  %v7849_v36 = vld [vmem:[#allocation7 + $0x220] ss:$8 sps:$4 sm:$0xff]  }
 0x213   : > { %1137 = vmatmul.mubr.bf16.vlgmr.msra.gmra.mrb[0].mxu1 %v9388_v31  ;;  %v9401_v37 = vsel %vm820_vm5, %v1462_v33, %v1463_v34  ;;  %v1197_v19 = vrot.slane %v1195_v16, 1  ;;  %v7848_v33 = vld [vmem:[#allocation7 + $0x214] ss:$8 sps:$4 sm:$0xff]   ;;  %v7917_v22 = vld [vmem:[#allocation4 + $0x30] sm:$0xff]  }
 0x214   : > { %v1209_v40 = vrot.slane %v1207_v35, 1  ;;  %1379 = vmatpush1.bf16.msra.mxu1 %v7795_v26  ;;  %v1465_v26 = vrot.slane %v9392_v32, 1  ;;  %v7851_v35 = vld [vmem:[#allocation7 + $0x224] ss:$8 sps:$4 sm:$0xff]   ;;  %v7854_v32 = vld [vmem:[#allocation7 + $0x234] ss:$8 sps:$4 sm:$0xff]  }
 0x215   : > { %1380 = vmatprep.subr.bf16.mxu1 %v7800_v30  ;;  %v1198_v24 = vor.u32 %v1197_v19, %v1193_v20  ;;  %v1466_v30 = vrot.slane %v9384_v28, 1  ;;  %v7855_v28 = vld [vmem:[#allocation7 + $0x240] ss:$8 sps:$4 sm:$0xff]   ;;  %v7911_v16 = vld [vmem:[#allocation4 + $0x68] sm:$0xff]  }
 0x216   : > { %v1210_v45 = vor.u32 %v1209_v40, %v1205_v39  ;;  %v7857_v39 = vld [vmem:[#allocation7 + $0x244] ss:$8 sps:$4 sm:$0xff]   ;;  %v7860_v40 = vld [vmem:[#allocation7 + $0x254] ss:$8 sps:$4 sm:$0xff]  }
 0x217   : > { %v1203_v34 = vsel %vm743_vm4, %v1198_v24, %v1202_v27  ;;  %v1467_v31 = vsel %vm820_vm5, %v1465_v26, %v1466_v30  ;;  %v7914_v19 = vld [vmem:[#allocation4 + $0xa8] sm:$0xff]   ;;  %v7915_v20 = vld [vmem:[#allocation4 + $0x70] sm:$0xff]   ;;  %v7919_v24 = vld [vmem:[#allocation4 + $0x78] sm:$0xff]  }
 0x218   : > { %1381 = vmatpush1.bf16.msra.mxu1 %v7798_v41  ;;  %v1215_v47 = vsel %vm743_vm4, %v1210_v45, %v1214_v46  ;;  %v7858_v41 = vld [vmem:[#allocation7 + $0x250] ss:$8 sps:$4 sm:$0xff]   ;;  %v7869_v46 = vld [vmem:[#allocation7 + $0x284] ss:$8 sps:$4 sm:$0xff]  }
 0x219   : > { %1410 = vmatprep.mubr.bf16.mxu1 %v1215_v47  ;;  %1382 = vmatprep.subr.bf16.mxu1 %v7803_v43  ;;  %v7861_v43 = vld [vmem:[#allocation7 + $0x260] ss:$8 sps:$4 sm:$0xff]   ;;  %v7864_v45 = vld [vmem:[#allocation7 + $0x270] ss:$8 sps:$4 sm:$0xff]   ;;  %v7925_v30 = vld [vmem:[#allocation9 + $0x4] ss:$8 sps:$4 sm:$0xff]  }
 0x21a   : > { %v7867_v47 = vld [vmem:[#allocation7 + $0x280] ss:$8 sps:$4 sm:$0xff]  }
 0x21b   : > { %v7920_v26 = vld [vmem:[#allocation4 + $0xf8] sm:$0xff]  }
 0x21c   : > { %1383 = vmatpush1.bf16.msra.mxu1 %v7801_v48  ;;  %v7872_v48 = vld [vmem:[#allocation7 + $0x294] ss:$8 sps:$4 sm:$0xff]   ;;  %v7921_v27 = vld [vmem:[#allocation4 + $0x38] sm:$0xff]  }
 0x21d   : > { %1384 = vmatprep.subr.bf16.mxu1 %v7806_v50  ;;  %v7875_v50 = vld [vmem:[#allocation7 + $0x2a4] ss:$8 sps:$4 sm:$0xff]  }
 0x220   : > { %1385 = vmatpush1.bf16.msra.mxu1 %v7804_v52  ;;  %v7878_v52 = vld [vmem:[#allocation7 + $0x2b4] ss:$8 sps:$4 sm:$0xff]  }
 0x221   : > { %1386 = vmatprep.subr.bf16.mxu1 %v7809_v53  ;;  %v7876_v53 = vld [vmem:[#allocation7 + $0x2b0] ss:$8 sps:$4 sm:$0xff]  }
 0x224   : > { %1387 = vmatpush1.bf16.msra.mxu1 %v7807_v55  ;;  %v7879_v55 = vld [vmem:[#allocation7 + $0x2c0] ss:$8 sps:$4 sm:$0xff]  }
 0x225   : > { %1388 = vmatprep.subr.bf16.mxu1 %v7812_v56  ;;  %v7884_v56 = vld [vmem:[#allocation7 + $0x2d4] ss:$8 sps:$4 sm:$0xff]  }
 0x228   : > { %1389 = vmatpush1.bf16.msra.mxu1 %v7810_v57  ;;  %v7882_v57 = vld [vmem:[#allocation7 + $0x2d0] ss:$8 sps:$4 sm:$0xff]  }
 0x229   : > { %1390 = vmatprep.subr.bf16.mxu1 %v7815_v58  ;;  %v7887_v58 = vld [vmem:[#allocation7 + $0x2e4] ss:$8 sps:$4 sm:$0xff]  }
 0x22c   : > { %1391 = vmatpush1.bf16.msra.mxu1 %v7813_v59  ;;  %v7885_v59 = vld [vmem:[#allocation7 + $0x2e0] ss:$8 sps:$4 sm:$0xff]  }
 0x22d   : > { %1392 = vmatprep.subr.bf16.mxu1 %v7818_v60  ;;  %v7890_v60 = vld [vmem:[#allocation7 + $0x2f4] ss:$8 sps:$4 sm:$0xff]  }
 0x230   : > { %1393 = vmatpush1.bf16.msra.mxu1 %v7816_v63  ;;  %v7888_v63 = vld [vmem:[#allocation7 + $0x2f0] ss:$8 sps:$4 sm:$0xff]  }
 0x231   : > { %1394 = vmatprep.subr.bf16.mxu1 %v7821_v2  ;;  %v7891_v2 = vld [vmem:[#allocation4 + $0x40] sm:$0xff]  }
 0x234   : > { %1395 = vmatpush1.bf16.msra.mxu1 %v7819_v3  ;;  %v7893_v3 = vld [vmem:[#allocation4] sm:$0xff]  }
 0x235   : > { %1396 = vmatprep.subr.bf16.mxu1 %v7824_v4  ;;  %v7895_v4 = vld [vmem:[#allocation4 + $0x48] sm:$0xff]  }
 0x238   : > { %1397 = vmatpush1.bf16.msra.mxu1 %v7822_v5  ;;  %v7897_v5 = vld [vmem:[#allocation4 + $0x8] sm:$0xff]  }
 0x239   : > { %1398 = vmatprep.subr.bf16.mxu1 %v7827_v6  ;;  %v7899_v6 = vld [vmem:[#allocation4 + $0x50] sm:$0xff]  }
 0x23c   : > { %1399 = vmatpush1.bf16.msra.mxu1 %v7825_v7  ;;  %v7901_v7 = vld [vmem:[#allocation4 + $0x10] sm:$0xff]  }
 0x23d   : > { %1400 = vmatprep.subr.bf16.mxu1 %v7830_v8  ;;  %v7903_v8 = vld [vmem:[#allocation4 + $0x58] sm:$0xff]  }
 0x240   : > { %1401 = vmatpush1.bf16.msra.mxu1 %v7828_v9  ;;  %v7904_v9 = vld [vmem:[#allocation4 + $0xd8] sm:$0xff]  }
 0x241   : > { %1402 = vmatprep.subr.bf16.mxu1 %v7833_v10  ;;  %v7905_v10 = vld [vmem:[#allocation4 + $0x18] sm:$0xff]   ;;  %7438 = vmatprep.subr.bf16.mxu0 %v7904_v9 }
 0x244   : > { %1403 = vmatpush1.bf16.msra.mxu1 %v7831_v11  ;;  %v7906_v11 = vld [vmem:[#allocation4 + $0x98] sm:$0xff]  }
 0x245   : > { %1404 = vmatprep.subr.bf16.mxu1 %v7836_v12  ;;  %7439 = vmatpush3.bf16.msra.mxu0 %v7906_v11  ;;  %v7907_v12 = vld [vmem:[#allocation4 + $0x60] sm:$0xff]  }
 0x248   : > { %1405 = vmatpush1.bf16.msra.mxu1 %v7834_v13  ;;  %v7908_v13 = vld [vmem:[#allocation4 + $0xe0] sm:$0xff]  }
 0x249   : > { %1406 = vmatprep.subr.bf16.mxu1 %v7839_v15  ;;  %v7909_v15 = vld [vmem:[#allocation4 + $0x20] sm:$0xff]   ;;  %7440 = vmatprep.subr.bf16.mxu0 %v7908_v13 }
 0x24c   : > { %1407 = vmatpush1.bf16.msra.mxu1 %v7837_v17  ;;  %v7912_v17 = vld [vmem:[#allocation4 + $0xe8] sm:$0xff]  }
 0x24d   : > { %1408 = vmatprep.subr.bf16.mxu1 %v7842_v18  ;;  %v7913_v18 = vld [vmem:[#allocation4 + $0x28] sm:$0xff]  }
 0x250   : > { %1409 = vmatpush1.bf16.msra.mxu1 %v7840_v21  ;;  %v7916_v21 = vld [vmem:[#allocation4 + $0xf0] sm:$0xff]  }
 0x251   : > { %1630 = vmatprep.subr.bf16.mxu1 %v7845_v23  ;;  %v7918_v23 = vld [vmem:[#allocation4 + $0xb0] sm:$0xff]  }
 0x253   : > { %1411 = vmatmul.mubr.bf16.vlgmr.msra.gmra.mrb[0].mxu1 %v1203_v34 }
 0x254   : > { %1631 = vmatpush1.bf16.msra.mxu1 %v7843_v29  ;;  %1662 = vmatprep.mubr.bf16.mxu1 %v1467_v31  ;;  %v7922_v29 = vld [vmem:[#allocation4 + $0xb8] sm:$0xff]  }
 0x255   : > { %1632 = vmatprep.subr.bf16.mxu1 %v7848_v33  ;;  %v1149_v33 = vsub.s32 1, %v9369_v61 }
 0x257   : > { %v1150_v34 = vrot.slane %v9371_v62, %v1149_v33  ;;  %v1154_v31 = vrot.slane %v9374_v1, %v1149_v33  ;;  %v7935_v33 = vld [vmem:[#allocation9 + $0x40] ss:$8 sps:$4 sm:$0xff]  }
 0x258   : > { %1633 = vmatpush1.bf16.msra.mxu1 %v7846_v25 }
 0x259   : > { %1634 = vmatprep.subr.bf16.mxu1 %v7851_v35 }
 0x25c   : > { %1635 = vmatpush1.bf16.msra.mxu1 %v7849_v36 }
 0x25d   : > { %1636 = vmatprep.subr.bf16.mxu1 %v7854_v32 }
 0x260   : > { %1637 = vmatpush1.bf16.msra.mxu1 %v7852_v38 }
 0x261   : > { %1638 = vmatprep.subr.bf16.mxu1 %v7857_v39 }
 0x264   : > { %1639 = vmatpush1.bf16.msra.mxu1 %v7855_v28 }
 0x265   : > { %1640 = vmatprep.subr.bf16.mxu1 %v7860_v40 }
 0x268   : > { %1641 = vmatpush1.bf16.msra.mxu1 %v7858_v41 }
 0x269   : > { %1642 = vmatprep.subr.bf16.mxu1 %v7863_v42 }
 0x26c   : > { %1643 = vmatpush1.bf16.msra.mxu1 %v7861_v43 }
 0x26d   : > { %1644 = vmatprep.subr.bf16.mxu1 %v7866_v44 }
 0x270   : > { %1645 = vmatpush1.bf16.msra.mxu1 %v7864_v45 }
 0x271   : > { %1646 = vmatprep.subr.bf16.mxu1 %v7869_v46 }
 0x274   : > { %1647 = vmatpush1.bf16.msra.mxu1 %v7867_v47 }
 0x275   : > { %1648 = vmatprep.subr.bf16.mxu1 %v7872_v48 }
 0x278   : > { %1649 = vmatpush1.bf16.msra.mxu1 %v7870_v49 }
 0x279   : > { %1650 = vmatprep.subr.bf16.mxu1 %v7875_v50 }
 0x27c   : > { %1651 = vmatpush1.bf16.msra.mxu1 %v7873_v51 }
 0x27d   : > { %1652 = vmatprep.subr.bf16.mxu1 %v7878_v52 }
 0x280   : > { %1653 = vmatpush1.bf16.msra.mxu1 %v7876_v53 }
 0x281   : > { %1654 = vmatprep.subr.bf16.mxu1 %v7881_v54 }
 0x284   : > { %1655 = vmatpush1.bf16.msra.mxu1 %v7879_v55 }
 0x285   : > { %1656 = vmatprep.subr.bf16.mxu1 %v7884_v56 }
 0x288   : > { %1657 = vmatpush1.bf16.msra.mxu1 %v7882_v57 }
 0x289   : > { %1658 = vmatprep.subr.bf16.mxu1 %v7887_v58 }
 0x28c   : > { %1659 = vmatpush1.bf16.msra.mxu1 %v7885_v59 }
 0x28d   : > { %1660 = vmatprep.subr.bf16.mxu1 %v7890_v60 }
 0x290   : > { %1661 = vmatpush1.bf16.msra.mxu1 %v7888_v63 }
 0x291   : > { %7410 = vmatprep.subr.bf16.mxu1 %v7891_v2 }
 0x293   : > { %1663 = vmatmul.mubr.bf16.vlgmr.msra.gmra.mrb[0].mxu1 %v9401_v37  ;;  %v7910_v37 = vld [vmem:[#allocation4 + $0xa0] sm:$0xff]  }
 0x294   : > { %7411 = vmatpush3.bf16.msra.mxu1 %v7893_v3  ;;  %7441 = vmatpush3.bf16.msra.mxu0 %v7910_v37 }
 0x295   : > { %7412 = vmatprep.subr.bf16.mxu1 %v7895_v4  ;;  %7442 = vmatprep.subr.bf16.mxu0 %v7912_v17 }
 0x298   : > { %7413 = vmatpush3.bf16.msra.mxu1 %v7897_v5  ;;  %7443 = vmatpush3.bf16.msra.mxu0 %v7914_v19 }
 0x299   : > { %7414 = vmatprep.subr.bf16.mxu1 %v7899_v6  ;;  %7444 = vmatprep.subr.bf16.mxu0 %v7916_v21 }
 0x29c   : > { %7415 = vmatpush3.bf16.msra.mxu1 %v7901_v7  ;;  %7445 = vmatpush3.bf16.msra.mxu0 %v7918_v23  ;;  %v7926_v23 = vld [vmem:[#allocation9 + $0x10] ss:$8 sps:$4 sm:$0xff]  }
 0x29d   : > { %7416 = vmatprep.subr.bf16.mxu1 %v7903_v8  ;;  %7446 = vmatprep.subr.bf16.mxu0 %v7920_v26  ;;  %v7929_v26 = vld [vmem:[#allocation9 + $0x20] ss:$8 sps:$4 sm:$0xff]  }
 0x2a0   : > { %7417 = vmatpush3.bf16.msra.mxu1 %v7905_v10  ;;  %7447 = vmatpush3.bf16.msra.mxu0 %v7922_v29  ;;  %v7932_v29 = vld [vmem:[#allocation9 + $0x30] ss:$8 sps:$4 sm:$0xff]  }
 0x2a1   : > { %7418 = vmatprep.subr.bf16.mxu1 %v7907_v12  ;;  %2204 = vmatprep.subr.bf16.mxu0 %v7925_v30  ;;  %v7937_v30 = vld [vmem:[#allocation9 + $0x44] ss:$8 sps:$4 sm:$0xff]  }
 0x2a4   : > { %7419 = vmatpush3.bf16.msra.mxu1 %v7909_v15 }
 0x2a5   : > { %7420 = vmatprep.subr.bf16.mxu1 %v7911_v16 }
 0x2a8   : > { %7421 = vmatpush3.bf16.msra.mxu1 %v7913_v18 }
 0x2a9   : > { %7422 = vmatprep.subr.bf16.mxu1 %v7915_v20  ;;  %v7923_v20 = vld [vmem:[#allocation9] ss:$8 sps:$4 sm:$0xff]  }
 0x2ac   : > { %7423 = vmatpush3.bf16.msra.mxu1 %v7917_v22  ;;  %v7928_v22 = vld [vmem:[#allocation9 + $0x14] ss:$8 sps:$4 sm:$0xff]  }
 0x2ad   : > { %7424 = vmatprep.subr.bf16.mxu1 %v7919_v24  ;;  %v7931_v24 = vld [vmem:[#allocation9 + $0x24] ss:$8 sps:$4 sm:$0xff]  }
 0x2b0   : > { %7425 = vmatpush3.bf16.msra.mxu1 %v7921_v27  ;;  %v7934_v27 = vld [vmem:[#allocation9 + $0x34] ss:$8 sps:$4 sm:$0xff]  }
 0x366   : > { %v1664_v25 = vpop.f32.mrb[0].mxu1 }
 0x367   : > { %v7546_v35 = vadd.f32 %v1664_v25, %v1150_v34  ;;  %v1666_v36 = vpop.f32.mrb[1].mxu1  ;;  %v7943_v25 = vld [vmem:[#allocation9 + $0x64] ss:$8 sps:$4 sm:$0xff]  }
 0x368   : > { %v7547_v32 = vadd.f32 %v1666_v36, %v1154_v31  ;;  %v1668_v38 = vpop.f32.mrb[2].mxu1  ;;  %v7944_v36 = vld [vmem:[#allocation9 + $0x70] ss:$8 sps:$4 sm:$0xff]  }
 0x369   : > { %v1677_v39 = vmax.f32 %v7546_v35, 0.0  ;;  %v7548_v28 = vadd.f32 %v1668_v38, %v1150_v34  ;;  %v1670_v40 = vpop.f32.mrb[3].mxu1  ;;  %v7940_v34 = vld [vmem:[#allocation9 + $0x54] ss:$8 sps:$4 sm:$0xff]   ;;  %v7941_v35 = vld [vmem:[#allocation9 + $0x60] ss:$8 sps:$4 sm:$0xff]  }
 0x36a   : > { %v1678_v41 = vmax.f32 %v7547_v32, 0.0  ;;  %v7549_v42 = vadd.f32 %v1670_v40, %v1154_v31  ;;  %v7938_v31 = vld [vmem:[#allocation9 + $0x50] ss:$8 sps:$4 sm:$0xff]   ;;  %v7946_v32 = vld [vmem:[#allocation9 + $0x74] ss:$8 sps:$4 sm:$0xff]  }
 0x36b   : > { %1681 = vst [vmem:[%s648_s24] sm:$0xff] %v1677_v39  ;;  %v1752_v43 = vrot.slane %v1677_v39, 1  ;;  %v1679_v62 = vmax.f32 %v7548_v28, 0.0  ;;  %v7949_v38 = vld [vmem:[#allocation9 + $0x84] ss:$8 sps:$4 sm:$0xff]   ;;  %v8000_v40 = vld [vmem:[#allocation10 + $0x14] ss:$8 sps:$4 sm:$0xff]  }
 0x36c   : > { %1682 = vst [vmem:[%s648_s24 + $0x8] sm:$0xff] %v1678_v41  ;;  %v1753_v1 = vrot.slane %v1678_v41, 1  ;;  %v1680_v44 = vmax.f32 %v7549_v42, 0.0  ;;  %v7997_v28 = vld [vmem:[#allocation10 + $0x4] ss:$8 sps:$4 sm:$0xff]  }
 0x36d   : > { %v1756_v45 = vmax.f32 %v1677_v39, %v1752_v43  ;;  %1683 = vst [vmem:[%s648_s24 + $0x10] sm:$0xff] %v1679_v62  ;;  %v1760_v46 = vrot.slane %v1679_v62, 1  ;;  %v7995_v39 = vld [vmem:[#allocation10] ss:$8 sps:$4 sm:$0xff]   ;;  %2762 = vmatprep.subr.bf16.mxu1 %v7997_v28  ;;  %v8006_v42 = vld [vmem:[#allocation10 + $0x24] ss:$8 sps:$4 sm:$0xff]  }
 0x36e   : > { %v1757_v47 = vmax.f32 %v1678_v41, %v1753_v1  ;;  %1684 = vst [vmem:[%s648_s24 + $0x18] sm:$0xff] %v1680_v44  ;;  %v1761_v48 = vrot.slane %v1680_v44, 1  ;;  %v7998_v41 = vld [vmem:[#allocation10 + $0x10] ss:$8 sps:$4 sm:$0xff]   ;;  %v8004_v43 = vld [vmem:[#allocation10 + $0x20] ss:$8 sps:$4 sm:$0xff]  }
 0x36f   : > { %v1768_v49 = vrot.slane %v1756_v45, 1  ;;  %v1772_v50 = vrot.slane %v1756_v45, 2  ;;  %v1764_v51 = vmax.f32 %v1679_v62, %v1760_v46  ;;  %v1776_v55 = vrot.slane %v1756_v45, 3  ;;  %v8012_v62 = vld [vmem:[#allocation10 + $0x34] ss:$8 sps:$4 sm:$0xff]  }
 0x370   : > { %v1769_v52 = vrot.slane %v1757_v47, 1  ;;  %v1773_v53 = vrot.slane %v1757_v47, 2  ;;  %v1765_v54 = vmax.f32 %v1680_v44, %v1761_v48  ;;  %v1777_v59 = vrot.slane %v1757_v47, 3  ;;  %v8010_v1 = vld [vmem:[#allocation10 + $0x30] ss:$8 sps:$4 sm:$0xff]  }
 0x371   : > { %v1799_v56 = vsel %vm664_vm1, %v1756_v45, %v1768_v49  ;;  %v1782_v57 = vrot.slane %v1764_v51, 4  ;;  %v1786_v3 = vrot.slane %v1764_v51, 5  ;;  %v1790_v7 = vrot.slane %v1764_v51, 6  ;;  %v8018_v44 = vld [vmem:[#allocation10 + $0x44] ss:$8 sps:$4 sm:$0xff]  }
 0x372   : > { %v1802_v58 = vsel %vm1801_vm6, %v1799_v56, %v1772_v50  ;;  %v1800_v60 = vsel %vm664_vm1, %v1757_v47, %v1769_v52  ;;  %v1783_v63 = vrot.slane %v1765_v54, 4  ;;  %v1787_v4 = vrot.slane %v1765_v54, 5  ;;  %v8016_v45 = vld [vmem:[#allocation10 + $0x40] ss:$8 sps:$4 sm:$0xff]   ;;  %v8024_v46 = vld [vmem:[#allocation10 + $0x54] ss:$8 sps:$4 sm:$0xff]  }
 0x373   : > { %v1803_v2 = vsel %vm1801_vm6, %v1800_v60, %v1773_v53  ;;  %v1805_v6 = vsel %vm1804_vm7, %v1802_v58, %v1776_v55  ;;  %v1791_v8 = vrot.slane %v1765_v54, 6  ;;  %v1795_v11 = vrot.slane %v1765_v54, 7  ;;  %v8022_v47 = vld [vmem:[#allocation10 + $0x50] ss:$8 sps:$4 sm:$0xff]   ;;  %v8030_v48 = vld [vmem:[#allocation10 + $0x64] ss:$8 sps:$4 sm:$0xff]  }
 0x374   : > { %v1806_v5 = vsel %vm1804_vm7, %v1803_v2, %v1777_v59  ;;  %v1808_v10 = vsel %vm1807_vm8, %v1805_v6, %v1782_v57  ;;  %v1794_v13 = vrot.slane %v1764_v51, 7  ;;  %v8028_v49 = vld [vmem:[#allocation10 + $0x60] ss:$8 sps:$4 sm:$0xff]   ;;  %v8036_v50 = vld [vmem:[#allocation10 + $0x74] ss:$8 sps:$4 sm:$0xff]  }
 0x375   : > { %v1809_v9 = vsel %vm1807_vm8, %v1806_v5, %v1783_v63  ;;  %v1811_v15 = vsel %vm1810_vm9, %v1808_v10, %v1786_v3  ;;  %v8034_v51 = vld [vmem:[#allocation10 + $0x70] ss:$8 sps:$4 sm:$0xff]   ;;  %v8042_v52 = vld [vmem:[#allocation10 + $0x84] ss:$8 sps:$4 sm:$0xff]   ;;  %v8040_v53 = vld [vmem:[#allocation10 + $0x80] ss:$8 sps:$4 sm:$0xff]  }
 0x376   : > { %v1812_v12 = vsel %vm1810_vm9, %v1809_v9, %v1787_v4  ;;  %v1814_v16 = vsel %vm1813_vm10, %v1811_v15, %v1790_v7  ;;  %v8048_v54 = vld [vmem:[#allocation10 + $0x94] ss:$8 sps:$4 sm:$0xff]   ;;  %v8046_v55 = vld [vmem:[#allocation10 + $0x90] ss:$8 sps:$4 sm:$0xff]   ;;  %v8054_v56 = vld [vmem:[#allocation10 + $0xa4] ss:$8 sps:$4 sm:$0xff]  }
 0x377   : > { %v1815_v37 = vsel %vm1813_vm10, %v1812_v12, %v1791_v8  ;;  %v1817_v18 = vsel %vm820_vm5, %v1814_v16, %v1794_v13  ;;  %v8052_v57 = vld [vmem:[#allocation10 + $0xa0] ss:$8 sps:$4 sm:$0xff]   ;;  %v8060_v58 = vld [vmem:[#allocation10 + $0xb4] ss:$8 sps:$4 sm:$0xff]   ;;  %v8058_v59 = vld [vmem:[#allocation10 + $0xb0] ss:$8 sps:$4 sm:$0xff]  }
 0x378   : > { %v1818_v17 = vsel %vm820_vm5, %v1815_v37, %v1795_v11  ;;  %v1819_v21 = vpack.c.bf16 %v1817_v18, %v1817_v18  ;;  %v7971_v28 = vld [vmem:[#allocation9 + $0x100] ss:$8 sps:$4 sm:$0xff]   ;;  %v8094_v16 = vld [vmem:[#allocation10 + $0x210] ss:$8 sps:$4 sm:$0xff]  }
 0x379   : > { %v1820_v19 = vpack.c.bf16 %v1818_v17, %v1818_v17  ;;  %v7947_v17 = vld [vmem:[#allocation9 + $0x80] ss:$8 sps:$4 sm:$0xff]  }
 0x37b   : > { %1949 = vmatprep.mubr.bf16.mxu1 %v1820_v19  ;;  %2085 = vmatprep.mubr.bf16.mxu0 %v1820_v19  ;;  %v7952_v19 = vld [vmem:[#allocation9 + $0x94] ss:$8 sps:$4 sm:$0xff]  }
 0x37c   : > { %1950 = vmatmul.mubr.bf16.vlgmr.msra.gmra.mrb[4].mxu1 %v1819_v21  ;;  %2086 = vmatmul.mubr.bf16.vlgmr.msra.gmra.mrb[4].mxu0 %v1819_v21  ;;  %v7950_v21 = vld [vmem:[#allocation9 + $0x90] ss:$8 sps:$4 sm:$0xff]  }
 0x37d   : > { %2205 = vmatpush1.bf16.msra.mxu0 %v7923_v20  ;;  %2236 = vmatprep.mubr.bf16.mxu0 %v8965_v0 }
 0x37e   : > { %2206 = vmatprep.subr.bf16.mxu0 %v7928_v22  ;;  %2763 = vmatpush1.bf16.msra.mxu1 %v7995_v39  ;;  %v7955_v22 = vld [vmem:[#allocation9 + $0xa4] ss:$8 sps:$4 sm:$0xff]  }
 0x37f   : > { %2764 = vmatprep.subr.bf16.mxu1 %v8000_v40 }
 0x381   : > { %2207 = vmatpush1.bf16.msra.mxu0 %v7926_v23  ;;  %v7953_v23 = vld [vmem:[#allocation9 + $0xa0] ss:$8 sps:$4 sm:$0xff]  }
 0x382   : > { %2208 = vmatprep.subr.bf16.mxu0 %v7931_v24  ;;  %2765 = vmatpush1.bf16.msra.mxu1 %v7998_v41  ;;  %v7958_v24 = vld [vmem:[#allocation9 + $0xb4] ss:$8 sps:$4 sm:$0xff]  }
 0x383   : > { %2766 = vmatprep.subr.bf16.mxu1 %v8006_v42  ;;  %v7976_v41 = vld [vmem:[#allocation9 + $0x114] ss:$8 sps:$4 sm:$0xff]   ;;  %v7974_v42 = vld [vmem:[#allocation9 + $0x110] ss:$8 sps:$4 sm:$0xff]  }
 0x385   : > { %2209 = vmatpush1.bf16.msra.mxu0 %v7929_v26  ;;  %v7956_v26 = vld [vmem:[#allocation9 + $0xb0] ss:$8 sps:$4 sm:$0xff]  }
 0x386   : > { %2210 = vmatprep.subr.bf16.mxu0 %v7934_v27  ;;  %2767 = vmatpush1.bf16.msra.mxu1 %v8004_v43  ;;  %v7961_v27 = vld [vmem:[#allocation9 + $0xc4] ss:$8 sps:$4 sm:$0xff]  }
 0x387   : > { %2768 = vmatprep.subr.bf16.mxu1 %v8012_v62  ;;  %v7979_v43 = vld [vmem:[#allocation9 + $0x124] ss:$8 sps:$4 sm:$0xff]   ;;  %v7977_v62 = vld [vmem:[#allocation9 + $0x120] ss:$8 sps:$4 sm:$0xff]  }
 0x389   : > { %2211 = vmatpush1.bf16.msra.mxu0 %v7932_v29  ;;  %v7959_v29 = vld [vmem:[#allocation9 + $0xc0] ss:$8 sps:$4 sm:$0xff]  }
 0x38a   : > { %2212 = vmatprep.subr.bf16.mxu0 %v7937_v30  ;;  %2769 = vmatpush1.bf16.msra.mxu1 %v8010_v1  ;;  %v7964_v30 = vld [vmem:[#allocation9 + $0xd4] ss:$8 sps:$4 sm:$0xff]  }
 0x38b   : > { %2770 = vmatprep.subr.bf16.mxu1 %v8018_v44  ;;  %v7982_v1 = vld [vmem:[#allocation9 + $0x134] ss:$8 sps:$4 sm:$0xff]   ;;  %v7980_v44 = vld [vmem:[#allocation9 + $0x130] ss:$8 sps:$4 sm:$0xff]  }
 0x38d   : > { %2213 = vmatpush1.bf16.msra.mxu0 %v7935_v33  ;;  %v7962_v33 = vld [vmem:[#allocation9 + $0xd0] ss:$8 sps:$4 sm:$0xff]  }
 0x38e   : > { %2214 = vmatprep.subr.bf16.mxu0 %v7940_v34  ;;  %2771 = vmatpush1.bf16.msra.mxu1 %v8016_v45  ;;  %v7967_v34 = vld [vmem:[#allocation9 + $0xe4] ss:$8 sps:$4 sm:$0xff]  }
 0x38f   : > { %2772 = vmatprep.subr.bf16.mxu1 %v8024_v46  ;;  %v7985_v45 = vld [vmem:[#allocation9 + $0x144] ss:$8 sps:$4 sm:$0xff]   ;;  %v7983_v46 = vld [vmem:[#allocation9 + $0x140] ss:$8 sps:$4 sm:$0xff]  }
 0x391   : > { %2215 = vmatpush1.bf16.msra.mxu0 %v7938_v31  ;;  %v7965_v31 = vld [vmem:[#allocation9 + $0xe0] ss:$8 sps:$4 sm:$0xff]  }
 0x392   : > { %2216 = vmatprep.subr.bf16.mxu0 %v7943_v25  ;;  %2773 = vmatpush1.bf16.msra.mxu1 %v8022_v47  ;;  %v7988_v47 = vld [vmem:[#allocation9 + $0x154] ss:$8 sps:$4 sm:$0xff]  }
 0x393   : > { %2774 = vmatprep.subr.bf16.mxu1 %v8030_v48  ;;  %v7986_v48 = vld [vmem:[#allocation9 + $0x150] ss:$8 sps:$4 sm:$0xff]  }
 0x395   : > { %2217 = vmatpush1.bf16.msra.mxu0 %v7941_v35  ;;  %v7970_v35 = vld [vmem:[#allocation9 + $0xf4] ss:$8 sps:$4 sm:$0xff]  }
 0x396   : > { %2218 = vmatprep.subr.bf16.mxu0 %v7946_v32  ;;  %2775 = vmatpush1.bf16.msra.mxu1 %v8028_v49  ;;  %v7991_v49 = vld [vmem:[#allocation9 + $0x164] ss:$8 sps:$4 sm:$0xff]  }
 0x397   : > { %2776 = vmatprep.subr.bf16.mxu1 %v8036_v50  ;;  %v7989_v50 = vld [vmem:[#allocation9 + $0x160] ss:$8 sps:$4 sm:$0xff]  }
 0x399   : > { %2219 = vmatpush1.bf16.msra.mxu0 %v7944_v36  ;;  %v7968_v36 = vld [vmem:[#allocation9 + $0xf0] ss:$8 sps:$4 sm:$0xff]  }
 0x39a   : > { %2360 = vmatprep.subr.bf16.mxu0 %v7949_v38  ;;  %2777 = vmatpush1.bf16.msra.mxu1 %v8034_v51  ;;  %v7973_v38 = vld [vmem:[#allocation9 + $0x104] ss:$8 sps:$4 sm:$0xff]   ;;  %v7994_v51 = vld [vmem:[#allocation9 + $0x174] ss:$8 sps:$4 sm:$0xff]  }
 0x39b   : > { %2778 = vmatprep.subr.bf16.mxu1 %v8042_v52  ;;  %v7992_v52 = vld [vmem:[#allocation9 + $0x170] ss:$8 sps:$4 sm:$0xff]  }
 0x39e   : > { %2779 = vmatpush1.bf16.msra.mxu1 %v8040_v53  ;;  %v8003_v53 = vld [vmem:[#allocation10 + $0x104] ss:$8 sps:$4 sm:$0xff]  }
 0x39f   : > { %2780 = vmatprep.subr.bf16.mxu1 %v8048_v54  ;;  %v8001_v54 = vld [vmem:[#allocation10 + $0x100] ss:$8 sps:$4 sm:$0xff]  }
 0x3a2   : > { %2781 = vmatpush1.bf16.msra.mxu1 %v8046_v55 }
 0x3a3   : > { %2782 = vmatprep.subr.bf16.mxu1 %v8054_v56  ;;  %v8009_v56 = vld [vmem:[#allocation10 + $0x114] ss:$8 sps:$4 sm:$0xff]  }
 0x3a6   : > { %2783 = vmatpush1.bf16.msra.mxu1 %v8052_v57  ;;  %v8007_v57 = vld [vmem:[#allocation10 + $0x110] ss:$8 sps:$4 sm:$0xff]  }
 0x3a7   : > { %2784 = vmatprep.subr.bf16.mxu1 %v8060_v58  ;;  %v8015_v58 = vld [vmem:[#allocation10 + $0x124] ss:$8 sps:$4 sm:$0xff]  }
 0x3aa   : > { %2785 = vmatpush1.bf16.msra.mxu1 %v8058_v59  ;;  %v8013_v59 = vld [vmem:[#allocation10 + $0x120] ss:$8 sps:$4 sm:$0xff]  }
 0x44f   : > { %v7426_v60 = vpop.f32.mrb[4].mxu1  ;;  %v7448_v63 = vpop.f32.mrb[4].mxu0 }
 0x450   : > { %v7427_v2 = vpop.f32.mrb[5].mxu1  ;;  %v7449_v3 = vpop.f32.mrb[5].mxu0 }
 0x451   : > { %v7428_v4 = vadd.f32 %v7427_v2, %v7426_v60  ;;  %v7450_v5 = vadd.f32 %v7449_v3, %v7448_v63  ;;  %v7429_v6 = vpop.f32.mrb[6].mxu1  ;;  %v7451_v7 = vpop.f32.mrb[6].mxu0  ;;  %v8021_v60 = vld [vmem:[#allocation10 + $0x134] ss:$8 sps:$4 sm:$0xff]   ;;  %v8019_v63 = vld [vmem:[#allocation10 + $0x130] ss:$8 sps:$4 sm:$0xff]  }
 0x452   : > { %v7430_v8 = vpop.f32.mrb[7].mxu1  ;;  %v7452_v9 = vpop.f32.mrb[7].mxu0  ;;  %v8027_v2 = vld [vmem:[#allocation10 + $0x144] ss:$8 sps:$4 sm:$0xff]   ;;  %v8025_v3 = vld [vmem:[#allocation10 + $0x140] ss:$8 sps:$4 sm:$0xff]  }
 0x453   : > { %v2093_v10 = vmax.f32 %v7428_v4, %v7450_v5  ;;  %v8033_v4 = vld [vmem:[#allocation10 + $0x154] ss:$8 sps:$4 sm:$0xff]   ;;  %v8031_v5 = vld [vmem:[#allocation10 + $0x150] ss:$8 sps:$4 sm:$0xff]   ;;  %v8039_v6 = vld [vmem:[#allocation10 + $0x164] ss:$8 sps:$4 sm:$0xff]  }
 0x454   : > { %v8037_v7 = vld [vmem:[#allocation10 + $0x160] ss:$8 sps:$4 sm:$0xff]   ;;  %v8045_v8 = vld [vmem:[#allocation10 + $0x174] ss:$8 sps:$4 sm:$0xff]   ;;  %v8043_v9 = vld [vmem:[#allocation10 + $0x170] ss:$8 sps:$4 sm:$0xff]  }
 0x455   : > { %v2094_v11 = vpack.c.bf16 %v2093_v10, %v2093_v10  ;;  %v8051_v10 = vld [vmem:[#allocation10 + $0x184] ss:$8 sps:$4 sm:$0xff]  }
 0x457   : > { %v2096_v12 = vshrl.u32 %v2094_v11, 16  ;;  %v2099_v15 = vshll.u32 %v2094_v11, 16  ;;  %v8049_v11 = vld [vmem:[#allocation10 + $0x180] ss:$8 sps:$4 sm:$0xff]  }
 0x459   : > { %v2098_v13 = vrot.slane %v2096_v12, 7  ;;  %v8057_v12 = vld [vmem:[#allocation10 + $0x194] ss:$8 sps:$4 sm:$0xff]  }
 0x45b   : > { %v2101_v37 = vor.u32 %v2099_v15, %v2098_v13  ;;  %v8055_v13 = vld [vmem:[#allocation10 + $0x190] ss:$8 sps:$4 sm:$0xff]   ;;  %v8063_v15 = vld [vmem:[#allocation10 + $0x1a4] ss:$8 sps:$4 sm:$0xff]  }
 0x45d   : > { %v2103_v18 = vsel %vm9354_vm2, 0, %v2101_v37  ;;  %v8061_v37 = vld [vmem:[#allocation10 + $0x1a0] ss:$8 sps:$4 sm:$0xff]  }
 0x45e   : > { %v9440_v20 = vsel %vm9432_vm12, %v2103_v18, 0  ;;  %v8064_v18 = vld [vmem:[#allocation10 + $0xc0] ss:$8 sps:$4 sm:$0xff]  }
 0x45f   : > { %2237 = vmatmul.mubr.bf16.vlgmr.msra.gmra.mrb[8].mxu0 %v9440_v20  ;;  %v2275_v25 = vshll.u32 %v9440_v20, 16  ;;  %v2273_v39 = vshrl.u32 %v9440_v20, 16  ;;  %v2421_v55 = vrot.slane %v9440_v20, 1  ;;  %v8067_v20 = vld [vmem:[#allocation10 + $0x1b0] ss:$8 sps:$4 sm:$0xff]  }
 0x460   : > { %2361 = vmatpush1.bf16.msra.mxu0 %v7947_v17  ;;  %2392 = vmatprep.mubr.bf16.mxu0 %v8965_v0  ;;  %v8066_v17 = vld [vmem:[#allocation10 + $0xc4] ss:$8 sps:$4 sm:$0xff]  }
 0x461   : > { %2362 = vmatprep.subr.bf16.mxu0 %v7952_v19  ;;  %v2277_v32 = vrot.slane %v2275_v25, 1  ;;  %v8069_v19 = vld [vmem:[#allocation10 + $0x1b4] ss:$8 sps:$4 sm:$0xff]   ;;  %2786 = vmatprep.subr.bf16.mxu1 %v8066_v17  ;;  %v8087_v25 = vld [vmem:[#allocation10 + $0x1e4] ss:$8 sps:$4 sm:$0xff]  }
 0x462   : > { %2787 = vmatpush1.bf16.msra.mxu1 %v8064_v18  ;;  %v8100_v17 = vld [vmem:[#allocation10 + $0x230] ss:$8 sps:$4 sm:$0xff]   ;;  %v8105_v18 = vld [vmem:[#allocation10 + $0x244] ss:$8 sps:$4 sm:$0xff]  }
 0x463   : > { %v2278_v40 = vor.u32 %v2277_v32, %v2273_v39  ;;  %v8093_v32 = vld [vmem:[#allocation10 + $0x204] ss:$8 sps:$4 sm:$0xff]  }
 0x464   : > { %2363 = vmatpush1.bf16.msra.mxu0 %v7950_v21  ;;  %v8072_v21 = vld [vmem:[#allocation10 + $0xd4] ss:$8 sps:$4 sm:$0xff]   ;;  %v9449_v39 = vld [vmem:[#allocation2] sm:$0xff] }
 0x465   : > { %2364 = vmatprep.subr.bf16.mxu0 %v7955_v22  ;;  %v8070_v22 = vld [vmem:[#allocation10 + $0xd0] ss:$8 sps:$4 sm:$0xff]   ;;  %2788 = vmatprep.subr.bf16.mxu1 %v8072_v21 }
 0x466   : > { %2789 = vmatpush1.bf16.msra.mxu1 %v8070_v22  ;;  %v8106_v21 = vld [vmem:[#allocation10 + $0x250] ss:$8 sps:$4 sm:$0xff]   ;;  %v8111_v22 = vld [vmem:[#allocation10 + $0x264] ss:$8 sps:$4 sm:$0xff]  }
 0x468   : > { %2365 = vmatpush1.bf16.msra.mxu0 %v7953_v23  ;;  %v8075_v23 = vld [vmem:[#allocation10 + $0x1c4] ss:$8 sps:$4 sm:$0xff]  }
 0x469   : > { %2366 = vmatprep.subr.bf16.mxu0 %v7958_v24  ;;  %v8073_v24 = vld [vmem:[#allocation10 + $0x1c0] ss:$8 sps:$4 sm:$0xff]  }
 0x46c   : > { %2367 = vmatpush1.bf16.msra.mxu0 %v7956_v26  ;;  %v8078_v26 = vld [vmem:[#allocation10 + $0xe4] ss:$8 sps:$4 sm:$0xff]  }
 0x46d   : > { %2368 = vmatprep.subr.bf16.mxu0 %v7961_v27  ;;  %v8076_v27 = vld [vmem:[#allocation10 + $0xe0] ss:$8 sps:$4 sm:$0xff]   ;;  %2790 = vmatprep.subr.bf16.mxu1 %v8078_v26  ;;  %v8112_v26 = vld [vmem:[#allocation10 + $0x270] ss:$8 sps:$4 sm:$0xff]  }
 0x46e   : > { %2791 = vmatpush1.bf16.msra.mxu1 %v8076_v27  ;;  %v8117_v27 = vld [vmem:[#allocation10 + $0x284] ss:$8 sps:$4 sm:$0xff]  }
 0x470   : > { %2369 = vmatpush1.bf16.msra.mxu0 %v7959_v29  ;;  %v8081_v29 = vld [vmem:[#allocation10 + $0x1d4] ss:$8 sps:$4 sm:$0xff]  }
 0x471   : > { %2370 = vmatprep.subr.bf16.mxu0 %v7964_v30  ;;  %v8079_v30 = vld [vmem:[#allocation10 + $0x1d0] ss:$8 sps:$4 sm:$0xff]  }
 0x474   : > { %2371 = vmatpush1.bf16.msra.mxu0 %v7962_v33  ;;  %v8082_v33 = vld [vmem:[#allocation10 + $0xf0] ss:$8 sps:$4 sm:$0xff]  }
 0x475   : > { %2372 = vmatprep.subr.bf16.mxu0 %v7967_v34  ;;  %v8084_v34 = vld [vmem:[#allocation10 + $0xf4] ss:$8 sps:$4 sm:$0xff]  }
 0x476   : > { %2792 = vmatprep.subr.bf16.mxu1 %v8084_v34  ;;  %v8123_v34 = vld [vmem:[#allocation10 + $0x2a4] ss:$8 sps:$4 sm:$0xff]  }
 0x477   : > { %2793 = vmatpush1.bf16.msra.mxu1 %v8082_v33  ;;  %v8118_v33 = vld [vmem:[#allocation10 + $0x290] ss:$8 sps:$4 sm:$0xff]  }
 0x478   : > { %2373 = vmatpush1.bf16.msra.mxu0 %v7965_v31  ;;  %v8085_v31 = vld [vmem:[#allocation10 + $0x1e0] ss:$8 sps:$4 sm:$0xff]  }
 0x479   : > { %2374 = vmatprep.subr.bf16.mxu0 %v7970_v35  ;;  %v8088_v35 = vld [vmem:[#allocation10 + $0x1f0] ss:$8 sps:$4 sm:$0xff]  }
 0x47c   : > { %2375 = vmatpush1.bf16.msra.mxu0 %v7968_v36  ;;  %v8090_v36 = vld [vmem:[#allocation10 + $0x1f4] ss:$8 sps:$4 sm:$0xff]  }
 0x47d   : > { %2503 = vmatprep.subr.bf16.mxu0 %v7973_v38  ;;  %v2247_v38 = vsub.s32 2, %v9369_v61 }
 0x47f   : > { %2393 = vmatmul.mubr.bf16.vlgmr.msra.gmra.mrb[8].mxu0 %v2278_v40  ;;  %v9452_v40 = vld [vmem:[#allocation2 + $0x8] sm:$0xff] }
 0x480   : > { %2504 = vmatpush1.bf16.msra.mxu0 %v7971_v28  ;;  %2535 = vmatprep.mubr.bf16.mxu0 %v8965_v0  ;;  %v2248_v28 = vrot.slane %v9449_v39, %v2247_v38 }
 0x481   : > { %2505 = vmatprep.subr.bf16.mxu0 %v7976_v41  ;;  %v2252_v41 = vrot.slane %v9452_v40, %v2247_v38  ;;  %v8132_v38 = vld [vmem:[#allocation10 + $0x2d4] ss:$8 sps:$4 sm:$0xff]  }
 0x484   : > { %2506 = vmatpush1.bf16.msra.mxu0 %v7974_v42 }
 0x485   : > { %2507 = vmatprep.subr.bf16.mxu0 %v7979_v43 }
 0x488   : > { %2508 = vmatpush1.bf16.msra.mxu0 %v7977_v62 }
 0x489   : > { %2509 = vmatprep.subr.bf16.mxu0 %v7982_v1 }
 0x48c   : > { %2510 = vmatpush1.bf16.msra.mxu0 %v7980_v44 }
 0x48d   : > { %2511 = vmatprep.subr.bf16.mxu0 %v7985_v45 }
 0x490   : > { %2512 = vmatpush1.bf16.msra.mxu0 %v7983_v46 }
 0x491   : > { %2513 = vmatprep.subr.bf16.mxu0 %v7988_v47 }
 0x494   : > { %2514 = vmatpush1.bf16.msra.mxu0 %v7986_v48 }
 0x495   : > { %2515 = vmatprep.subr.bf16.mxu0 %v7991_v49 }
 0x498   : > { %2516 = vmatpush1.bf16.msra.mxu0 %v7989_v50 }
 0x499   : > { %2517 = vmatprep.subr.bf16.mxu0 %v7994_v51 }
 0x49c   : > { %2518 = vmatpush1.bf16.msra.mxu0 %v7992_v52 }
 0x49d   : > { %3022 = vmatprep.subr.bf16.mxu0 %v8003_v53 }
 0x49f   : > { %2536 = vmatmul.mubr.bf16.vlgmr.msra.gmra.mrb[8].mxu0 %v2421_v55 }
 0x4a0   : > { %3023 = vmatpush1.bf16.msra.mxu0 %v8001_v54 }
 0x4a1   : > { %3024 = vmatprep.subr.bf16.mxu0 %v8009_v56 }
 0x4a4   : > { %3025 = vmatpush1.bf16.msra.mxu0 %v8007_v57 }
 0x4a5   : > { %3026 = vmatprep.subr.bf16.mxu0 %v8015_v58 }
 0x4a8   : > { %3027 = vmatpush1.bf16.msra.mxu0 %v8013_v59 }
 0x4a9   : > { %3028 = vmatprep.subr.bf16.mxu0 %v8021_v60 }
 0x4ac   : > { %3029 = vmatpush1.bf16.msra.mxu0 %v8019_v63 }
 0x4ad   : > { %3030 = vmatprep.subr.bf16.mxu0 %v8027_v2 }
 0x4b0   : > { %3031 = vmatpush1.bf16.msra.mxu0 %v8025_v3 }
 0x4b1   : > { %3032 = vmatprep.subr.bf16.mxu0 %v8033_v4 }
 0x4b4   : > { %3033 = vmatpush1.bf16.msra.mxu0 %v8031_v5 }
 0x4b5   : > { %3034 = vmatprep.subr.bf16.mxu0 %v8039_v6 }
 0x4b8   : > { %3035 = vmatpush1.bf16.msra.mxu0 %v8037_v7 }
 0x4b9   : > { %3036 = vmatprep.subr.bf16.mxu0 %v8045_v8 }
 0x4bc   : > { %3037 = vmatpush1.bf16.msra.mxu0 %v8043_v9  ;;  %v8091_v9 = vld [vmem:[#allocation10 + $0x200] ss:$8 sps:$4 sm:$0xff]  }
 0x4bd   : > { %3038 = vmatprep.subr.bf16.mxu0 %v8051_v10 }
 0x4c0   : > { %3039 = vmatpush1.bf16.msra.mxu0 %v8049_v11  ;;  %v8096_v11 = vld [vmem:[#allocation10 + $0x214] ss:$8 sps:$4 sm:$0xff]  }
 0x4c1   : > { %3040 = vmatprep.subr.bf16.mxu0 %v8057_v12 }
 0x4c4   : > { %3041 = vmatpush1.bf16.msra.mxu0 %v8055_v13  ;;  %v8099_v13 = vld [vmem:[#allocation10 + $0x224] ss:$8 sps:$4 sm:$0xff]  }
 0x4c5   : > { %3042 = vmatprep.subr.bf16.mxu0 %v8063_v15  ;;  %v8097_v15 = vld [vmem:[#allocation10 + $0x220] ss:$8 sps:$4 sm:$0xff]  }
 0x4c8   : > { %3043 = vmatpush1.bf16.msra.mxu0 %v8061_v37  ;;  %v8102_v37 = vld [vmem:[#allocation10 + $0x234] ss:$8 sps:$4 sm:$0xff]  }
 0x4c9   : > { %3044 = vmatprep.subr.bf16.mxu0 %v8069_v19  ;;  %v8103_v19 = vld [vmem:[#allocation10 + $0x240] ss:$8 sps:$4 sm:$0xff]  }
 0x4cc   : > { %3045 = vmatpush1.bf16.msra.mxu0 %v8067_v20  ;;  %v8108_v20 = vld [vmem:[#allocation10 + $0x254] ss:$8 sps:$4 sm:$0xff]  }
 0x4cd   : > { %3046 = vmatprep.subr.bf16.mxu0 %v8075_v23  ;;  %v8109_v23 = vld [vmem:[#allocation10 + $0x260] ss:$8 sps:$4 sm:$0xff]  }
 0x4d0   : > { %3047 = vmatpush1.bf16.msra.mxu0 %v8073_v24  ;;  %v8114_v24 = vld [vmem:[#allocation10 + $0x274] ss:$8 sps:$4 sm:$0xff]  }
 0x4d1   : > { %3048 = vmatprep.subr.bf16.mxu0 %v8081_v29  ;;  %v8115_v29 = vld [vmem:[#allocation10 + $0x280] ss:$8 sps:$4 sm:$0xff]  }
 0x4d4   : > { %3049 = vmatpush1.bf16.msra.mxu0 %v8079_v30  ;;  %v8120_v30 = vld [vmem:[#allocation10 + $0x294] ss:$8 sps:$4 sm:$0xff]  }
 0x4d5   : > { %3050 = vmatprep.subr.bf16.mxu0 %v8087_v25  ;;  %v8126_v25 = vld [vmem:[#allocation10 + $0x2b4] ss:$8 sps:$4 sm:$0xff]  }
 0x4d8   : > { %3051 = vmatpush1.bf16.msra.mxu0 %v8085_v31  ;;  %v8121_v31 = vld [vmem:[#allocation10 + $0x2a0] ss:$8 sps:$4 sm:$0xff]  }
 0x4d9   : > { %3052 = vmatprep.subr.bf16.mxu0 %v8090_v36  ;;  %v8129_v36 = vld [vmem:[#allocation10 + $0x2c4] ss:$8 sps:$4 sm:$0xff]  }
 0x4dc   : > { %3053 = vmatpush1.bf16.msra.mxu0 %v8088_v35  ;;  %v8124_v35 = vld [vmem:[#allocation10 + $0x2b0] ss:$8 sps:$4 sm:$0xff]  }
 0x4dd   : > { %3264 = vmatprep.subr.bf16.mxu0 %v8093_v32  ;;  %v8127_v32 = vld [vmem:[#allocation10 + $0x2c0] ss:$8 sps:$4 sm:$0xff]  }
 0x572   : > { %v2537_v42 = vpop.f32.mrb[8].mxu0 }
 0x573   : > { %v7550_v43 = vadd.f32 %v2537_v42, %v2248_v28  ;;  %v2539_v62 = vpop.f32.mrb[9].mxu0  ;;  %v8130_v28 = vld [vmem:[#allocation10 + $0x2d0] ss:$8 sps:$4 sm:$0xff]   ;;  %v8133_v42 = vld [vmem:[#allocation10 + $0x2e0] ss:$8 sps:$4 sm:$0xff]  }
 0x574   : > { %v7551_v1 = vadd.f32 %v2539_v62, %v2252_v41  ;;  %v2541_v44 = vpop.f32.mrb[10].mxu0  ;;  %v8135_v41 = vld [vmem:[#allocation10 + $0x2e4] ss:$8 sps:$4 sm:$0xff]   ;;  %v8136_v62 = vld [vmem:[#allocation10 + $0x2f0] ss:$8 sps:$4 sm:$0xff]  }
 0x575   : > { %v2546_v45 = vmax.f32 %v7550_v43, 0.0  ;;  %v2542_v46 = vpop.f32.mrb[11].mxu0  ;;  %v8138_v43 = vld [vmem:[#allocation10 + $0x2f4] ss:$8 sps:$4 sm:$0xff]  }
 0x576   : > { %v2547_v47 = vmax.f32 %v7551_v1, 0.0  ;;  %v8139_v44 = vld [vmem:[#allocation4 + $0x140] sm:$0xff]   ;;  %v8141_v46 = vld [vmem:[#allocation4 + $0x148] sm:$0xff]  }
 0x577   : > { %v2548_v48 = vpack.c.bf16 %v2546_v45, %v2546_v45  ;;  %v8140_v45 = vld [vmem:[#allocation4 + $0x100] sm:$0xff]   ;;  %7454 = vmatprep.subr.bf16.mxu1 %v8139_v44 }
 0x578   : > { %v2549_v49 = vpack.c.bf16 %v2547_v47, %v2547_v47  ;;  %v8142_v47 = vld [vmem:[#allocation4 + $0x108] sm:$0xff]   ;;  %v8163_v44 = vld [vmem:[#allocation4 + $0x1e0] sm:$0xff]  }
 0x579   : > { %v2551_v50 = vshrl.u32 %v2548_v48, 16  ;;  %v2554_v53 = vshll.u32 %v2548_v48, 16  ;;  %v8143_v48 = vld [vmem:[#allocation4 + $0x150] sm:$0xff]  }
 0x57a   : > { %v2558_v51 = vshrl.u32 %v2549_v49, 16  ;;  %v2561_v55 = vshll.u32 %v2549_v49, 16  ;;  %v8144_v49 = vld [vmem:[#allocation4 + $0x110] sm:$0xff]  }
 0x57b   : > { %v2553_v52 = vrot.slane %v2551_v50, 7  ;;  %v8145_v50 = vld [vmem:[#allocation4 + $0x158] sm:$0xff]  }
 0x57c   : > { %v2560_v54 = vrot.slane %v2558_v51, 7  ;;  %v8146_v51 = vld [vmem:[#allocation4 + $0x118] sm:$0xff]  }
 0x57d   : > { %v2556_v56 = vor.u32 %v2554_v53, %v2553_v52  ;;  %v8147_v52 = vld [vmem:[#allocation4 + $0x160] sm:$0xff]  }
 0x57e   : > { %v2563_v57 = vor.u32 %v2561_v55, %v2560_v54  ;;  %v8148_v53 = vld [vmem:[#allocation4 + $0x120] sm:$0xff]   ;;  %v8149_v54 = vld [vmem:[#allocation4 + $0x168] sm:$0xff]  }
 0x57f   : > { %v2566_v58 = vsel %vm9354_vm2, 0, %v2556_v56  ;;  %v8150_v55 = vld [vmem:[#allocation4 + $0x128] sm:$0xff]   ;;  %v8151_v56 = vld [vmem:[#allocation4 + $0x170] sm:$0xff]  }
 0x580   : > { %v2567_v59 = vsel %vm9354_vm2, 0, %v2563_v57  ;;  %v9461_v60 = vsel %vm9432_vm12, %v2566_v58, 0  ;;  %v8152_v57 = vld [vmem:[#allocation4 + $0x130] sm:$0xff]   ;;  %v8153_v58 = vld [vmem:[#allocation4 + $0x178] sm:$0xff]  }
 0x581   : > { %v2569_v63 = vsel %vm9432_vm12, %v2567_v59, 0  ;;  %v2849_v2 = vshll.u32 %v9461_v60, 16  ;;  %v2847_v7 = vshrl.u32 %v9461_v60, 16  ;;  %v3100_v1 = vrot.slane %v9461_v60, 1  ;;  %v8154_v59 = vld [vmem:[#allocation4 + $0x138] sm:$0xff]  }
 0x582   : > { %2794 = vmatprep.mubr.bf16.mxu1 %v2569_v63  ;;  %v2856_v3 = vshll.u32 %v2569_v63, 16  ;;  %v2854_v5 = vshrl.u32 %v2569_v63, 16  ;;  %v3101_v12 = vrot.slane %v2569_v63, 1 }
 0x583   : > { %2795 = vmatmul.mubr.bf16.vlgmr.msra.gmra.mrb[8].mxu1 %v9461_v60  ;;  %v2851_v4 = vrot.slane %v2849_v2, 1  ;;  %v8155_v60 = vld [vmem:[#allocation4 + $0x1c0] sm:$0xff]  }
 0x584   : > { %v2858_v6 = vrot.slane %v2856_v3, 1  ;;  %7455 = vmatpush3.bf16.msra.mxu1 %v8140_v45  ;;  %v8164_v45 = vld [vmem:[#allocation4 + $0x1a0] sm:$0xff]  }
 0x585   : > { %v2852_v10 = vor.u32 %v2851_v4, %v2847_v7  ;;  %7456 = vmatprep.subr.bf16.mxu1 %v8141_v46  ;;  %v8165_v46 = vld [vmem:[#allocation4 + $0x1e8] sm:$0xff]  }
 0x586   : > { %v2859_v8 = vor.u32 %v2858_v6, %v2854_v5  ;;  %v2805_v5 = vsub.s32 3, %v9369_v61 }
 0x588   : > { %3054 = vmatprep.mubr.bf16.mxu0 %v2859_v8  ;;  %7457 = vmatpush3.bf16.msra.mxu1 %v8142_v47  ;;  %v2806_v6 = vrot.slane %v9449_v39, %v2805_v5  ;;  %v2810_v7 = vrot.slane %v9452_v40, %v2805_v5  ;;  %v8166_v47 = vld [vmem:[#allocation4 + $0x1a8] sm:$0xff]   ;;  %v8189_v5 = vld [vmem:[#allocation12 + $0x60] ss:$8 sps:$4 sm:$0xff]  }
 0x589   : > { %3055 = vmatmul.mubr.bf16.vlgmr.msra.gmra.mrb[12].mxu0 %v2852_v10  ;;  %7458 = vmatprep.subr.bf16.mxu1 %v8143_v48  ;;  %v8167_v48 = vld [vmem:[#allocation4 + $0x1f0] sm:$0xff]  }
 0x58a   : > { %3265 = vmatpush1.bf16.msra.mxu0 %v8091_v9  ;;  %3296 = vmatprep.mubr.bf16.mxu0 %v3101_v12 }
 0x58b   : > { %3266 = vmatprep.subr.bf16.mxu0 %v8096_v11 }
 0x58c   : > { %7459 = vmatpush3.bf16.msra.mxu1 %v8144_v49  ;;  %v8168_v49 = vld [vmem:[#allocation4 + $0x1b0] sm:$0xff]  }
 0x58d   : > { %7460 = vmatprep.subr.bf16.mxu1 %v8145_v50  ;;  %v8169_v50 = vld [vmem:[#allocation4 + $0x1f8] sm:$0xff]  }
 0x58e   : > { %3267 = vmatpush1.bf16.msra.mxu0 %v8094_v16 }
 0x58f   : > { %3268 = vmatprep.subr.bf16.mxu0 %v8099_v13 }
 0x590   : > { %7461 = vmatpush3.bf16.msra.mxu1 %v8146_v51  ;;  %v8170_v51 = vld [vmem:[#allocation4 + $0x1b8] sm:$0xff]  }
 0x591   : > { %7462 = vmatprep.subr.bf16.mxu1 %v8147_v52  ;;  %v8171_v52 = vld [vmem:[#allocation12] ss:$8 sps:$4 sm:$0xff]  }
 0x592   : > { %3269 = vmatpush1.bf16.msra.mxu0 %v8097_v15 }
 0x593   : > { %3270 = vmatprep.subr.bf16.mxu0 %v8102_v37 }
 0x594   : > { %7463 = vmatpush3.bf16.msra.mxu1 %v8148_v53  ;;  %v8173_v53 = vld [vmem:[#allocation12 + $0x4] ss:$8 sps:$4 sm:$0xff]  }
 0x595   : > { %7464 = vmatprep.subr.bf16.mxu1 %v8149_v54  ;;  %v8176_v54 = vld [vmem:[#allocation12 + $0x14] ss:$8 sps:$4 sm:$0xff]  }
 0x596   : > { %3271 = vmatpush1.bf16.msra.mxu0 %v8100_v17 }
 0x597   : > { %3272 = vmatprep.subr.bf16.mxu0 %v8105_v18 }
 0x598   : > { %7465 = vmatpush3.bf16.msra.mxu1 %v8150_v55  ;;  %v8174_v55 = vld [vmem:[#allocation12 + $0x10] ss:$8 sps:$4 sm:$0xff]  }
 0x599   : > { %7466 = vmatprep.subr.bf16.mxu1 %v8151_v56  ;;  %v8179_v56 = vld [vmem:[#allocation12 + $0x24] ss:$8 sps:$4 sm:$0xff]  }
 0x59a   : > { %3273 = vmatpush1.bf16.msra.mxu0 %v8103_v19 }
 0x59b   : > { %3274 = vmatprep.subr.bf16.mxu0 %v8108_v20 }
 0x59c   : > { %7467 = vmatpush3.bf16.msra.mxu1 %v8152_v57  ;;  %v8177_v57 = vld [vmem:[#allocation12 + $0x20] ss:$8 sps:$4 sm:$0xff]  }
 0x59d   : > { %7468 = vmatprep.subr.bf16.mxu1 %v8153_v58  ;;  %v8182_v58 = vld [vmem:[#allocation12 + $0x34] ss:$8 sps:$4 sm:$0xff]  }
 0x59e   : > { %3275 = vmatpush1.bf16.msra.mxu0 %v8106_v21 }
 0x59f   : > { %3276 = vmatprep.subr.bf16.mxu0 %v8111_v22 }
 0x5a0   : > { %7469 = vmatpush3.bf16.msra.mxu1 %v8154_v59  ;;  %v8180_v59 = vld [vmem:[#allocation12 + $0x30] ss:$8 sps:$4 sm:$0xff]  }
 0x5a1   : > { %7476 = vmatprep.subr.bf16.mxu1 %v8155_v60  ;;  %v8185_v60 = vld [vmem:[#allocation12 + $0x44] ss:$8 sps:$4 sm:$0xff]  }
 0x5a2   : > { %3277 = vmatpush1.bf16.msra.mxu0 %v8109_v23 }
 0x5a3   : > { %3278 = vmatprep.subr.bf16.mxu0 %v8114_v24 }
 0x5a6   : > { %3279 = vmatpush1.bf16.msra.mxu0 %v8112_v26 }
 0x5a7   : > { %3280 = vmatprep.subr.bf16.mxu0 %v8117_v27 }
 0x5aa   : > { %3281 = vmatpush1.bf16.msra.mxu0 %v8115_v29 }
 0x5ab   : > { %3282 = vmatprep.subr.bf16.mxu0 %v8120_v30 }
 0x5ae   : > { %3283 = vmatpush1.bf16.msra.mxu0 %v8118_v33 }
 0x5af   : > { %3284 = vmatprep.subr.bf16.mxu0 %v8123_v34 }
 0x5b2   : > { %3285 = vmatpush1.bf16.msra.mxu0 %v8121_v31 }
 0x5b3   : > { %3286 = vmatprep.subr.bf16.mxu0 %v8126_v25 }
 0x5b6   : > { %3287 = vmatpush1.bf16.msra.mxu0 %v8124_v35 }
 0x5b7   : > { %3288 = vmatprep.subr.bf16.mxu0 %v8129_v36 }
 0x5ba   : > { %3289 = vmatpush1.bf16.msra.mxu0 %v8127_v32  ;;  %v8156_v32 = vld [vmem:[#allocation4 + $0x180] sm:$0xff]  }
 0x5bb   : > { %3290 = vmatprep.subr.bf16.mxu0 %v8132_v38 }
 0x5be   : > { %3291 = vmatpush1.bf16.msra.mxu0 %v8130_v28  ;;  %v8157_v28 = vld [vmem:[#allocation4 + $0x1c8] sm:$0xff]  }
 0x5bf   : > { %3292 = vmatprep.subr.bf16.mxu0 %v8135_v41  ;;  %v8158_v41 = vld [vmem:[#allocation4 + $0x188] sm:$0xff]  }
 0x5c2   : > { %3293 = vmatpush1.bf16.msra.mxu0 %v8133_v42  ;;  %v8159_v42 = vld [vmem:[#allocation4 + $0x1d0] sm:$0xff]  }
 0x5c3   : > { %3294 = vmatprep.subr.bf16.mxu0 %v8138_v43  ;;  %v8160_v43 = vld [vmem:[#allocation4 + $0x190] sm:$0xff]  }
 0x5c6   : > { %3295 = vmatpush1.bf16.msra.mxu0 %v8136_v62  ;;  %v8161_v62 = vld [vmem:[#allocation4 + $0x1d8] sm:$0xff]  }
 0x5c9   : > { %3297 = vmatmul.mubr.bf16.vlgmr.msra.gmra.mrb[12].mxu0 %v3100_v1  ;;  %v8162_v1 = vld [vmem:[#allocation4 + $0x198] sm:$0xff]  }
 0x656   : > { %v2796_v63 = vpop.f32.mrb[8].mxu1 }
 0x657   : > { %v2798_v2 = vpop.f32.mrb[9].mxu1  ;;  %v2811_v8 = vadd.f32 %v2806_v6, %v2796_v63  ;;  %v8183_v63 = vld [vmem:[#allocation12 + $0x40] ss:$8 sps:$4 sm:$0xff]   ;;  %v8194_v6 = vld [vmem:[#allocation12 + $0x74] ss:$8 sps:$4 sm:$0xff]  }
 0x658   : > { %v2800_v3 = vpop.f32.mrb[10].mxu1  ;;  %v2812_v9 = vadd.f32 %v2810_v7, %v2798_v2  ;;  %v8188_v2 = vld [vmem:[#allocation12 + $0x54] ss:$8 sps:$4 sm:$0xff]   ;;  %v8192_v7 = vld [vmem:[#allocation12 + $0x70] ss:$8 sps:$4 sm:$0xff]  }
 0x659   : > { %v2801_v4 = vpop.f32.mrb[11].mxu1  ;;  %v8186_v3 = vld [vmem:[#allocation12 + $0x50] ss:$8 sps:$4 sm:$0xff]  }
 0x65a   : > { %v8191_v4 = vld [vmem:[#allocation12 + $0x64] ss:$8 sps:$4 sm:$0xff]  }
 0x69c   : > { %v3298_v10 = vpop.f32.mrb[12].mxu0 }
 0x69d   : > { %v7553_v11 = vadd.f32 %v3298_v10, %v2811_v8  ;;  %v3300_v12 = vpop.f32.mrb[13].mxu0  ;;  %v8197_v8 = vld [vmem:[#allocation12 + $0x84] ss:$8 sps:$4 sm:$0xff]  }
 0x69e   : > { %v7555_v16 = vadd.f32 %v3300_v12, %v2812_v9  ;;  %v3302_v13 = vpop.f32.mrb[14].mxu0 }
 0x69f   : > { %v3307_v15 = vmax.f32 %v7553_v11, 0.0  ;;  %v3303_v37 = vpop.f32.mrb[15].mxu0 }
 0x6a0   : > { %v3308_v17 = vmax.f32 %v7555_v16, 0.0 }
 0x6a1   : > { %3309 = vst [vmem:[%s643_s27] sm:$0xff] %v3307_v15  ;;  %v3379_v18 = vrot.slane %v3307_v15, 1 }
 0x6a2   : > { %3310 = vst [vmem:[%s643_s27 + $0x8] sm:$0xff] %v3308_v17  ;;  %v3380_v19 = vrot.slane %v3308_v17, 1 }
 0x6a3   : > { %v3383_v20 = vmax.f32 %v3307_v15, %v3379_v18 }
 0x6a4   : > { %v3384_v21 = vmax.f32 %v3308_v17, %v3380_v19 }
 0x6a5   : > { %v3387_v22 = vrot.slane %v3383_v20, 1  ;;  %v3391_v23 = vrot.slane %v3383_v20, 2  ;;  %v3395_v27 = vrot.slane %v3383_v20, 3 }
 0x6a6   : > { %v3388_v24 = vrot.slane %v3384_v21, 1  ;;  %v3392_v26 = vrot.slane %v3384_v21, 2  ;;  %v3396_v30 = vrot.slane %v3384_v21, 3 }
 0x6a7   : > { %v3399_v29 = vsel %vm664_vm1, %v3383_v20, %v3387_v22 }
 0x6a8   : > { %v3400_v33 = vsel %vm664_vm1, %v3384_v21, %v3388_v24  ;;  %v3401_v34 = vsel %vm1801_vm6, %v3399_v29, %v3391_v23 }
 0x6a9   : > { %v3402_v31 = vsel %vm1801_vm6, %v3400_v33, %v3392_v26  ;;  %v3403_v25 = vsel %vm1804_vm7, %v3401_v34, %v3395_v27  ;;  %v8195_v27 = vld [vmem:[#allocation12 + $0x80] ss:$8 sps:$4 sm:$0xff]   ;;  %v8198_v34 = vld [vmem:[#allocation12 + $0x90] ss:$8 sps:$4 sm:$0xff]  }
 0x6aa   : > { %v3404_v35 = vsel %vm1804_vm7, %v3402_v31, %v3396_v30  ;;  %v3405_v38 = vpack.c.bf16 %v3403_v25, %v3403_v25  ;;  %v8200_v30 = vld [vmem:[#allocation12 + $0x94] ss:$8 sps:$4 sm:$0xff]   ;;  %v8203_v31 = vld [vmem:[#allocation12 + $0xa4] ss:$8 sps:$4 sm:$0xff]   ;;  %v8201_v25 = vld [vmem:[#allocation12 + $0xa0] ss:$8 sps:$4 sm:$0xff]  }
 0x6ab   : > { %v3406_v36 = vpack.c.bf16 %v3404_v35, %v3404_v35  ;;  %v8206_v35 = vld [vmem:[#allocation12 + $0xb4] ss:$8 sps:$4 sm:$0xff]  }
 0x6ac   : > { %v8390_v26 = vld [vmem:[#allocation4 + $0x208] sm:$0xff]  }
 0x6ad   : > { %3535 = vmatprep.mubr.bf16.mxu1 %v3406_v36 }
 0x6ae   : > { %3536 = vmatmul.mubr.bf16.vlgmr.msra.gmra.mrb[12].mxu1 %v3405_v38 }
 0x6af   : > { %7477 = vmatpush3.bf16.msra.mxu1 %v8156_v32  ;;  %3671 = vmatprep.mubr.bf16.mxu1 %v3406_v36  ;;  %v8204_v36 = vld [vmem:[#allocation12 + $0xb0] ss:$8 sps:$4 sm:$0xff]   ;;  %v8209_v32 = vld [vmem:[#allocation12 + $0xc4] ss:$8 sps:$4 sm:$0xff]  }
 0x6b0   : > { %7478 = vmatprep.subr.bf16.mxu1 %v8157_v28  ;;  %v8212_v28 = vld [vmem:[#allocation12 + $0xd4] ss:$8 sps:$4 sm:$0xff]  }
 0x6b3   : > { %7479 = vmatpush3.bf16.msra.mxu1 %v8158_v41  ;;  %v8210_v41 = vld [vmem:[#allocation12 + $0xd0] ss:$8 sps:$4 sm:$0xff]  }
 0x6b4   : > { %7480 = vmatprep.subr.bf16.mxu1 %v8159_v42  ;;  %v8215_v42 = vld [vmem:[#allocation12 + $0xe4] ss:$8 sps:$4 sm:$0xff]  }
 0x6b7   : > { %7481 = vmatpush3.bf16.msra.mxu1 %v8160_v43  ;;  %v8213_v43 = vld [vmem:[#allocation12 + $0xe0] ss:$8 sps:$4 sm:$0xff]  }
 0x6b8   : > { %7482 = vmatprep.subr.bf16.mxu1 %v8161_v62 }
 0x6bb   : > { %7483 = vmatpush3.bf16.msra.mxu1 %v8162_v1  ;;  %v8218_v1 = vld [vmem:[#allocation12 + $0xf4] ss:$8 sps:$4 sm:$0xff]  }
 0x6bc   : > { %7484 = vmatprep.subr.bf16.mxu1 %v8163_v44  ;;  %v8216_v44 = vld [vmem:[#allocation12 + $0xf0] ss:$8 sps:$4 sm:$0xff]  }
 0x6bf   : > { %7485 = vmatpush3.bf16.msra.mxu1 %v8164_v45 }
 0x6c0   : > { %7486 = vmatprep.subr.bf16.mxu1 %v8165_v46  ;;  %v8221_v46 = vld [vmem:[#allocation12 + $0x104] ss:$8 sps:$4 sm:$0xff]  }
 0x6c3   : > { %7487 = vmatpush3.bf16.msra.mxu1 %v8166_v47 }
 0x6c4   : > { %7488 = vmatprep.subr.bf16.mxu1 %v8167_v48  ;;  %v8219_v48 = vld [vmem:[#allocation12 + $0x100] ss:$8 sps:$4 sm:$0xff]  }
 0x6c7   : > { %7489 = vmatpush3.bf16.msra.mxu1 %v8168_v49 }
 0x6c8   : > { %7490 = vmatprep.subr.bf16.mxu1 %v8169_v50  ;;  %v8224_v50 = vld [vmem:[#allocation12 + $0x114] ss:$8 sps:$4 sm:$0xff]  }
 0x6cb   : > { %7491 = vmatpush3.bf16.msra.mxu1 %v8170_v51  ;;  %v8222_v51 = vld [vmem:[#allocation12 + $0x110] ss:$8 sps:$4 sm:$0xff]  }
 0x6cc   : > { %3790 = vmatprep.subr.bf16.mxu1 %v8173_v53  ;;  %v8225_v53 = vld [vmem:[#allocation12 + $0x120] ss:$8 sps:$4 sm:$0xff]  }
 0x6ce   : > { %3672 = vmatmul.mubr.bf16.vlgmr.msra.gmra.mrb[16].mxu1 %v3405_v38  ;;  %v8207_v38 = vld [vmem:[#allocation12 + $0xc0] ss:$8 sps:$4 sm:$0xff]  }
 0x6cf   : > { %3822 = vmatprep.mubr.bf16.mxu1 %v8965_v0  ;;  %3791 = vmatpush1.bf16.msra.mxu1 %v8171_v52  ;;  %v8227_v52 = vld [vmem:[#allocation12 + $0x124] ss:$8 sps:$4 sm:$0xff]  }
 0x6d0   : > { %3792 = vmatprep.subr.bf16.mxu1 %v8176_v54  ;;  %v8230_v54 = vld [vmem:[#allocation12 + $0x134] ss:$8 sps:$4 sm:$0xff]  }
 0x6d3   : > { %3793 = vmatpush1.bf16.msra.mxu1 %v8174_v55  ;;  %v8228_v55 = vld [vmem:[#allocation12 + $0x130] ss:$8 sps:$4 sm:$0xff]  }
 0x6d4   : > { %3794 = vmatprep.subr.bf16.mxu1 %v8179_v56  ;;  %v8233_v56 = vld [vmem:[#allocation12 + $0x144] ss:$8 sps:$4 sm:$0xff]  }
 0x6d7   : > { %3795 = vmatpush1.bf16.msra.mxu1 %v8177_v57  ;;  %v8231_v57 = vld [vmem:[#allocation12 + $0x140] ss:$8 sps:$4 sm:$0xff]  }
 0x6d8   : > { %3796 = vmatprep.subr.bf16.mxu1 %v8182_v58  ;;  %v8236_v58 = vld [vmem:[#allocation12 + $0x154] ss:$8 sps:$4 sm:$0xff]  }
 0x6db   : > { %3797 = vmatpush1.bf16.msra.mxu1 %v8180_v59  ;;  %v8234_v59 = vld [vmem:[#allocation12 + $0x150] ss:$8 sps:$4 sm:$0xff]  }
 0x6dc   : > { %3798 = vmatprep.subr.bf16.mxu1 %v8185_v60  ;;  %v8239_v60 = vld [vmem:[#allocation12 + $0x164] ss:$8 sps:$4 sm:$0xff]  }
 0x6df   : > { %3799 = vmatpush1.bf16.msra.mxu1 %v8183_v63  ;;  %v8237_v63 = vld [vmem:[#allocation12 + $0x160] ss:$8 sps:$4 sm:$0xff]  }
 0x6e0   : > { %3800 = vmatprep.subr.bf16.mxu1 %v8188_v2  ;;  %v8242_v2 = vld [vmem:[#allocation12 + $0x174] ss:$8 sps:$4 sm:$0xff]  }
 0x6e3   : > { %3801 = vmatpush1.bf16.msra.mxu1 %v8186_v3  ;;  %v8240_v3 = vld [vmem:[#allocation12 + $0x170] ss:$8 sps:$4 sm:$0xff]  }
 0x6e4   : > { %3802 = vmatprep.subr.bf16.mxu1 %v8191_v4  ;;  %v8245_v4 = vld [vmem:[#allocation13 + $0x4] ss:$8 sps:$4 sm:$0xff]  }
 0x6e7   : > { %3803 = vmatpush1.bf16.msra.mxu1 %v8189_v5  ;;  %v8243_v5 = vld [vmem:[#allocation13] ss:$8 sps:$4 sm:$0xff]  }
 0x6e8   : > { %3804 = vmatprep.subr.bf16.mxu1 %v8194_v6 }
 0x6eb   : > { %3805 = vmatpush1.bf16.msra.mxu1 %v8192_v7  ;;  %v8248_v7 = vld [vmem:[#allocation13 + $0x14] ss:$8 sps:$4 sm:$0xff]  }
 0x6ec   : > { %3946 = vmatprep.subr.bf16.mxu1 %v8197_v8  ;;  %v8246_v8 = vld [vmem:[#allocation13 + $0x10] ss:$8 sps:$4 sm:$0xff]  }
 0x781   : > { %v7470_v9 = vpop.f32.mrb[12].mxu1 }
 0x782   : > { %v7471_v10 = vpop.f32.mrb[13].mxu1 }
 0x783   : > { %v7472_v11 = vadd.f32 %v7471_v10, %v7470_v9  ;;  %v7473_v12 = vpop.f32.mrb[14].mxu1  ;;  %v8251_v9 = vld [vmem:[#allocation13 + $0x24] ss:$8 sps:$4 sm:$0xff]   ;;  %v8249_v10 = vld [vmem:[#allocation13 + $0x20] ss:$8 sps:$4 sm:$0xff]  }
 0x784   : > { %v7474_v16 = vpop.f32.mrb[15].mxu1  ;;  %v8252_v12 = vld [vmem:[#allocation13 + $0x30] ss:$8 sps:$4 sm:$0xff]  }
 0x785   : > { %v8257_v16 = vld [vmem:[#allocation13 + $0x44] ss:$8 sps:$4 sm:$0xff]  }
 0x7a1   : > { %v7492_v13 = vpop.f32.mrb[16].mxu1 }
 0x7a2   : > { %v7493_v15 = vpop.f32.mrb[17].mxu1 }
 0x7a3   : > { %v7494_v37 = vadd.f32 %v7493_v15, %v7492_v13  ;;  %v7495_v17 = vpop.f32.mrb[18].mxu1  ;;  %v8255_v13 = vld [vmem:[#allocation13 + $0x40] ss:$8 sps:$4 sm:$0xff]   ;;  %v8260_v15 = vld [vmem:[#allocation13 + $0x54] ss:$8 sps:$4 sm:$0xff]  }
 0x7a4   : > { %v7496_v18 = vpop.f32.mrb[19].mxu1  ;;  %v8263_v17 = vld [vmem:[#allocation13 + $0x64] ss:$8 sps:$4 sm:$0xff]  }
 0x7a5   : > { %v3679_v19 = vmax.f32 %v7472_v11, %v7494_v37  ;;  %v8254_v11 = vld [vmem:[#allocation13 + $0x34] ss:$8 sps:$4 sm:$0xff]   ;;  %v8258_v37 = vld [vmem:[#allocation13 + $0x50] ss:$8 sps:$4 sm:$0xff]   ;;  %v8261_v18 = vld [vmem:[#allocation13 + $0x60] ss:$8 sps:$4 sm:$0xff]  }
 0x7a7   : > { %v3680_v20 = vpack.c.bf16 %v3679_v19, %v3679_v19  ;;  %v8266_v19 = vld [vmem:[#allocation13 + $0x74] ss:$8 sps:$4 sm:$0xff]  }
 0x7a9   : > { %v3682_v21 = vshrl.u32 %v3680_v20, 16  ;;  %v3685_v23 = vshll.u32 %v3680_v20, 16  ;;  %v8264_v20 = vld [vmem:[#allocation13 + $0x70] ss:$8 sps:$4 sm:$0xff]  }
 0x7ab   : > { %v3684_v22 = vrot.slane %v3682_v21, 7  ;;  %v8269_v21 = vld [vmem:[#allocation13 + $0x84] ss:$8 sps:$4 sm:$0xff]  }
 0x7ad   : > { %v3687_v24 = vor.u32 %v3685_v23, %v3684_v22  ;;  %v8267_v22 = vld [vmem:[#allocation13 + $0x80] ss:$8 sps:$4 sm:$0xff]   ;;  %v8272_v23 = vld [vmem:[#allocation13 + $0x94] ss:$8 sps:$4 sm:$0xff]  }
 0x7af   : > { %v3689_v29 = vsel %vm9354_vm2, 0, %v3687_v24  ;;  %v8270_v24 = vld [vmem:[#allocation13 + $0x90] ss:$8 sps:$4 sm:$0xff]  }
 0x7b0   : > { %v9493_v33 = vsel %vm9485_vm14, %v3689_v29, 0  ;;  %v8273_v29 = vld [vmem:[#allocation13 + $0xa0] ss:$8 sps:$4 sm:$0xff]  }
 0x7b1   : > { %3823 = vmatmul.mubr.bf16.vlgmr.msra.gmra.mrb[20].mxu1 %v9493_v33  ;;  %v3861_v62 = vshll.u32 %v9493_v33, 16  ;;  %v3859_v47 = vshrl.u32 %v9493_v33, 16  ;;  %v4007_v6 = vrot.slane %v9493_v33, 1  ;;  %v8276_v33 = vld [vmem:[#allocation13 + $0xb0] ss:$8 sps:$4 sm:$0xff]  }
 0x7b2   : > { %3947 = vmatpush1.bf16.msra.mxu1 %v8195_v27  ;;  %3978 = vmatprep.mubr.bf16.mxu1 %v8965_v0  ;;  %v8275_v27 = vld [vmem:[#allocation13 + $0xa4] ss:$8 sps:$4 sm:$0xff]  }
 0x7b3   : > { %3948 = vmatprep.subr.bf16.mxu1 %v8200_v30  ;;  %v3863_v45 = vrot.slane %v3861_v62, 1  ;;  %v8278_v30 = vld [vmem:[#allocation13 + $0xb4] ss:$8 sps:$4 sm:$0xff]  }
 0x7b5   : > { %v3864_v49 = vor.u32 %v3863_v45, %v3859_v47 }
 0x7b6   : > { %3949 = vmatpush1.bf16.msra.mxu1 %v8198_v34  ;;  %v8281_v34 = vld [vmem:[#allocation13 + $0xc4] ss:$8 sps:$4 sm:$0xff]  }
 0x7b7   : > { %3950 = vmatprep.subr.bf16.mxu1 %v8203_v31  ;;  %v8279_v31 = vld [vmem:[#allocation13 + $0xc0] ss:$8 sps:$4 sm:$0xff]  }
 0x7ba   : > { %3951 = vmatpush1.bf16.msra.mxu1 %v8201_v25  ;;  %v8284_v25 = vld [vmem:[#allocation13 + $0xd4] ss:$8 sps:$4 sm:$0xff]  }
 0x7bb   : > { %3952 = vmatprep.subr.bf16.mxu1 %v8206_v35  ;;  %v8282_v35 = vld [vmem:[#allocation13 + $0xd0] ss:$8 sps:$4 sm:$0xff]  }
 0x7be   : > { %3953 = vmatpush1.bf16.msra.mxu1 %v8204_v36  ;;  %v8287_v36 = vld [vmem:[#allocation13 + $0xe4] ss:$8 sps:$4 sm:$0xff]  }
 0x7bf   : > { %3954 = vmatprep.subr.bf16.mxu1 %v8209_v32  ;;  %v8285_v32 = vld [vmem:[#allocation13 + $0xe0] ss:$8 sps:$4 sm:$0xff]  }
 0x7c2   : > { %3955 = vmatpush1.bf16.msra.mxu1 %v8207_v38  ;;  %v8290_v38 = vld [vmem:[#allocation13 + $0xf4] ss:$8 sps:$4 sm:$0xff]  }
 0x7c3   : > { %3956 = vmatprep.subr.bf16.mxu1 %v8212_v28  ;;  %v8288_v28 = vld [vmem:[#allocation13 + $0xf0] ss:$8 sps:$4 sm:$0xff]  }
 0x7c6   : > { %3957 = vmatpush1.bf16.msra.mxu1 %v8210_v41  ;;  %v8293_v41 = vld [vmem:[#allocation13 + $0x104] ss:$8 sps:$4 sm:$0xff]  }
 0x7c7   : > { %3958 = vmatprep.subr.bf16.mxu1 %v8215_v42  ;;  %v3833_v42 = vsub.s32 4, %v9369_v61 }
 0x7c9   : > { %v3838_v62 = vrot.slane %v9452_v40, %v3833_v42 }
 0x7ca   : > { %3959 = vmatpush1.bf16.msra.mxu1 %v8213_v43  ;;  %v3834_v43 = vrot.slane %v9449_v39, %v3833_v42  ;;  %v8329_v42 = vld [vmem:[#allocation13 + $0x1c4] ss:$8 sps:$4 sm:$0xff]  }
 0x7cb   : > { %3960 = vmatprep.subr.bf16.mxu1 %v8218_v1 }
 0x7ce   : > { %3961 = vmatpush1.bf16.msra.mxu1 %v8216_v44 }
 0x7cf   : > { %4089 = vmatprep.subr.bf16.mxu1 %v8221_v46 }
 0x7d1   : > { %3979 = vmatmul.mubr.bf16.vlgmr.msra.gmra.mrb[20].mxu1 %v3864_v49 }
 0x7d2   : > { %4090 = vmatpush1.bf16.msra.mxu1 %v8219_v48  ;;  %4121 = vmatprep.mubr.bf16.mxu1 %v8965_v0 }
 0x7d3   : > { %4091 = vmatprep.subr.bf16.mxu1 %v8224_v50 }
 0x7d6   : > { %4092 = vmatpush1.bf16.msra.mxu1 %v8222_v51 }
 0x7d7   : > { %4093 = vmatprep.subr.bf16.mxu1 %v8227_v52 }
 0x7da   : > { %4094 = vmatpush1.bf16.msra.mxu1 %v8225_v53 }
 0x7db   : > { %4095 = vmatprep.subr.bf16.mxu1 %v8230_v54 }
 0x7de   : > { %4096 = vmatpush1.bf16.msra.mxu1 %v8228_v55 }
 0x7df   : > { %4097 = vmatprep.subr.bf16.mxu1 %v8233_v56 }
 0x7e2   : > { %4098 = vmatpush1.bf16.msra.mxu1 %v8231_v57 }
 0x7e3   : > { %4099 = vmatprep.subr.bf16.mxu1 %v8236_v58 }
 0x7e6   : > { %4100 = vmatpush1.bf16.msra.mxu1 %v8234_v59 }
 0x7e7   : > { %4101 = vmatprep.subr.bf16.mxu1 %v8239_v60 }
 0x7ea   : > { %4102 = vmatpush1.bf16.msra.mxu1 %v8237_v63  ;;  %v8291_v63 = vld [vmem:[#allocation13 + $0x100] ss:$8 sps:$4 sm:$0xff]  }
 0x7eb   : > { %4103 = vmatprep.subr.bf16.mxu1 %v8242_v2 }
 0x7ee   : > { %4104 = vmatpush1.bf16.msra.mxu1 %v8240_v3  ;;  %v8296_v3 = vld [vmem:[#allocation13 + $0x114] ss:$8 sps:$4 sm:$0xff]  }
 0x7ef   : > { %4348 = vmatprep.subr.bf16.mxu1 %v8245_v4 }
 0x7f1   : > { %4122 = vmatmul.mubr.bf16.vlgmr.msra.gmra.mrb[20].mxu1 %v4007_v6  ;;  %v8387_v6 = vld [vmem:[#allocation4 + $0x240] sm:$0xff]  }
 0x7f2   : > { %4349 = vmatpush1.bf16.msra.mxu1 %v8243_v5  ;;  %7498 = vmatprep.subr.bf16.mxu0 %v8387_v6  ;;  %v8362_v6 = vld [vmem:[#allocation13 + $0x274] ss:$8 sps:$4 sm:$0xff]  }
 0x7f3   : > { %4350 = vmatprep.subr.bf16.mxu1 %v8248_v7  ;;  %v8388_v7 = vld [vmem:[#allocation4 + $0x200] sm:$0xff]  }
 0x7f4   : > { %7499 = vmatpush3.bf16.msra.mxu0 %v8388_v7  ;;  %v8360_v7 = vld [vmem:[#allocation13 + $0x270] ss:$8 sps:$4 sm:$0xff]  }
 0x7f6   : > { %4351 = vmatpush1.bf16.msra.mxu1 %v8246_v8  ;;  %v8389_v8 = vld [vmem:[#allocation4 + $0x248] sm:$0xff]  }
 0x7f7   : > { %4352 = vmatprep.subr.bf16.mxu1 %v8251_v9  ;;  %v8294_v9 = vld [vmem:[#allocation13 + $0x110] ss:$8 sps:$4 sm:$0xff]   ;;  %7500 = vmatprep.subr.bf16.mxu0 %v8389_v8  ;;  %v8365_v8 = vld [vmem:[#allocation13 + $0x284] ss:$8 sps:$4 sm:$0xff]  }
 0x7f8   : > { %7501 = vmatpush3.bf16.msra.mxu0 %v8390_v26  ;;  %v8374_v26 = vld [vmem:[#allocation13 + $0x2b4] ss:$8 sps:$4 sm:$0xff]  }
 0x7fa   : > { %4353 = vmatpush1.bf16.msra.mxu1 %v8249_v10 }
 0x7fb   : > { %4354 = vmatprep.subr.bf16.mxu1 %v8254_v11 }
 0x7fe   : > { %4355 = vmatpush1.bf16.msra.mxu1 %v8252_v12  ;;  %v8299_v12 = vld [vmem:[#allocation13 + $0x124] ss:$8 sps:$4 sm:$0xff]  }
 0x7ff   : > { %4356 = vmatprep.subr.bf16.mxu1 %v8257_v16 }
 0x802   : > { %4357 = vmatpush1.bf16.msra.mxu1 %v8255_v13  ;;  %v8391_v13 = vld [vmem:[#allocation4 + $0x250] sm:$0xff]  }
 0x803   : > { %4358 = vmatprep.subr.bf16.mxu1 %v8260_v15  ;;  %v8297_v15 = vld [vmem:[#allocation13 + $0x120] ss:$8 sps:$4 sm:$0xff]   ;;  %7502 = vmatprep.subr.bf16.mxu0 %v8391_v13  ;;  %v8372_v13 = vld [vmem:[#allocation13 + $0x2b0] ss:$8 sps:$4 sm:$0xff]  }
 0x806   : > { %4359 = vmatpush1.bf16.msra.mxu1 %v8258_v37  ;;  %v8302_v37 = vld [vmem:[#allocation13 + $0x134] ss:$8 sps:$4 sm:$0xff]  }
 0x807   : > { %4360 = vmatprep.subr.bf16.mxu1 %v8263_v17  ;;  %v8392_v17 = vld [vmem:[#allocation4 + $0x210] sm:$0xff]  }
 0x808   : > { %7503 = vmatpush3.bf16.msra.mxu0 %v8392_v17  ;;  %v8380_v17 = vld [vmem:[#allocation13 + $0x2d4] ss:$8 sps:$4 sm:$0xff]  }
 0x80a   : > { %4361 = vmatpush1.bf16.msra.mxu1 %v8261_v18  ;;  %v8393_v18 = vld [vmem:[#allocation4 + $0x258] sm:$0xff]  }
 0x80b   : > { %4362 = vmatprep.subr.bf16.mxu1 %v8266_v19  ;;  %v8300_v19 = vld [vmem:[#allocation13 + $0x130] ss:$8 sps:$4 sm:$0xff]   ;;  %7504 = vmatprep.subr.bf16.mxu0 %v8393_v18 }
 0x80c   : > { %v8378_v18 = vld [vmem:[#allocation13 + $0x2d0] ss:$8 sps:$4 sm:$0xff]  }
 0x80e   : > { %4363 = vmatpush1.bf16.msra.mxu1 %v8264_v20  ;;  %v8305_v20 = vld [vmem:[#allocation13 + $0x144] ss:$8 sps:$4 sm:$0xff]  }
 0x80f   : > { %4364 = vmatprep.subr.bf16.mxu1 %v8269_v21  ;;  %v8394_v21 = vld [vmem:[#allocation4 + $0x218] sm:$0xff]  }
 0x810   : > { %7505 = vmatpush3.bf16.msra.mxu0 %v8394_v21  ;;  %v8386_v21 = vld [vmem:[#allocation13 + $0x2f4] ss:$8 sps:$4 sm:$0xff]  }
 0x812   : > { %4365 = vmatpush1.bf16.msra.mxu1 %v8267_v22  ;;  %v8395_v22 = vld [vmem:[#allocation4 + $0x260] sm:$0xff]  }
 0x813   : > { %4366 = vmatprep.subr.bf16.mxu1 %v8272_v23  ;;  %v8303_v23 = vld [vmem:[#allocation13 + $0x140] ss:$8 sps:$4 sm:$0xff]   ;;  %7506 = vmatprep.subr.bf16.mxu0 %v8395_v22  ;;  %v8384_v22 = vld [vmem:[#allocation13 + $0x2f0] ss:$8 sps:$4 sm:$0xff]  }
 0x816   : > { %4367 = vmatpush1.bf16.msra.mxu1 %v8270_v24  ;;  %v8308_v24 = vld [vmem:[#allocation13 + $0x154] ss:$8 sps:$4 sm:$0xff]  }
 0x817   : > { %4368 = vmatprep.subr.bf16.mxu1 %v8275_v27  ;;  %v8306_v27 = vld [vmem:[#allocation13 + $0x150] ss:$8 sps:$4 sm:$0xff]  }
 0x81a   : > { %4369 = vmatpush1.bf16.msra.mxu1 %v8273_v29  ;;  %v8311_v29 = vld [vmem:[#allocation13 + $0x164] ss:$8 sps:$4 sm:$0xff]  }
 0x81b   : > { %4370 = vmatprep.subr.bf16.mxu1 %v8278_v30  ;;  %v8309_v30 = vld [vmem:[#allocation13 + $0x160] ss:$8 sps:$4 sm:$0xff]  }
 0x81e   : > { %4371 = vmatpush1.bf16.msra.mxu1 %v8276_v33  ;;  %v8314_v33 = vld [vmem:[#allocation13 + $0x174] ss:$8 sps:$4 sm:$0xff]  }
 0x81f   : > { %4372 = vmatprep.subr.bf16.mxu1 %v8281_v34  ;;  %v8312_v34 = vld [vmem:[#allocation13 + $0x170] ss:$8 sps:$4 sm:$0xff]  }
 0x822   : > { %4373 = vmatpush1.bf16.msra.mxu1 %v8279_v31  ;;  %v8317_v31 = vld [vmem:[#allocation13 + $0x184] ss:$8 sps:$4 sm:$0xff]  }
 0x823   : > { %4374 = vmatprep.subr.bf16.mxu1 %v8284_v25  ;;  %v8315_v25 = vld [vmem:[#allocation13 + $0x180] ss:$8 sps:$4 sm:$0xff]  }
 0x826   : > { %4375 = vmatpush1.bf16.msra.mxu1 %v8282_v35  ;;  %v8320_v35 = vld [vmem:[#allocation13 + $0x194] ss:$8 sps:$4 sm:$0xff]  }
 0x827   : > { %4376 = vmatprep.subr.bf16.mxu1 %v8287_v36  ;;  %v8318_v36 = vld [vmem:[#allocation13 + $0x190] ss:$8 sps:$4 sm:$0xff]  }
 0x82a   : > { %4377 = vmatpush1.bf16.msra.mxu1 %v8285_v32  ;;  %v8323_v32 = vld [vmem:[#allocation13 + $0x1a4] ss:$8 sps:$4 sm:$0xff]  }
 0x82b   : > { %4378 = vmatprep.subr.bf16.mxu1 %v8290_v38  ;;  %v8321_v38 = vld [vmem:[#allocation13 + $0x1a0] ss:$8 sps:$4 sm:$0xff]  }
 0x82e   : > { %4379 = vmatpush1.bf16.msra.mxu1 %v8288_v28  ;;  %v8326_v28 = vld [vmem:[#allocation13 + $0x1b4] ss:$8 sps:$4 sm:$0xff]  }
 0x82f   : > { %4608 = vmatprep.subr.bf16.mxu1 %v8293_v41  ;;  %v8324_v41 = vld [vmem:[#allocation13 + $0x1b0] ss:$8 sps:$4 sm:$0xff]  }
 0x8c4   : > { %v4123_v1 = vpop.f32.mrb[20].mxu1 }
 0x8c5   : > { %v7556_v44 = vadd.f32 %v4123_v1, %v3834_v43  ;;  %v4125_v45 = vpop.f32.mrb[21].mxu1  ;;  %v8327_v43 = vld [vmem:[#allocation13 + $0x1c0] ss:$8 sps:$4 sm:$0xff]   ;;  %v8330_v1 = vld [vmem:[#allocation13 + $0x1d0] ss:$8 sps:$4 sm:$0xff]  }
 0x8c6   : > { %v7557_v46 = vadd.f32 %v4125_v45, %v3838_v62  ;;  %v4127_v47 = vpop.f32.mrb[22].mxu1  ;;  %v8332_v62 = vld [vmem:[#allocation13 + $0x1d4] ss:$8 sps:$4 sm:$0xff]   ;;  %v8333_v45 = vld [vmem:[#allocation13 + $0x1e0] ss:$8 sps:$4 sm:$0xff]  }
 0x8c7   : > { %v4132_v48 = vmax.f32 %v7556_v44, 0.0  ;;  %v4128_v49 = vpop.f32.mrb[23].mxu1  ;;  %v8335_v44 = vld [vmem:[#allocation13 + $0x1e4] ss:$8 sps:$4 sm:$0xff]   ;;  %v8338_v47 = vld [vmem:[#allocation13 + $0x1f4] ss:$8 sps:$4 sm:$0xff]  }
 0x8c8   : > { %v4133_v50 = vmax.f32 %v7557_v46, 0.0 }
 0x8c9   : > { %v4134_v51 = vpack.c.bf16 %v4132_v48, %v4132_v48  ;;  %v8336_v48 = vld [vmem:[#allocation13 + $0x1f0] ss:$8 sps:$4 sm:$0xff]  }
 0x8ca   : > { %v4135_v52 = vpack.c.bf16 %v4133_v50, %v4133_v50  ;;  %v8341_v50 = vld [vmem:[#allocation13 + $0x204] ss:$8 sps:$4 sm:$0xff]  }
 0x8cb   : > { %v4137_v53 = vshrl.u32 %v4134_v51, 16  ;;  %v4140_v56 = vshll.u32 %v4134_v51, 16 }
 0x8cc   : > { %v4144_v54 = vshrl.u32 %v4135_v52, 16  ;;  %v4147_v58 = vshll.u32 %v4135_v52, 16  ;;  %v8339_v52 = vld [vmem:[#allocation13 + $0x200] ss:$8 sps:$4 sm:$0xff]  }
 0x8cd   : > { %v4139_v55 = vrot.slane %v4137_v53, 7 }
 0x8ce   : > { %v4146_v57 = vrot.slane %v4144_v54, 7  ;;  %v8344_v54 = vld [vmem:[#allocation13 + $0x214] ss:$8 sps:$4 sm:$0xff]  }
 0x8cf   : > { %v4142_v59 = vor.u32 %v4140_v56, %v4139_v55  ;;  %v8342_v56 = vld [vmem:[#allocation13 + $0x210] ss:$8 sps:$4 sm:$0xff]  }
 0x8d0   : > { %v4149_v39 = vor.u32 %v4147_v58, %v4146_v57  ;;  %v8347_v57 = vld [vmem:[#allocation13 + $0x224] ss:$8 sps:$4 sm:$0xff]   ;;  %v8345_v58 = vld [vmem:[#allocation13 + $0x220] ss:$8 sps:$4 sm:$0xff]  }
 0x8d1   : > { %v4152_v40 = vsel %vm9354_vm2, 0, %v4142_v59  ;;  %v8350_v59 = vld [vmem:[#allocation13 + $0x234] ss:$8 sps:$4 sm:$0xff]  }
 0x8d2   : > { %v4153_v60 = vsel %vm9354_vm2, 0, %v4149_v39  ;;  %v9515_v4 = vsel %vm9485_vm14, %v4152_v40, 0  ;;  %v8348_v39 = vld [vmem:[#allocation13 + $0x230] ss:$8 sps:$4 sm:$0xff]   ;;  %v8353_v40 = vld [vmem:[#allocation13 + $0x244] ss:$8 sps:$4 sm:$0xff]  }
 0x8d3   : > { %v9510_v2 = vsel %vm9485_vm14, %v4153_v60, 0  ;;  %v4435_v46 = vshll.u32 %v9515_v4, 16  ;;  %v4433_v51 = vshrl.u32 %v9515_v4, 16  ;;  %v8351_v60 = vld [vmem:[#allocation13 + $0x240] ss:$8 sps:$4 sm:$0xff]  }
 0x8d4   : > { %4380 = vmatprep.mubr.bf16.mxu1 %v9510_v2  ;;  %v4442_v5 = vshll.u32 %v9510_v2, 16  ;;  %v4440_v10 = vshrl.u32 %v9510_v2, 16  ;;  %v4687_v55 = vrot.slane %v9510_v2, 1  ;;  %v8354_v2 = vld [vmem:[#allocation13 + $0x250] ss:$8 sps:$4 sm:$0xff]  }
 0x8d5   : > { %4381 = vmatmul.mubr.bf16.vlgmr.msra.gmra.mrb[24].mxu1 %v9515_v4  ;;  %v4437_v49 = vrot.slane %v4435_v46, 1 }
 0x8d6   : > { %4609 = vmatpush1.bf16.msra.mxu1 %v8291_v63  ;;  %v4444_v11 = vrot.slane %v4442_v5, 1  ;;  %v8356_v63 = vld [vmem:[#allocation13 + $0x254] ss:$8 sps:$4 sm:$0xff]   ;;  %v8357_v5 = vld [vmem:[#allocation13 + $0x260] ss:$8 sps:$4 sm:$0xff]  }
 0x8d7   : > { %4610 = vmatprep.subr.bf16.mxu1 %v8296_v3  ;;  %v4438_v53 = vor.u32 %v4437_v49, %v4433_v51  ;;  %v8359_v3 = vld [vmem:[#allocation13 + $0x264] ss:$8 sps:$4 sm:$0xff]  }
 0x8d8   : > { %v4445_v16 = vor.u32 %v4444_v11, %v4440_v10  ;;  %v8368_v10 = vld [vmem:[#allocation13 + $0x294] ss:$8 sps:$4 sm:$0xff]   ;;  %v8366_v11 = vld [vmem:[#allocation13 + $0x290] ss:$8 sps:$4 sm:$0xff]  }
 0x8da   : > { %4611 = vmatpush1.bf16.msra.mxu1 %v8294_v9  ;;  %4640 = vmatprep.mubr.bf16.mxu1 %v4445_v16  ;;  %v8363_v9 = vld [vmem:[#allocation13 + $0x280] ss:$8 sps:$4 sm:$0xff]  }
 0x8db   : > { %4612 = vmatprep.subr.bf16.mxu1 %v8299_v12  ;;  %v8371_v12 = vld [vmem:[#allocation13 + $0x2a4] ss:$8 sps:$4 sm:$0xff]   ;;  %v8369_v16 = vld [vmem:[#allocation13 + $0x2a0] ss:$8 sps:$4 sm:$0xff]  }
 0x8de   : > { %4613 = vmatpush1.bf16.msra.mxu1 %v8297_v15  ;;  %v8377_v15 = vld [vmem:[#allocation13 + $0x2c4] ss:$8 sps:$4 sm:$0xff]  }
 0x8df   : > { %4614 = vmatprep.subr.bf16.mxu1 %v8302_v37  ;;  %v8375_v37 = vld [vmem:[#allocation13 + $0x2c0] ss:$8 sps:$4 sm:$0xff]  }
 0x8e2   : > { %4615 = vmatpush1.bf16.msra.mxu1 %v8300_v19  ;;  %v8383_v19 = vld [vmem:[#allocation13 + $0x2e4] ss:$8 sps:$4 sm:$0xff]  }
 0x8e3   : > { %4616 = vmatprep.subr.bf16.mxu1 %v8305_v20  ;;  %v8381_v20 = vld [vmem:[#allocation13 + $0x2e0] ss:$8 sps:$4 sm:$0xff]  }
 0x8e6   : > { %4617 = vmatpush1.bf16.msra.mxu1 %v8303_v23  ;;  %v4686_v23 = vrot.slane %v9515_v4, 1  ;;  %v4391_v4 = vsub.s32 5, %v9369_v61 }
 0x8e7   : > { %4618 = vmatprep.subr.bf16.mxu1 %v8308_v24  ;;  %v8396_v24 = vld [vmem:[#allocation4 + $0x220] sm:$0xff]  }
 0x8e8   : > { %7507 = vmatpush3.bf16.msra.mxu0 %v8396_v24  ;;  %v8442_v24 = vld [vmem:[#allocation15 + $0x74] ss:$8 sps:$4 sm:$0xff]  }
 0x8ea   : > { %4619 = vmatpush1.bf16.msra.mxu1 %v8306_v27  ;;  %v8397_v27 = vld [vmem:[#allocation4 + $0x268] sm:$0xff]  }
 0x8eb   : > { %4620 = vmatprep.subr.bf16.mxu1 %v8311_v29  ;;  %v8398_v29 = vld [vmem:[#allocation4 + $0x228] sm:$0xff]   ;;  %7508 = vmatprep.subr.bf16.mxu0 %v8397_v27 }
 0x8ec   : > { %7509 = vmatpush3.bf16.msra.mxu0 %v8398_v29  ;;  %v8440_v27 = vld [vmem:[#allocation15 + $0x70] ss:$8 sps:$4 sm:$0xff]   ;;  %v8445_v29 = vld [vmem:[#allocation15 + $0x84] ss:$8 sps:$4 sm:$0xff]  }
 0x8ee   : > { %4621 = vmatpush1.bf16.msra.mxu1 %v8309_v30  ;;  %v8399_v30 = vld [vmem:[#allocation4 + $0x270] sm:$0xff]  }
 0x8ef   : > { %4622 = vmatprep.subr.bf16.mxu1 %v8314_v33  ;;  %v8400_v33 = vld [vmem:[#allocation4 + $0x230] sm:$0xff]   ;;  %7510 = vmatprep.subr.bf16.mxu0 %v8399_v30 }
 0x8f0   : > { %7511 = vmatpush3.bf16.msra.mxu0 %v8400_v33 }
 0x8f2   : > { %4623 = vmatpush1.bf16.msra.mxu1 %v8312_v34  ;;  %v8401_v34 = vld [vmem:[#allocation4 + $0x278] sm:$0xff]  }
 0x8f3   : > { %4624 = vmatprep.subr.bf16.mxu1 %v8317_v31  ;;  %v8402_v31 = vld [vmem:[#allocation4 + $0x238] sm:$0xff]   ;;  %7512 = vmatprep.subr.bf16.mxu0 %v8401_v34 }
 0x8f4   : > { %7513 = vmatpush3.bf16.msra.mxu0 %v8402_v31 }
 0x8f6   : > { %4625 = vmatpush1.bf16.msra.mxu1 %v8315_v25  ;;  %v8403_v25 = vld [vmem:[#allocation4 + $0x2c0] sm:$0xff]  }
 0x8f7   : > { %4626 = vmatprep.subr.bf16.mxu1 %v8320_v35  ;;  %7520 = vmatprep.subr.bf16.mxu0 %v8403_v25  ;;  %v9525_v35 = vld [vmem:[#allocation2] sm:$0xff] }
 0x8fa   : > { %4627 = vmatpush1.bf16.msra.mxu1 %v8318_v36  ;;  %v4392_v36 = vrot.slane %v9525_v35, %v4391_v4 }
 0x8fb   : > { %4628 = vmatprep.subr.bf16.mxu1 %v8323_v32  ;;  %v9528_v32 = vld [vmem:[#allocation2 + $0x8] sm:$0xff] }
 0x8fe   : > { %4629 = vmatpush1.bf16.msra.mxu1 %v8321_v38  ;;  %v4396_v38 = vrot.slane %v9528_v32, %v4391_v4 }
 0x8ff   : > { %4630 = vmatprep.subr.bf16.mxu1 %v8326_v28 }
 0x902   : > { %4631 = vmatpush1.bf16.msra.mxu1 %v8324_v41 }
 0x903   : > { %4632 = vmatprep.subr.bf16.mxu1 %v8329_v42 }
 0x906   : > { %4633 = vmatpush1.bf16.msra.mxu1 %v8327_v43 }
 0x907   : > { %4634 = vmatprep.subr.bf16.mxu1 %v8332_v62 }
 0x90a   : > { %4635 = vmatpush1.bf16.msra.mxu1 %v8330_v1 }
 0x90b   : > { %4636 = vmatprep.subr.bf16.mxu1 %v8335_v44 }
 0x90e   : > { %4637 = vmatpush1.bf16.msra.mxu1 %v8333_v45 }
 0x90f   : > { %4638 = vmatprep.subr.bf16.mxu1 %v8338_v47 }
 0x912   : > { %4639 = vmatpush1.bf16.msra.mxu1 %v8336_v48 }
 0x913   : > { %4850 = vmatprep.subr.bf16.mxu1 %v8341_v50 }
 0x915   : > { %4641 = vmatmul.mubr.bf16.vlgmr.msra.gmra.mrb[24].mxu1 %v4438_v53 }
 0x916   : > { %4851 = vmatpush1.bf16.msra.mxu1 %v8339_v52  ;;  %4882 = vmatprep.mubr.bf16.mxu1 %v4687_v55 }
 0x917   : > { %4852 = vmatprep.subr.bf16.mxu1 %v8344_v54 }
 0x91a   : > { %4853 = vmatpush1.bf16.msra.mxu1 %v8342_v56  ;;  %v8404_v56 = vld [vmem:[#allocation4 + $0x280] sm:$0xff]  }
 0x91b   : > { %4854 = vmatprep.subr.bf16.mxu1 %v8347_v57 }
 0x91e   : > { %4855 = vmatpush1.bf16.msra.mxu1 %v8345_v58  ;;  %v8405_v58 = vld [vmem:[#allocation4 + $0x2c8] sm:$0xff]  }
 0x91f   : > { %4856 = vmatprep.subr.bf16.mxu1 %v8350_v59  ;;  %v8406_v59 = vld [vmem:[#allocation4 + $0x288] sm:$0xff]  }
 0x922   : > { %4857 = vmatpush1.bf16.msra.mxu1 %v8348_v39  ;;  %v8407_v39 = vld [vmem:[#allocation4 + $0x2d0] sm:$0xff]  }
 0x923   : > { %4858 = vmatprep.subr.bf16.mxu1 %v8353_v40  ;;  %v8408_v40 = vld [vmem:[#allocation4 + $0x290] sm:$0xff]  }
 0x926   : > { %4859 = vmatpush1.bf16.msra.mxu1 %v8351_v60  ;;  %v8409_v60 = vld [vmem:[#allocation4 + $0x2d8] sm:$0xff]  }
 0x927   : > { %4860 = vmatprep.subr.bf16.mxu1 %v8356_v63  ;;  %v8410_v63 = vld [vmem:[#allocation4 + $0x298] sm:$0xff]  }
 0x92a   : > { %4861 = vmatpush1.bf16.msra.mxu1 %v8354_v2  ;;  %v8411_v2 = vld [vmem:[#allocation4 + $0x2e0] sm:$0xff]  }
 0x92b   : > { %4862 = vmatprep.subr.bf16.mxu1 %v8359_v3  ;;  %v8412_v3 = vld [vmem:[#allocation4 + $0x2a0] sm:$0xff]  }
 0x92e   : > { %4863 = vmatpush1.bf16.msra.mxu1 %v8357_v5  ;;  %v8413_v5 = vld [vmem:[#allocation4 + $0x2e8] sm:$0xff]  }
 0x92f   : > { %4864 = vmatprep.subr.bf16.mxu1 %v8362_v6  ;;  %v8414_v6 = vld [vmem:[#allocation4 + $0x2a8] sm:$0xff]  }
 0x932   : > { %4865 = vmatpush1.bf16.msra.mxu1 %v8360_v7  ;;  %v8415_v7 = vld [vmem:[#allocation4 + $0x2f0] sm:$0xff]  }
 0x933   : > { %4866 = vmatprep.subr.bf16.mxu1 %v8365_v8  ;;  %v8416_v8 = vld [vmem:[#allocation4 + $0x2b0] sm:$0xff]  }
 0x936   : > { %4867 = vmatpush1.bf16.msra.mxu1 %v8363_v9  ;;  %v8417_v9 = vld [vmem:[#allocation4 + $0x2f8] sm:$0xff]  }
 0x937   : > { %4868 = vmatprep.subr.bf16.mxu1 %v8368_v10  ;;  %v8418_v10 = vld [vmem:[#allocation4 + $0x2b8] sm:$0xff]  }
 0x93a   : > { %4869 = vmatpush1.bf16.msra.mxu1 %v8366_v11  ;;  %v8419_v11 = vld [vmem:[#allocation15] ss:$8 sps:$4 sm:$0xff]  }
 0x93b   : > { %4870 = vmatprep.subr.bf16.mxu1 %v8371_v12  ;;  %v8421_v12 = vld [vmem:[#allocation15 + $0x4] ss:$8 sps:$4 sm:$0xff]  }
 0x93e   : > { %4871 = vmatpush1.bf16.msra.mxu1 %v8369_v16  ;;  %v8424_v16 = vld [vmem:[#allocation15 + $0x14] ss:$8 sps:$4 sm:$0xff]  }
 0x93f   : > { %4872 = vmatprep.subr.bf16.mxu1 %v8374_v26  ;;  %v8422_v26 = vld [vmem:[#allocation15 + $0x10] ss:$8 sps:$4 sm:$0xff]  }
 0x942   : > { %4873 = vmatpush1.bf16.msra.mxu1 %v8372_v13  ;;  %v8427_v13 = vld [vmem:[#allocation15 + $0x24] ss:$8 sps:$4 sm:$0xff]  }
 0x943   : > { %4874 = vmatprep.subr.bf16.mxu1 %v8377_v15  ;;  %v8425_v15 = vld [vmem:[#allocation15 + $0x20] ss:$8 sps:$4 sm:$0xff]  }
 0x946   : > { %4875 = vmatpush1.bf16.msra.mxu1 %v8375_v37  ;;  %v8430_v37 = vld [vmem:[#allocation15 + $0x34] ss:$8 sps:$4 sm:$0xff]  }
 0x947   : > { %4876 = vmatprep.subr.bf16.mxu1 %v8380_v17  ;;  %v8428_v17 = vld [vmem:[#allocation15 + $0x30] ss:$8 sps:$4 sm:$0xff]  }
 0x94a   : > { %4877 = vmatpush1.bf16.msra.mxu1 %v8378_v18  ;;  %v8433_v18 = vld [vmem:[#allocation15 + $0x44] ss:$8 sps:$4 sm:$0xff]  }
 0x94b   : > { %4878 = vmatprep.subr.bf16.mxu1 %v8383_v19  ;;  %v8431_v19 = vld [vmem:[#allocation15 + $0x40] ss:$8 sps:$4 sm:$0xff]  }
 0x94e   : > { %4879 = vmatpush1.bf16.msra.mxu1 %v8381_v20  ;;  %v8436_v20 = vld [vmem:[#allocation15 + $0x54] ss:$8 sps:$4 sm:$0xff]  }
 0x94f   : > { %4880 = vmatprep.subr.bf16.mxu1 %v8386_v21  ;;  %v8434_v21 = vld [vmem:[#allocation15 + $0x50] ss:$8 sps:$4 sm:$0xff]  }
 0x952   : > { %4881 = vmatpush1.bf16.msra.mxu1 %v8384_v22  ;;  %v8439_v22 = vld [vmem:[#allocation15 + $0x64] ss:$8 sps:$4 sm:$0xff]  }
 0x955   : > { %4883 = vmatmul.mubr.bf16.vlgmr.msra.gmra.mrb[24].mxu1 %v4686_v23  ;;  %v8437_v23 = vld [vmem:[#allocation15 + $0x60] ss:$8 sps:$4 sm:$0xff]  }
 0xa28   : > { %v4884_v28 = vpop.f32.mrb[24].mxu1 }
 0xa29   : > { %v7558_v41 = vadd.f32 %v4884_v28, %v4392_v36  ;;  %v4886_v42 = vpop.f32.mrb[25].mxu1 }
 0xa2a   : > { %v7559_v43 = vadd.f32 %v4886_v42, %v4396_v38  ;;  %v4888_v62 = vpop.f32.mrb[26].mxu1 }
 0xa2b   : > { %v4893_v1 = vmax.f32 %v7558_v41, 0.0  ;;  %v4889_v44 = vpop.f32.mrb[27].mxu1 }
 0xa2c   : > { %v4894_v45 = vmax.f32 %v7559_v43, 0.0 }
 0xa2d   : > { %v4966_v46 = vrot.slane %v4893_v1, 1 }
 0xa2e   : > { %v4897_v47 = vcombine.low %v4893_v1, %v4894_v45  ;;  %v4967_v48 = vrot.slane %v4894_v45, 1 }
 0xa2f   : > { %v4970_v49 = vmax.f32 %v4893_v1, %v4966_v46  ;;  %v8548_v46 = vld [vmem:[#allocation16 + $0x130] ss:$8 sps:$4 sm:$0xff]  }
 0xa30   : > { %4899 = vst [vmem:[%s638_s25] sm:$0xff] %v4897_v47  ;;  %v4971_v50 = vmax.f32 %v4894_v45, %v4967_v48  ;;  %v8443_v47 = vld [vmem:[#allocation15 + $0x80] ss:$8 sps:$4 sm:$0xff]  }
 0xa31   : > { %v4974_v51 = vrot.slane %v4970_v49, 1 }
 0xa32   : > { %v4975_v52 = vrot.slane %v4971_v50, 1 }
 0xa33   : > { %v4978_v53 = vsel %vm664_vm1, %v4970_v49, %v4974_v51  ;;  %v8448_v49 = vld [vmem:[#allocation15 + $0x94] ss:$8 sps:$4 sm:$0xff]   ;;  %v8446_v51 = vld [vmem:[#allocation15 + $0x90] ss:$8 sps:$4 sm:$0xff]  }
 0xa34   : > { %v4979_v54 = vsel %vm664_vm1, %v4971_v50, %v4975_v52  ;;  %v4980_v57 = vpack.c.bf16 %v4978_v53, %v4978_v53  ;;  %v8451_v52 = vld [vmem:[#allocation15 + $0xa4] ss:$8 sps:$4 sm:$0xff]   ;;  %v8449_v53 = vld [vmem:[#allocation15 + $0xa0] ss:$8 sps:$4 sm:$0xff]  }
 0xa35   : > { %v4981_v55 = vpack.c.bf16 %v4979_v54, %v4979_v54  ;;  %v8454_v54 = vld [vmem:[#allocation15 + $0xb4] ss:$8 sps:$4 sm:$0xff]  }
 0xa37   : > { %5110 = vmatprep.mubr.bf16.mxu0 %v4981_v55 }
 0xa38   : > { %5111 = vmatmul.mubr.bf16.vlgmr.msra.gmra.mrb[16].mxu0 %v4980_v57 }
 0xa39   : > { %7521 = vmatpush3.bf16.msra.mxu0 %v8404_v56  ;;  %5246 = vmatprep.mubr.bf16.mxu0 %v4981_v55  ;;  %v8452_v55 = vld [vmem:[#allocation15 + $0xb0] ss:$8 sps:$4 sm:$0xff]   ;;  %v8457_v56 = vld [vmem:[#allocation15 + $0xc4] ss:$8 sps:$4 sm:$0xff]  }
 0xa3a   : > { %7522 = vmatprep.subr.bf16.mxu0 %v8405_v58  ;;  %v8460_v58 = vld [vmem:[#allocation15 + $0xd4] ss:$8 sps:$4 sm:$0xff]  }
 0xa3d   : > { %7523 = vmatpush3.bf16.msra.mxu0 %v8406_v59  ;;  %v8458_v59 = vld [vmem:[#allocation15 + $0xd0] ss:$8 sps:$4 sm:$0xff]  }
 0xa3e   : > { %7524 = vmatprep.subr.bf16.mxu0 %v8407_v39  ;;  %v8463_v39 = vld [vmem:[#allocation15 + $0xe4] ss:$8 sps:$4 sm:$0xff]  }
 0xa41   : > { %7525 = vmatpush3.bf16.msra.mxu0 %v8408_v40  ;;  %v8461_v40 = vld [vmem:[#allocation15 + $0xe0] ss:$8 sps:$4 sm:$0xff]  }
 0xa42   : > { %7526 = vmatprep.subr.bf16.mxu0 %v8409_v60 }
 0xa45   : > { %7527 = vmatpush3.bf16.msra.mxu0 %v8410_v63  ;;  %v8466_v63 = vld [vmem:[#allocation15 + $0xf4] ss:$8 sps:$4 sm:$0xff]  }
 0xa46   : > { %7528 = vmatprep.subr.bf16.mxu0 %v8411_v2  ;;  %v8464_v2 = vld [vmem:[#allocation15 + $0xf0] ss:$8 sps:$4 sm:$0xff]  }
 0xa49   : > { %7529 = vmatpush3.bf16.msra.mxu0 %v8412_v3 }
 0xa4a   : > { %7530 = vmatprep.subr.bf16.mxu0 %v8413_v5  ;;  %v8469_v5 = vld [vmem:[#allocation15 + $0x104] ss:$8 sps:$4 sm:$0xff]  }
 0xa4d   : > { %7531 = vmatpush3.bf16.msra.mxu0 %v8414_v6 }
 0xa4e   : > { %7532 = vmatprep.subr.bf16.mxu0 %v8415_v7  ;;  %v8467_v7 = vld [vmem:[#allocation15 + $0x100] ss:$8 sps:$4 sm:$0xff]  }
 0xa51   : > { %7533 = vmatpush3.bf16.msra.mxu0 %v8416_v8 }
 0xa52   : > { %7534 = vmatprep.subr.bf16.mxu0 %v8417_v9  ;;  %v8472_v9 = vld [vmem:[#allocation15 + $0x114] ss:$8 sps:$4 sm:$0xff]  }
 0xa55   : > { %7535 = vmatpush3.bf16.msra.mxu0 %v8418_v10  ;;  %v8470_v10 = vld [vmem:[#allocation15 + $0x110] ss:$8 sps:$4 sm:$0xff]  }
 0xa56   : > { %5365 = vmatprep.subr.bf16.mxu0 %v8421_v12  ;;  %v8473_v12 = vld [vmem:[#allocation15 + $0x120] ss:$8 sps:$4 sm:$0xff]  }
 0xa58   : > { %5247 = vmatmul.mubr.bf16.vlgmr.msra.gmra.mrb[20].mxu0 %v4980_v57  ;;  %v8455_v57 = vld [vmem:[#allocation15 + $0xc0] ss:$8 sps:$4 sm:$0xff]  }
 0xa59   : > { %5397 = vmatprep.mubr.bf16.mxu0 %v8965_v0  ;;  %5366 = vmatpush1.bf16.msra.mxu0 %v8419_v11  ;;  %v8475_v11 = vld [vmem:[#allocation15 + $0x124] ss:$8 sps:$4 sm:$0xff]  }
 0xa5a   : > { %5367 = vmatprep.subr.bf16.mxu0 %v8424_v16  ;;  %v8478_v16 = vld [vmem:[#allocation15 + $0x134] ss:$8 sps:$4 sm:$0xff]  }
 0xa5d   : > { %5368 = vmatpush1.bf16.msra.mxu0 %v8422_v26  ;;  %v8476_v26 = vld [vmem:[#allocation15 + $0x130] ss:$8 sps:$4 sm:$0xff]  }
 0xa5e   : > { %5369 = vmatprep.subr.bf16.mxu0 %v8427_v13  ;;  %v8481_v13 = vld [vmem:[#allocation15 + $0x144] ss:$8 sps:$4 sm:$0xff]  }
 0xa61   : > { %5370 = vmatpush1.bf16.msra.mxu0 %v8425_v15  ;;  %v8479_v15 = vld [vmem:[#allocation15 + $0x140] ss:$8 sps:$4 sm:$0xff]  }
 0xa62   : > { %5371 = vmatprep.subr.bf16.mxu0 %v8430_v37  ;;  %v8484_v37 = vld [vmem:[#allocation15 + $0x154] ss:$8 sps:$4 sm:$0xff]  }
 0xa65   : > { %5372 = vmatpush1.bf16.msra.mxu0 %v8428_v17  ;;  %v8482_v17 = vld [vmem:[#allocation15 + $0x150] ss:$8 sps:$4 sm:$0xff]  }
 0xa66   : > { %5373 = vmatprep.subr.bf16.mxu0 %v8433_v18  ;;  %v8487_v18 = vld [vmem:[#allocation15 + $0x164] ss:$8 sps:$4 sm:$0xff]  }
 0xa69   : > { %5374 = vmatpush1.bf16.msra.mxu0 %v8431_v19  ;;  %v8490_v19 = vld [vmem:[#allocation15 + $0x174] ss:$8 sps:$4 sm:$0xff]  }
 0xa6a   : > { %5375 = vmatprep.subr.bf16.mxu0 %v8436_v20  ;;  %v8488_v20 = vld [vmem:[#allocation15 + $0x170] ss:$8 sps:$4 sm:$0xff]  }
 0xa6d   : > { %5376 = vmatpush1.bf16.msra.mxu0 %v8434_v21  ;;  %v8493_v21 = vld [vmem:[#allocation16 + $0x4] ss:$8 sps:$4 sm:$0xff]  }
 0xa6e   : > { %5377 = vmatprep.subr.bf16.mxu0 %v8439_v22  ;;  %v8491_v22 = vld [vmem:[#allocation16] ss:$8 sps:$4 sm:$0xff]  }
 0xa71   : > { %5378 = vmatpush1.bf16.msra.mxu0 %v8437_v23 }
 0xa72   : > { %5379 = vmatprep.subr.bf16.mxu0 %v8442_v24  ;;  %v8496_v24 = vld [vmem:[#allocation16 + $0x14] ss:$8 sps:$4 sm:$0xff]  }
 0xa75   : > { %5380 = vmatpush1.bf16.msra.mxu0 %v8440_v27  ;;  %v8494_v27 = vld [vmem:[#allocation16 + $0x10] ss:$8 sps:$4 sm:$0xff]  }
 0xa76   : > { %5521 = vmatprep.subr.bf16.mxu0 %v8445_v29  ;;  %v8499_v29 = vld [vmem:[#allocation16 + $0x24] ss:$8 sps:$4 sm:$0xff]  }
 0xb0b   : > { %v7514_v30 = vpop.f32.mrb[16].mxu0 }
 0xb0c   : > { %v7515_v33 = vpop.f32.mrb[17].mxu0 }
 0xb0d   : > { %v7516_v34 = vadd.f32 %v7515_v33, %v7514_v30  ;;  %v7517_v31 = vpop.f32.mrb[18].mxu0  ;;  %v8497_v30 = vld [vmem:[#allocation16 + $0x20] ss:$8 sps:$4 sm:$0xff]   ;;  %v8502_v33 = vld [vmem:[#allocation16 + $0x34] ss:$8 sps:$4 sm:$0xff]  }
 0xb0e   : > { %v7518_v25 = vpop.f32.mrb[19].mxu0  ;;  %v8505_v31 = vld [vmem:[#allocation16 + $0x44] ss:$8 sps:$4 sm:$0xff]  }
 0xb0f   : > { %v8503_v25 = vld [vmem:[#allocation16 + $0x40] ss:$8 sps:$4 sm:$0xff]  }
 0xb2b   : > { %v7536_v4 = vpop.f32.mrb[20].mxu0 }
 0xb2c   : > { %v7537_v36 = vpop.f32.mrb[21].mxu0 }
 0xb2d   : > { %v7538_v38 = vadd.f32 %v7537_v36, %v7536_v4  ;;  %v7539_v28 = vpop.f32.mrb[22].mxu0  ;;  %v8508_v4 = vld [vmem:[#allocation16 + $0x54] ss:$8 sps:$4 sm:$0xff]   ;;  %v8506_v36 = vld [vmem:[#allocation16 + $0x50] ss:$8 sps:$4 sm:$0xff]  }
 0xb2e   : > { %v7540_v41 = vpop.f32.mrb[23].mxu0  ;;  %v8509_v28 = vld [vmem:[#allocation16 + $0x60] ss:$8 sps:$4 sm:$0xff]  }
 0xb2f   : > { %v5254_v42 = vmax.f32 %v7516_v34, %v7538_v38  ;;  %v8500_v34 = vld [vmem:[#allocation16 + $0x30] ss:$8 sps:$4 sm:$0xff]   ;;  %v8511_v38 = vld [vmem:[#allocation16 + $0x64] ss:$8 sps:$4 sm:$0xff]   ;;  %v8514_v41 = vld [vmem:[#allocation16 + $0x74] ss:$8 sps:$4 sm:$0xff]  }
 0xb31   : > { %v5255_v43 = vpack.c.bf16 %v5254_v42, %v5254_v42  ;;  %v8512_v42 = vld [vmem:[#allocation16 + $0x70] ss:$8 sps:$4 sm:$0xff]  }
 0xb33   : > { %v5257_v62 = vshrl.u32 %v5255_v43, 16  ;;  %v5260_v44 = vshll.u32 %v5255_v43, 16  ;;  %v8517_v43 = vld [vmem:[#allocation16 + $0x84] ss:$8 sps:$4 sm:$0xff]  }
 0xb35   : > { %v5259_v1 = vrot.slane %v5257_v62, 7  ;;  %v8515_v62 = vld [vmem:[#allocation16 + $0x80] ss:$8 sps:$4 sm:$0xff]  }
 0xb37   : > { %v5262_v45 = vor.u32 %v5260_v44, %v5259_v1  ;;  %v8520_v1 = vld [vmem:[#allocation16 + $0x94] ss:$8 sps:$4 sm:$0xff]   ;;  %v8518_v44 = vld [vmem:[#allocation16 + $0x90] ss:$8 sps:$4 sm:$0xff]  }
 0xb39   : > { %v5264_v48 = vsel %vm9354_vm2, 0, %v5262_v45  ;;  %v8523_v45 = vld [vmem:[#allocation16 + $0xa4] ss:$8 sps:$4 sm:$0xff]  }
 0xb3a   : > { %v9547_v50 = vsel %vm9539_vm0, %v5264_v48, 0  ;;  %v8526_v48 = vld [vmem:[#allocation16 + $0xb4] ss:$8 sps:$4 sm:$0xff]  }
 0xb3b   : > { %5398 = vmatmul.mubr.bf16.vlgmr.msra.gmra.mrb[24].mxu0 %v9547_v50  ;;  %v5436_v60 = vshll.u32 %v9547_v50, 16  ;;  %v5434_v6 = vshrl.u32 %v9547_v50, 16  ;;  %v5582_v23 = vrot.slane %v9547_v50, 1  ;;  %v8529_v50 = vld [vmem:[#allocation16 + $0xc4] ss:$8 sps:$4 sm:$0xff]  }
 0xb3c   : > { %5522 = vmatpush1.bf16.msra.mxu0 %v8443_v47  ;;  %5553 = vmatprep.mubr.bf16.mxu0 %v8965_v0  ;;  %v8521_v47 = vld [vmem:[#allocation16 + $0xa0] ss:$8 sps:$4 sm:$0xff]  }
 0xb3d   : > { %5523 = vmatprep.subr.bf16.mxu0 %v8448_v49  ;;  %v5438_v3 = vrot.slane %v5436_v60, 1  ;;  %v8524_v49 = vld [vmem:[#allocation16 + $0xb0] ss:$8 sps:$4 sm:$0xff]  }
 0xb3f   : > { %v5439_v8 = vor.u32 %v5438_v3, %v5434_v6 }
 0xb40   : > { %5524 = vmatpush1.bf16.msra.mxu0 %v8446_v51  ;;  %v8527_v51 = vld [vmem:[#allocation16 + $0xc0] ss:$8 sps:$4 sm:$0xff]  }
 0xb41   : > { %5525 = vmatprep.subr.bf16.mxu0 %v8451_v52  ;;  %v8532_v52 = vld [vmem:[#allocation16 + $0xd4] ss:$8 sps:$4 sm:$0xff]  }
 0xb44   : > { %5526 = vmatpush1.bf16.msra.mxu0 %v8449_v53  ;;  %v8530_v53 = vld [vmem:[#allocation16 + $0xd0] ss:$8 sps:$4 sm:$0xff]  }
 0xb45   : > { %5527 = vmatprep.subr.bf16.mxu0 %v8454_v54  ;;  %v8535_v54 = vld [vmem:[#allocation16 + $0xe4] ss:$8 sps:$4 sm:$0xff]  }
 0xb48   : > { %5528 = vmatpush1.bf16.msra.mxu0 %v8452_v55  ;;  %v8533_v55 = vld [vmem:[#allocation16 + $0xe0] ss:$8 sps:$4 sm:$0xff]  }
 0xb49   : > { %5529 = vmatprep.subr.bf16.mxu0 %v8457_v56  ;;  %v8538_v56 = vld [vmem:[#allocation16 + $0xf4] ss:$8 sps:$4 sm:$0xff]  }
 0xb4c   : > { %5530 = vmatpush1.bf16.msra.mxu0 %v8455_v57  ;;  %v8536_v57 = vld [vmem:[#allocation16 + $0xf0] ss:$8 sps:$4 sm:$0xff]  }
 0xb4d   : > { %5531 = vmatprep.subr.bf16.mxu0 %v8460_v58  ;;  %v8541_v58 = vld [vmem:[#allocation16 + $0x104] ss:$8 sps:$4 sm:$0xff]  }
 0xb50   : > { %5532 = vmatpush1.bf16.msra.mxu0 %v8458_v59  ;;  %v5408_v59 = vsub.s32 6, %v9369_v61 }
 0xb51   : > { %5533 = vmatprep.subr.bf16.mxu0 %v8463_v39 }
 0xb52   : > { %v5409_v39 = vrot.slane %v9525_v35, %v5408_v59 }
 0xb54   : > { %5534 = vmatpush1.bf16.msra.mxu0 %v8461_v40  ;;  %v5413_v40 = vrot.slane %v9528_v32, %v5408_v59 }
 0xb55   : > { %5535 = vmatprep.subr.bf16.mxu0 %v8466_v63 }
 0xb58   : > { %5536 = vmatpush1.bf16.msra.mxu0 %v8464_v2 }
 0xb59   : > { %5664 = vmatprep.subr.bf16.mxu0 %v8469_v5 }
 0xb5b   : > { %5554 = vmatmul.mubr.bf16.vlgmr.msra.gmra.mrb[24].mxu0 %v5439_v8 }
 0xb5c   : > { %5665 = vmatpush1.bf16.msra.mxu0 %v8467_v7  ;;  %5696 = vmatprep.mubr.bf16.mxu0 %v8965_v0  ;;  %v8485_v0 = vld [vmem:[#allocation15 + $0x160] ss:$8 sps:$4 sm:$0xff]  }
 0xb5d   : > { %5666 = vmatprep.subr.bf16.mxu0 %v8472_v9 }
 0xb60   : > { %5667 = vmatpush1.bf16.msra.mxu0 %v8470_v10 }
 0xb61   : > { %5668 = vmatprep.subr.bf16.mxu0 %v8475_v11 }
 0xb64   : > { %5669 = vmatpush1.bf16.msra.mxu0 %v8473_v12 }
 0xb65   : > { %5670 = vmatprep.subr.bf16.mxu0 %v8478_v16 }
 0xb68   : > { %5671 = vmatpush1.bf16.msra.mxu0 %v8476_v26 }
 0xb69   : > { %5672 = vmatprep.subr.bf16.mxu0 %v8481_v13 }
 0xb6c   : > { %5673 = vmatpush1.bf16.msra.mxu0 %v8479_v15 }
 0xb6d   : > { %5674 = vmatprep.subr.bf16.mxu0 %v8484_v37 }
 0xb70   : > { %5675 = vmatpush1.bf16.msra.mxu0 %v8482_v17 }
 0xb71   : > { %5676 = vmatprep.subr.bf16.mxu0 %v8487_v18 }
 0xb74   : > { %5677 = vmatpush1.bf16.msra.mxu0 %v8485_v0 }
 0xb75   : > { %5678 = vmatprep.subr.bf16.mxu0 %v8490_v19  ;;  %v8539_v19 = vld [vmem:[#allocation16 + $0x100] ss:$8 sps:$4 sm:$0xff]  }
 0xb78   : > { %5679 = vmatpush1.bf16.msra.mxu0 %v8488_v20 }
 0xb79   : > { %5923 = vmatprep.subr.bf16.mxu0 %v8493_v21  ;;  %v8544_v21 = vld [vmem:[#allocation16 + $0x114] ss:$8 sps:$4 sm:$0xff]  }
 0xb7b   : > { %5697 = vmatmul.mubr.bf16.vlgmr.msra.gmra.mrb[24].mxu0 %v5582_v23 }
 0xb7c   : > { %5924 = vmatpush1.bf16.msra.mxu0 %v8491_v22 }
 0xb7d   : > { %5925 = vmatprep.subr.bf16.mxu0 %v8496_v24  ;;  %v8542_v24 = vld [vmem:[#allocation16 + $0x110] ss:$8 sps:$4 sm:$0xff]  }
 0xb80   : > { %5926 = vmatpush1.bf16.msra.mxu0 %v8494_v27 }
 0xb81   : > { %5927 = vmatprep.subr.bf16.mxu0 %v8499_v29  ;;  %v8547_v29 = vld [vmem:[#allocation16 + $0x124] ss:$8 sps:$4 sm:$0xff]  }
 0xb84   : > { %5928 = vmatpush1.bf16.msra.mxu0 %v8497_v30 }
 0xb85   : > { %5929 = vmatprep.subr.bf16.mxu0 %v8502_v33  ;;  %v8545_v33 = vld [vmem:[#allocation16 + $0x120] ss:$8 sps:$4 sm:$0xff]  }
 0xb88   : > { %5930 = vmatpush1.bf16.msra.mxu0 %v8500_v34  ;;  %v8550_v34 = vld [vmem:[#allocation16 + $0x134] ss:$8 sps:$4 sm:$0xff]  }
 0xb89   : > { %5931 = vmatprep.subr.bf16.mxu0 %v8505_v31  ;;  %v8553_v31 = vld [vmem:[#allocation16 + $0x144] ss:$8 sps:$4 sm:$0xff]  }
 0xb8c   : > { %5932 = vmatpush1.bf16.msra.mxu0 %v8503_v25  ;;  %v8551_v25 = vld [vmem:[#allocation16 + $0x140] ss:$8 sps:$4 sm:$0xff]  }
 0xb8d   : > { %5933 = vmatprep.subr.bf16.mxu0 %v8508_v4  ;;  %v8556_v4 = vld [vmem:[#allocation16 + $0x154] ss:$8 sps:$4 sm:$0xff]  }
 0xb90   : > { %5934 = vmatpush1.bf16.msra.mxu0 %v8506_v36  ;;  %v8554_v36 = vld [vmem:[#allocation16 + $0x150] ss:$8 sps:$4 sm:$0xff]  }
 0xb91   : > { %5935 = vmatprep.subr.bf16.mxu0 %v8511_v38  ;;  %v8559_v38 = vld [vmem:[#allocation16 + $0x164] ss:$8 sps:$4 sm:$0xff]  }
 0xb94   : > { %5936 = vmatpush1.bf16.msra.mxu0 %v8509_v28  ;;  %v8557_v28 = vld [vmem:[#allocation16 + $0x160] ss:$8 sps:$4 sm:$0xff]  }
 0xb95   : > { %5937 = vmatprep.subr.bf16.mxu0 %v8514_v41  ;;  %v8562_v41 = vld [vmem:[#allocation16 + $0x174] ss:$8 sps:$4 sm:$0xff]  }
 0xb98   : > { %5938 = vmatpush1.bf16.msra.mxu0 %v8512_v42  ;;  %v8560_v42 = vld [vmem:[#allocation16 + $0x170] ss:$8 sps:$4 sm:$0xff]  }
 0xb99   : > { %5939 = vmatprep.subr.bf16.mxu0 %v8517_v43  ;;  %v8565_v43 = vld [vmem:[#allocation16 + $0x184] ss:$8 sps:$4 sm:$0xff]  }
 0xb9c   : > { %5940 = vmatpush1.bf16.msra.mxu0 %v8515_v62  ;;  %v8563_v62 = vld [vmem:[#allocation16 + $0x180] ss:$8 sps:$4 sm:$0xff]  }
 0xb9d   : > { %5941 = vmatprep.subr.bf16.mxu0 %v8520_v1  ;;  %v8568_v1 = vld [vmem:[#allocation16 + $0x194] ss:$8 sps:$4 sm:$0xff]  }
 0xba0   : > { %5942 = vmatpush1.bf16.msra.mxu0 %v8518_v44  ;;  %v8566_v44 = vld [vmem:[#allocation16 + $0x190] ss:$8 sps:$4 sm:$0xff]  }
 0xba1   : > { %5943 = vmatprep.subr.bf16.mxu0 %v8523_v45  ;;  %v8571_v45 = vld [vmem:[#allocation16 + $0x1a4] ss:$8 sps:$4 sm:$0xff]  }
 0xba4   : > { %5944 = vmatpush1.bf16.msra.mxu0 %v8521_v47  ;;  %v8569_v47 = vld [vmem:[#allocation16 + $0x1a0] ss:$8 sps:$4 sm:$0xff]  }
 0xba5   : > { %5945 = vmatprep.subr.bf16.mxu0 %v8526_v48  ;;  %v8574_v48 = vld [vmem:[#allocation16 + $0x1b4] ss:$8 sps:$4 sm:$0xff]  }
 0xba8   : > { %5946 = vmatpush1.bf16.msra.mxu0 %v8524_v49  ;;  %v8572_v49 = vld [vmem:[#allocation16 + $0x1b0] ss:$8 sps:$4 sm:$0xff]  }
 0xba9   : > { %5947 = vmatprep.subr.bf16.mxu0 %v8529_v50  ;;  %v8577_v50 = vld [vmem:[#allocation16 + $0x1c4] ss:$8 sps:$4 sm:$0xff]  }
 0xbac   : > { %5948 = vmatpush1.bf16.msra.mxu0 %v8527_v51  ;;  %v8575_v51 = vld [vmem:[#allocation16 + $0x1c0] ss:$8 sps:$4 sm:$0xff]  }
 0xbad   : > { %5949 = vmatprep.subr.bf16.mxu0 %v8532_v52  ;;  %v8580_v52 = vld [vmem:[#allocation16 + $0x1d4] ss:$8 sps:$4 sm:$0xff]  }
 0xbb0   : > { %5950 = vmatpush1.bf16.msra.mxu0 %v8530_v53  ;;  %v8578_v53 = vld [vmem:[#allocation16 + $0x1d0] ss:$8 sps:$4 sm:$0xff]  }
 0xbb1   : > { %5951 = vmatprep.subr.bf16.mxu0 %v8535_v54  ;;  %v8583_v54 = vld [vmem:[#allocation16 + $0x1e4] ss:$8 sps:$4 sm:$0xff]  }
 0xbb4   : > { %5952 = vmatpush1.bf16.msra.mxu0 %v8533_v55  ;;  %v8581_v55 = vld [vmem:[#allocation16 + $0x1e0] ss:$8 sps:$4 sm:$0xff]  }
 0xbb5   : > { %5953 = vmatprep.subr.bf16.mxu0 %v8538_v56 }
 0xbb8   : > { %5954 = vmatpush1.bf16.msra.mxu0 %v8536_v57  ;;  %v8586_v57 = vld [vmem:[#allocation16 + $0x1f4] ss:$8 sps:$4 sm:$0xff]  }
 0xbb9   : > { %6183 = vmatprep.subr.bf16.mxu0 %v8541_v58  ;;  %v8584_v58 = vld [vmem:[#allocation16 + $0x1f0] ss:$8 sps:$4 sm:$0xff]  }
 0xc4e   : > { %v5698_v60 = vpop.f32.mrb[24].mxu0 }
 0xc4f   : > { %v7560_v63 = vadd.f32 %v5698_v60, %v5409_v39  ;;  %v5700_v2 = vpop.f32.mrb[25].mxu0  ;;  %v8589_v39 = vld [vmem:[#allocation16 + $0x204] ss:$8 sps:$4 sm:$0xff]   ;;  %v8587_v60 = vld [vmem:[#allocation16 + $0x200] ss:$8 sps:$4 sm:$0xff]  }
 0xc50   : > { %v7561_v3 = vadd.f32 %v5700_v2, %v5413_v40  ;;  %v5702_v5 = vpop.f32.mrb[26].mxu0  ;;  %v8592_v2 = vld [vmem:[#allocation16 + $0x214] ss:$8 sps:$4 sm:$0xff]  }
 0xc51   : > { %v5707_v6 = vmax.f32 %v7560_v63, 0.0  ;;  %v5703_v7 = vpop.f32.mrb[27].mxu0  ;;  %v8590_v5 = vld [vmem:[#allocation16 + $0x210] ss:$8 sps:$4 sm:$0xff]  }
 0xc52   : > { %v5708_v8 = vmax.f32 %v7561_v3, 0.0  ;;  %v8593_v7 = vld [vmem:[#allocation16 + $0x220] ss:$8 sps:$4 sm:$0xff]  }
 0xc53   : > { %v5709_v9 = vpack.c.bf16 %v5707_v6, %v5707_v6  ;;  %v8595_v6 = vld [vmem:[#allocation16 + $0x224] ss:$8 sps:$4 sm:$0xff]  }
 0xc54   : > { %v5710_v10 = vpack.c.bf16 %v5708_v8, %v5708_v8  ;;  %v8598_v8 = vld [vmem:[#allocation16 + $0x234] ss:$8 sps:$4 sm:$0xff]  }
 0xc55   : > { %v5712_v11 = vshrl.u32 %v5709_v9, 16  ;;  %v5715_v26 = vshll.u32 %v5709_v9, 16  ;;  %v8596_v9 = vld [vmem:[#allocation16 + $0x230] ss:$8 sps:$4 sm:$0xff]  }
 0xc56   : > { %v5719_v12 = vshrl.u32 %v5710_v10, 16  ;;  %v5722_v15 = vshll.u32 %v5710_v10, 16  ;;  %v8601_v10 = vld [vmem:[#allocation16 + $0x244] ss:$8 sps:$4 sm:$0xff]  }
 0xc57   : > { %v5714_v16 = vrot.slane %v5712_v11, 7  ;;  %v8599_v11 = vld [vmem:[#allocation16 + $0x240] ss:$8 sps:$4 sm:$0xff]  }
 0xc58   : > { %v5721_v13 = vrot.slane %v5719_v12, 7  ;;  %v8604_v12 = vld [vmem:[#allocation16 + $0x254] ss:$8 sps:$4 sm:$0xff]  }
 0xc59   : > { %v5717_v37 = vor.u32 %v5715_v26, %v5714_v16  ;;  %v8602_v16 = vld [vmem:[#allocation16 + $0x250] ss:$8 sps:$4 sm:$0xff]   ;;  %v8607_v26 = vld [vmem:[#allocation16 + $0x264] ss:$8 sps:$4 sm:$0xff]  }
 0xc5a   : > { %v5724_v17 = vor.u32 %v5722_v15, %v5721_v13  ;;  %v8605_v13 = vld [vmem:[#allocation16 + $0x260] ss:$8 sps:$4 sm:$0xff]   ;;  %v8610_v15 = vld [vmem:[#allocation16 + $0x274] ss:$8 sps:$4 sm:$0xff]  }
 0xc5b   : > { %v5727_v18 = vsel %vm9354_vm2, 0, %v5717_v37  ;;  %v8608_v37 = vld [vmem:[#allocation16 + $0x270] ss:$8 sps:$4 sm:$0xff]  }
 0xc5c   : > { %v5728_v0 = vsel %vm9354_vm2, 0, %v5724_v17  ;;  %v9569_v22 = vsel %vm9539_vm0, %v5727_v18, 0  ;;  %v8613_v17 = vld [vmem:[#allocation16 + $0x284] ss:$8 sps:$4 sm:$0xff]   ;;  %v8611_v18 = vld [vmem:[#allocation16 + $0x280] ss:$8 sps:$4 sm:$0xff]  }
 0xc5d   : > { %v9564_v20 = vsel %vm9539_vm0, %v5728_v0, 0  ;;  %v6010_v56 = vshll.u32 %v9569_v22, 16  ;;  %v6008_v40 = vshrl.u32 %v9569_v22, 16  ;;  %v8616_v0 = vld [vmem:[#allocation16 + $0x294] ss:$8 sps:$4 sm:$0xff]  }
 0xc5e   : > { %5955 = vmatprep.mubr.bf16.mxu0 %v9564_v20  ;;  %v6017_v23 = vshll.u32 %v9564_v20, 16  ;;  %v6015_v14 = vshrl.u32 %v9564_v20, 16  ;;  %v6262_v3 = vrot.slane %v9564_v20, 1  ;;  %v8619_v20 = vld [vmem:[#allocation16 + $0x2a4] ss:$8 sps:$4 sm:$0xff]  }
 0xc5f   : > { %5956 = vmatmul.mubr.bf16.vlgmr.msra.gmra.mrb[28].mxu0 %v9569_v22  ;;  %v6012_v59 = vrot.slane %v6010_v56, 1 }
 0xc60   : > { %6184 = vmatpush1.bf16.msra.mxu0 %v8539_v19  ;;  %v6019_v27 = vrot.slane %v6017_v23, 1  ;;  %v8614_v19 = vld [vmem:[#allocation16 + $0x290] ss:$8 sps:$4 sm:$0xff]   ;;  %v8622_v23 = vld [vmem:[#allocation16 + $0x2b4] ss:$8 sps:$4 sm:$0xff]  }
 0xc61   : > { %6185 = vmatprep.subr.bf16.mxu0 %v8544_v21  ;;  %v6013_v63 = vor.u32 %v6012_v59, %v6008_v40  ;;  %v8617_v21 = vld [vmem:[#allocation16 + $0x2a0] ss:$8 sps:$4 sm:$0xff]  }
 0xc62   : > { %v6020_v30 = vor.u32 %v6019_v27, %v6015_v14  ;;  %v8625_v14 = vld [vmem:[#allocation16 + $0x2c4] ss:$8 sps:$4 sm:$0xff]   ;;  %v8623_v27 = vld [vmem:[#allocation16 + $0x2c0] ss:$8 sps:$4 sm:$0xff]  }
 0xc64   : > { %6186 = vmatpush1.bf16.msra.mxu0 %v8542_v24  ;;  %6215 = vmatprep.mubr.bf16.mxu0 %v6020_v30  ;;  %v8620_v24 = vld [vmem:[#allocation16 + $0x2b0] ss:$8 sps:$4 sm:$0xff]  }
 0xc65   : > { %6187 = vmatprep.subr.bf16.mxu0 %v8547_v29  ;;  %v8628_v29 = vld [vmem:[#allocation16 + $0x2d4] ss:$8 sps:$4 sm:$0xff]   ;;  %v8626_v30 = vld [vmem:[#allocation16 + $0x2d0] ss:$8 sps:$4 sm:$0xff]  }
 0xc68   : > { %6188 = vmatpush1.bf16.msra.mxu0 %v8545_v33  ;;  %v8631_v33 = vld [vmem:[#allocation16 + $0x2e4] ss:$8 sps:$4 sm:$0xff]  }
 0xc69   : > { %6189 = vmatprep.subr.bf16.mxu0 %v8550_v34  ;;  %v8629_v34 = vld [vmem:[#allocation16 + $0x2e0] ss:$8 sps:$4 sm:$0xff]  }
 0xc6c   : > { %6190 = vmatpush1.bf16.msra.mxu0 %v8548_v46  ;;  %v8634_v46 = vld [vmem:[#allocation16 + $0x2f4] ss:$8 sps:$4 sm:$0xff]  }
 0xc6d   : > { %6191 = vmatprep.subr.bf16.mxu0 %v8553_v31  ;;  %v8632_v31 = vld [vmem:[#allocation16 + $0x2f0] ss:$8 sps:$4 sm:$0xff]  }
 0xc70   : > { %6192 = vmatpush1.bf16.msra.mxu0 %v8551_v25  ;;  %v6261_v25 = vrot.slane %v9569_v22, 1 }
 0xc71   : > { %6193 = vmatprep.subr.bf16.mxu0 %v8556_v4  ;;  %v5966_v4 = vsub.s32 7, %v9369_v61 }
 0xc74   : > { %6194 = vmatpush1.bf16.msra.mxu0 %v8554_v36  ;;  %v5967_v36 = vrot.slane %v9525_v35, %v5966_v4 }
 0xc75   : > { %6195 = vmatprep.subr.bf16.mxu0 %v8559_v38  ;;  %v5971_v38 = vrot.slane %v9528_v32, %v5966_v4 }
 0xc78   : > { %6196 = vmatpush1.bf16.msra.mxu0 %v8557_v28 }
 0xc79   : > { %6197 = vmatprep.subr.bf16.mxu0 %v8562_v41 }
 0xc7c   : > { %6198 = vmatpush1.bf16.msra.mxu0 %v8560_v42 }
 0xc7d   : > { %6199 = vmatprep.subr.bf16.mxu0 %v8565_v43 }
 0xc80   : > { %6200 = vmatpush1.bf16.msra.mxu0 %v8563_v62 }
 0xc81   : > { %6201 = vmatprep.subr.bf16.mxu0 %v8568_v1 }
 0xc84   : > { %6202 = vmatpush1.bf16.msra.mxu0 %v8566_v44 }
 0xc85   : > { %6203 = vmatprep.subr.bf16.mxu0 %v8571_v45 }
 0xc88   : > { %6204 = vmatpush1.bf16.msra.mxu0 %v8569_v47 }
 0xc89   : > { %6205 = vmatprep.subr.bf16.mxu0 %v8574_v48 }
 0xc8c   : > { %6206 = vmatpush1.bf16.msra.mxu0 %v8572_v49 }
 0xc8d   : > { %6207 = vmatprep.subr.bf16.mxu0 %v8577_v50 }
 0xc90   : > { %6208 = vmatpush1.bf16.msra.mxu0 %v8575_v51 }
 0xc91   : > { %6209 = vmatprep.subr.bf16.mxu0 %v8580_v52 }
 0xc94   : > { %6210 = vmatpush1.bf16.msra.mxu0 %v8578_v53 }
 0xc95   : > { %6211 = vmatprep.subr.bf16.mxu0 %v8583_v54 }
 0xc98   : > { %6212 = vmatpush1.bf16.msra.mxu0 %v8581_v55 }
 0xc99   : > { %6213 = vmatprep.subr.bf16.mxu0 %v8586_v57 }
 0xc9c   : > { %6214 = vmatpush1.bf16.msra.mxu0 %v8584_v58 }
 0xc9d   : > { %6425 = vmatprep.subr.bf16.mxu0 %v8589_v39 }
 0xc9f   : > { %6216 = vmatmul.mubr.bf16.vlgmr.msra.gmra.mrb[28].mxu0 %v6013_v63 }
 0xca0   : > { %6426 = vmatpush1.bf16.msra.mxu0 %v8587_v60  ;;  %6457 = vmatprep.mubr.bf16.mxu0 %v6262_v3 }
 0xca1   : > { %6427 = vmatprep.subr.bf16.mxu0 %v8592_v2 }
 0xca4   : > { %6428 = vmatpush1.bf16.msra.mxu0 %v8590_v5 }
 0xca5   : > { %6429 = vmatprep.subr.bf16.mxu0 %v8595_v6 }
 0xca8   : > { %6430 = vmatpush1.bf16.msra.mxu0 %v8593_v7 }
 0xca9   : > { %6431 = vmatprep.subr.bf16.mxu0 %v8598_v8 }
 0xcac   : > { %6432 = vmatpush1.bf16.msra.mxu0 %v8596_v9 }
 0xcad   : > { %6433 = vmatprep.subr.bf16.mxu0 %v8601_v10 }
 0xcb0   : > { %6434 = vmatpush1.bf16.msra.mxu0 %v8599_v11 }
 0xcb1   : > { %6435 = vmatprep.subr.bf16.mxu0 %v8604_v12 }
 0xcb4   : > { %6436 = vmatpush1.bf16.msra.mxu0 %v8602_v16 }
 0xcb5   : > { %6437 = vmatprep.subr.bf16.mxu0 %v8607_v26 }
 0xcb8   : > { %6438 = vmatpush1.bf16.msra.mxu0 %v8605_v13 }
 0xcb9   : > { %6439 = vmatprep.subr.bf16.mxu0 %v8610_v15 }
 0xcbc   : > { %6440 = vmatpush1.bf16.msra.mxu0 %v8608_v37 }
 0xcbd   : > { %6441 = vmatprep.subr.bf16.mxu0 %v8613_v17 }
 0xcc0   : > { %6442 = vmatpush1.bf16.msra.mxu0 %v8611_v18 }
 0xcc1   : > { %6443 = vmatprep.subr.bf16.mxu0 %v8616_v0 }
 0xcc4   : > { %6444 = vmatpush1.bf16.msra.mxu0 %v8614_v19 }
 0xcc5   : > { %6445 = vmatprep.subr.bf16.mxu0 %v8619_v20 }
 0xcc8   : > { %6446 = vmatpush1.bf16.msra.mxu0 %v8617_v21 }
 0xcc9   : > { %6447 = vmatprep.subr.bf16.mxu0 %v8622_v23 }
 0xccc   : > { %6448 = vmatpush1.bf16.msra.mxu0 %v8620_v24 }
 0xccd   : > { %6449 = vmatprep.subr.bf16.mxu0 %v8625_v14 }
 0xcd0   : > { %6450 = vmatpush1.bf16.msra.mxu0 %v8623_v27 }
 0xcd1   : > { %6451 = vmatprep.subr.bf16.mxu0 %v8628_v29 }
 0xcd4   : > { %6452 = vmatpush1.bf16.msra.mxu0 %v8626_v30 }
 0xcd5   : > { %6453 = vmatprep.subr.bf16.mxu0 %v8631_v33 }
 0xcd8   : > { %6454 = vmatpush1.bf16.msra.mxu0 %v8629_v34 }
 0xcd9   : > { %6455 = vmatprep.subr.bf16.mxu0 %v8634_v46 }
 0xcdc   : > { %6456 = vmatpush1.bf16.msra.mxu0 %v8632_v31 }
 0xcdf   : > { %6458 = vmatmul.mubr.bf16.vlgmr.msra.gmra.mrb[28].mxu0 %v6261_v25 }
 0xdb2   : > { %v6459_v28 = vpop.f32.mrb[28].mxu0 }
 0xdb3   : > { %v7562_v41 = vadd.f32 %v6459_v28, %v5967_v36  ;;  %v6461_v42 = vpop.f32.mrb[29].mxu0 }
 0xdb4   : > { %v7563_v43 = vadd.f32 %v6461_v42, %v5971_v38  ;;  %v6463_v62 = vpop.f32.mrb[30].mxu0 }
 0xdb5   : > { %v6468_v1 = vmax.f32 %v7562_v41, 0.0  ;;  %v6464_v44 = vpop.f32.mrb[31].mxu0 }
 0xdb6   : > { %v6469_v45 = vmax.f32 %v7563_v43, 0.0 }
 0xdb8   : > { %v6472_v22 = vcombine.low %v6468_v1, %v6469_v45 }
 0xdba   : > { %7402 = vst.sshfl [vmem:[%s633_s11] sm:$0x33 pattern:$0x76325410] %v6472_v22 }
 0xdbb PF: > { %s9635_s12 = sld [smem:[#allocation24_spill]] }
 0xdc1   : > { %s31_s29 = sadd.s32 1, %s9635_s12  }
 0xdc2   : > { %p28_p13 = scmp.ge.s32.totalorder %s31_s29, 4  }
 0xdc4   :  { %30 = sbr.rel (!%p28_p13) target bundleno = 9 (0x9), region = 192 }
 0xdcb   :  { %6551 = vsyncpa [#allocation3], 1 }
 0xdcc   :  { %6553 = vsyncpa [#allocation3 + $0x1], 1 }
 0xdcd   :  { %6554 = vsyncpa [#allocation5], 1 }
 0xdce   :  { %6555 = vsyncpa [#allocation8], 1 }
 0xdcf   :  { %6556 = vsyncpa [#allocation11], 1 }
 0xdd0   :  { %6557 = vsyncpa [#allocation14], 1 }
 0xdd1   :  { %6558 = vsyncpa [#allocation17], 1 }

</bundles_post_ra>
